<compile_context>
chip_gen: v5e
topology: v5e:2x2
jax: 0.10.0
libtpu: 0.0.40
codegen_flags: <defaults>
</compile_context>

<pallas_src>
import functools
import numpy as np

import jax
import jax.numpy as jnp
from jax.experimental import pallas as pl
from jax.experimental.pallas import tpu as pltpu

EPS = 1e-5


def _vmem_capacity_bytes():
    try:
        info = pltpu.get_tpu_info()
        cap = getattr(info, "vmem_capacity_bytes", None)
        if cap:
            return int(cap)
    except Exception:
        pass
    return 128 * 1024 * 1024          # v5e / v6e default


_VMEM_CAP = _vmem_capacity_bytes()
# Larger activation tiles on 128 MiB chips (v5e/v6e); smaller on v7x (64 MiB).
ROW_CAP = 1024 if _VMEM_CAP >= (100 << 20) else 512
VMEM_LIMIT = int(min(48 << 20, _VMEM_CAP * 0.6))


def _largest_divisor(n, cap):
    best = 1
    for d in range(1, n + 1):
        if n % d == 0 and d <= cap:
            best = d
    return best


def _choose_row_tile(n, cap):
    """Largest divisor of n that is <= cap and a multiple of 8, else n (full)."""
    best = None
    for d in range(8, n + 1, 8):
        if n % d == 0 and d <= cap:
            best = d
    return best if best is not None else n


def _choose_hidden_tile(h, cap=512):
    """Largest divisor of h that is <= cap and a multiple of 128, else h (full)."""
    best = None
    for d in range(128, h + 1, 128):
        if h % d == 0 and d <= cap:
            best = d
    return best if best is not None else h


# ----------------------------------------------------------------------------
# Kernel 1: fused norm1 + window attention + first residual
#           (a batch of WB windows per grid step, heads batched)
# ----------------------------------------------------------------------------
def window_attn_kernel(x_ref, g1_ref, b1_ref, qkv_w_ref, qkv_b_ref,
                       proj_w_ref, proj_b_ref, bias_ref, *rest,
                       num_heads, use_mask, pad_geom):
    if use_mask:
        mask_ref, o_ref = rest
    else:
        (o_ref,) = rest

    WB, N, C = x_ref.shape
    hd = C // num_heads
    R = WB * N

    # ---- norm1 (fused), f32 statistics --------------------------------------
    x = x_ref[...].reshape(R, C)
    mu = jnp.mean(x, axis=-1, keepdims=True)
    var = jnp.mean((x - mu) ** 2, axis=-1, keepdims=True)
    xn = (x - mu) * jax.lax.rsqrt(var + EPS) * g1_ref[...] + b1_ref[...]

    if pad_geom is not None:
        # Padded tokens must be exactly 0 after norm1 (the reference applies
        # LN *before* padding).  Derive validity from window geometry
        # in-registers instead of streaming a lane-1 mask from HBM.
        ws, shift, H, W, Hp, Wp, nW_img = pad_geom
        nWw = Wp // ws
        r_iota = jax.lax.broadcasted_iota(jnp.int32, (R, 1), 0)
        w_glb = pl.program_id(0) * WB + r_iota // N
        n_idx = r_iota % N
        w_img = w_glb % nW_img
        row = (w_img // nWw) * ws + n_idx // ws
        col = (w_img % nWw) * ws + n_idx % ws
        src_r = (row + shift) % Hp
        src_c = (col + shift) % Wp
        valid = jnp.logical_and(src_r < H, src_c < W)
        xn = xn * valid.astype(xn.dtype)

    # ---- fused QKV: one (R, C) @ (C, 3C) matmul (scale folded into Wq/bq) ----
    qkv = jnp.dot(xn, qkv_w_ref[...], preferred_element_type=jnp.float32)
    qkv = qkv + qkv_b_ref[...]

    # ---- head-batched attention: single batch dim = windows * heads ----------
    qkv = qkv.reshape(WB, N, 3 * num_heads, hd).transpose(0, 2, 1, 3)  # (WB,3nh,N,hd)
    q = qkv[:, :num_heads].reshape(WB * num_heads, N, hd)
    k = qkv[:, num_heads:2 * num_heads].reshape(WB * num_heads, N, hd)
    v = qkv[:, 2 * num_heads:].reshape(WB * num_heads, N, hd)

    s = jax.lax.dot_general(q, k, (((2,), (2,)), ((0,), (0,))),
                            preferred_element_type=jnp.float32)        # (WB*nh,N,N)
    s = s.reshape(WB, num_heads, N, N) + bias_ref[...][None]
    if use_mask:
        s = s + mask_ref[...][:, None, :, :]

    # softmax: exp + EUP reciprocal (avoids the VALU divide)
    s = s - jnp.max(s, axis=-1, keepdims=True)
    p = jnp.exp(s)
    p = p * pl.reciprocal(jnp.sum(p, axis=-1, keepdims=True), approx=True)
    p = p.reshape(WB * num_heads, N, N)

    ctx = jax.lax.dot_general(p, v, (((2,), (1,)), ((0,), (0,))),
                              preferred_element_type=jnp.float32)       # (WB*nh,N,hd)
    ctx = ctx.reshape(WB, num_heads, N, hd).transpose(0, 2, 1, 3).reshape(R, C)

    # ---- projection + fused first residual -----------------------------------
    out = jnp.dot(ctx, proj_w_ref[...],
                  preferred_element_type=jnp.float32) + proj_b_ref[...]
    y = x + out
    # TODO(synk): on v5e with C < 128 a lane-dense (WB, N*C) output slab would
    # avoid masked partial stores; kept 3-D here for layout simplicity.
    o_ref[...] = y.reshape(WB, N, C).astype(o_ref.dtype)


def window_attention(x_windows, p, mask, num_heads, pad_geom):
    nWt, N, C = x_windows.shape
    use_mask = mask is not None
    base = mask.shape[0] if use_mask else nWt         # wb must divide this
    # cap windows/step by the row budget and keep grid length >= 2 when possible
    cap = max(1, min(ROW_CAP // max(N, 1), max(1, nWt // 2)))
    wb = _largest_divisor(base, cap)
    grid = (nWt // wb,)

    kernel = functools.partial(window_attn_kernel, num_heads=num_heads,
                               use_mask=use_mask, pad_geom=pad_geom)

    in_specs = [
        pl.BlockSpec((wb, N, C), lambda i: (i, 0, 0)),            # x windows
        pl.BlockSpec((1, C), lambda i: (0, 0)),                   # gamma1
        pl.BlockSpec((1, C), lambda i: (0, 0)),                   # beta1
        pl.BlockSpec((C, 3 * C), lambda i: (0, 0)),               # fused qkv W^T
        pl.BlockSpec((1, 3 * C), lambda i: (0, 0)),               # fused qkv b
        pl.BlockSpec((C, C), lambda i: (0, 0)),                   # proj W^T
        pl.BlockSpec((1, C), lambda i: (0, 0)),                   # proj b
        pl.BlockSpec((num_heads, N, N), lambda i: (0, 0, 0)),     # rel-pos bias
    ]
    args = [x_windows, p["g1"], p["b1"], p["qkv_wt"], p["qkv_b"],
            p["proj_wt"], p["proj_b"], p["rel_bias"]]
    if use_mask:
        nW = mask.shape[0]
        assert nW % wb == 0 and nWt % nW == 0
        nmb = nW // wb
        # untiled mask, modulo index_map: no duplicated HBM stream
        in_specs.append(pl.BlockSpec((wb, N, N), lambda i: (i % nmb, 0, 0)))
        args.append(mask)

    return pl.pallas_call(
        kernel,
        out_shape=jax.ShapeDtypeStruct((nWt, N, C), x_windows.dtype),
        grid=grid,
        in_specs=in_specs,
        out_specs=pl.BlockSpec((wb, N, C), lambda i: (i, 0, 0)),
        compiler_params=pltpu.CompilerParams(
            dimension_semantics=("parallel",),
            vmem_limit_bytes=VMEM_LIMIT),
    )(*args)


# ----------------------------------------------------------------------------
# Kernel 2: fused norm2 + MLP + second residual, hidden-dim reduction axis
#   in:  a = x + attn (first residual already fused into kernel 1)
#   out: a + fc2(gelu(fc1(LN(a))))
# ----------------------------------------------------------------------------
def mlp_block_kernel(a_ref, g_ref, be_ref, w1_ref, b1_ref, w2_ref, b2_ref,
                     o_ref, acc_ref):
    k = pl.program_id(1)
    x1 = a_ref[...]                                   # x + attention
    mu = jnp.mean(x1, axis=-1, keepdims=True)
    var = jnp.mean((x1 - mu) ** 2, axis=-1, keepdims=True)
    xn = (x1 - mu) * jax.lax.rsqrt(var + EPS) * g_ref[...] + be_ref[...]

    h = jnp.dot(xn, w1_ref[...], preferred_element_type=jnp.float32) + b1_ref[...]
    h = jax.nn.gelu(h, approximate=False)             # exact erf GELU (PyTorch default)
    part = jnp.dot(h, w2_ref[...], preferred_element_type=jnp.float32)

    @pl.when(k == 0)
    def _():
        acc_ref[...] = jnp.zeros_like(acc_ref)

    acc_ref[...] += part

    @pl.when(k == pl.num_programs(1) - 1)
    def _():
        o_ref[...] = (x1 + acc_ref[...] + b2_ref[...]).astype(o_ref.dtype)


def mlp_block(a2d, p):
    R, C = a2d.shape
    Hh = p["w1t"].shape[1]
    tile_rows = _choose_row_tile(R, min(ROW_CAP, max(8, R // 2)))
    tH = _choose_hidden_tile(Hh)
    nk = Hh // tH
    grid = (R // tile_rows, nk)

    return pl.pallas_call(
        mlp_block_kernel,
        out_shape=jax.ShapeDtypeStruct((R, C), a2d.dtype),
        grid=grid,
        in_specs=[
            pl.BlockSpec((tile_rows, C), lambda i, k: (i, 0)),    # x + attn
            pl.BlockSpec((1, C), lambda i, k: (0, 0)),            # gamma2
            pl.BlockSpec((1, C), lambda i, k: (0, 0)),            # beta2
            pl.BlockSpec((C, tH), lambda i, k: (0, k)),           # fc1 W^T block
            pl.BlockSpec((1, tH), lambda i, k: (0, k)),           # fc1 b block
            pl.BlockSpec((tH, C), lambda i, k: (k, 0)),           # fc2 W^T block
            pl.BlockSpec((1, C), lambda i, k: (0, 0)),            # fc2 b
        ],
        out_specs=pl.BlockSpec((tile_rows, C), lambda i, k: (i, 0)),
        scratch_shapes=[pltpu.VMEM((tile_rows, C), jnp.float32)],
        compiler_params=pltpu.CompilerParams(
            dimension_semantics=("parallel", "arbitrary"),
            vmem_limit_bytes=VMEM_LIMIT),
    )(a2d, p["g2"], p["b2"], p["w1t"], p["b1m"], p["w2t"], p["b2m"])


# ----------------------------------------------------------------------------
# JAX glue: window partition / reverse / mask / relative position index
# ----------------------------------------------------------------------------
def window_partition(x, ws):
    B, H, W, C = x.shape
    x = x.reshape(B, H // ws, ws, W // ws, ws, C)
    return x.transpose(0, 1, 3, 2, 4, 5).reshape(-1, ws, ws, C)


def window_reverse(windows, ws, H, W):
    B = windows.shape[0] // ((H // ws) * (W // ws))
    x = windows.reshape(B, H // ws, W // ws, ws, ws, -1)
    return x.transpose(0, 1, 3, 2, 4, 5).reshape(B, H, W, -1)


def create_mask(H, W, ws, ss):
    Hp = int(np.ceil(H / ws)) * ws
    Wp = int(np.ceil(W / ws)) * ws
    img_mask = np.zeros((1, Hp, Wp, 1), np.float32)
    h_slices = (slice(0, -ws), slice(-ws, -ss), slice(-ss, None))
    w_slices = (slice(0, -ws), slice(-ws, -ss), slice(-ss, None))
    cnt = 0
    for h in h_slices:
        for w in w_slices:
            img_mask[:, h, w, :] = cnt
            cnt += 1
    mw = img_mask.reshape(1, Hp // ws, ws, Wp // ws, ws, 1)
    mw = mw.transpose(0, 1, 3, 2, 4, 5).reshape(-1, ws * ws)
    attn_mask = mw[:, None, :] - mw[:, :, None]
    attn_mask = np.where(attn_mask != 0, -100.0, 0.0).astype(np.float32)
    return jnp.asarray(attn_mask)          # (nW, N, N)


def relative_position_index(ws):
    coords = np.stack(np.meshgrid(np.arange(ws), np.arange(ws), indexing="ij"))
    flat = coords.reshape(2, -1)
    rel = flat[:, :, None] - flat[:, None, :]
    rel = rel.transpose(1, 2, 0).astype(np.int64)
    rel[:, :, 0] += ws - 1
    rel[:, :, 1] += ws - 1
    rel[:, :, 0] *= 2 * ws - 1
    return rel.sum(-1)                      # (N, N)


# ----------------------------------------------------------------------------
# BasicLayer forward
# ----------------------------------------------------------------------------
def swin_block_forward(x, p, H, W, ws, shift, attn_mask, num_heads):
    B, L, C = x.shape
    ximg = x.reshape(B, H, W, C)

    pad_r = (ws - W % ws) % ws
    pad_b = (ws - H % ws) % ws
    need_pad = (pad_r > 0) or (pad_b > 0)
    xp = jnp.pad(ximg, ((0, 0), (0, pad_b), (0, pad_r), (0, 0))) if need_pad else ximg
    Hp, Wp = H + pad_b, W + pad_r

    shifted = jnp.roll(xp, shift=(-shift, -shift), axis=(1, 2)) if shift > 0 else xp
    xw = window_partition(shifted, ws).reshape(-1, ws * ws, C)

    pad_geom = (ws, shift, H, W, Hp, Wp, (Hp // ws) * (Wp // ws)) if need_pad else None
    mask = attn_mask if shift > 0 else None            # untiled (nW, N, N)

    # attention kernel output already contains the first residual (x + attn);
    # window_reverse / roll / crop distribute over the addition, so the result
    # below equals shortcut + attention exactly.
    aw = window_attention(xw, p, mask, num_heads, pad_geom)
    aw = aw.reshape(-1, ws, ws, C)
    rimg = window_reverse(aw, ws, Hp, Wp)
    rimg = jnp.roll(rimg, shift=(shift, shift), axis=(1, 2)) if shift > 0 else rimg
    a2d = rimg[:, :H, :W, :].reshape(B * L, C)

    y = mlp_block(a2d, p)
    return y.reshape(B, L, C)


def basic_layer_forward(x, block_params, H, W, ws, num_heads):
    shift_size = ws // 2
    attn_mask = create_mask(H, W, ws, shift_size)
    for i, p in enumerate(block_params):
        shift = 0 if i % 2 == 0 else shift_size
        x = swin_block_forward(x, p, H, W, ws, shift, attn_mask, num_heads)
    # downsample is None -> pass through
    return x, H, W


# ----------------------------------------------------------------------------
# Deterministic parameter init (synthetic; shapes follow the nn.Module)
# ----------------------------------------------------------------------------
def init_block_params(key, dim, num_heads, ws, mlp_ratio):
    hd = dim // num_heads
    hidden = int(dim * mlp_ratio)
    N = ws * ws
    scale = hd ** (-0.5)
    ks = jax.random.split(key, 8)

    qkv_w = jax.random.normal(ks[0], (3 * dim, dim), jnp.float32) * 0.02
    qkv_b = jax.random.normal(ks[1], (3 * dim,), jnp.float32) * 0.02
    proj_w = jax.random.normal(ks[2], (dim, dim), jnp.float32) * 0.02
    proj_b = jax.random.normal(ks[3], (dim,), jnp.float32) * 0.02
    table = jax.random.normal(ks[4], ((2 * ws - 1) * (2 * ws - 1), num_heads),
                              jnp.float32) * 0.02
    w1 = jax.random.normal(ks[5], (hidden, dim), jnp.float32) * 0.02
    b1 = jax.random.normal(ks[6], (hidden,), jnp.float32) * 0.02
    w2 = jax.random.normal(ks[7], (dim, hidden), jnp.float32) * 0.02
    b2 = jnp.zeros((dim,), jnp.float32)

    # fold the attention scale into the q projection (weight + bias)
    qkv_wt = qkv_w.T                                   # (C, 3C) = [Wq|Wk|Wv]
    qkv_wt = qkv_wt.at[:, :dim].multiply(scale)
    qkv_bf = qkv_b.at[:dim].multiply(scale).reshape(1, 3 * dim)

    idx = relative_position_index(ws)                  # (N, N)
    rel_bias = table[idx.reshape(-1)].reshape(N, N, num_heads)
    rel_bias = jnp.transpose(rel_bias, (2, 0, 1))      # (nh, N, N)

    return {
        "g1": jnp.ones((1, dim), jnp.float32), "b1": jnp.zeros((1, dim), jnp.float32),
        "g2": jnp.ones((1, dim), jnp.float32), "b2": jnp.zeros((1, dim), jnp.float32),
        "qkv_wt": qkv_wt, "qkv_b": qkv_bf,
        "proj_wt": proj_w.T, "proj_b": proj_b.reshape(1, dim),
        "rel_bias": rel_bias,
        "w1t": w1.T, "b1m": b1.reshape(1, hidden),
        "w2t": w2.T, "b2m": b2.reshape(1, dim),
    }


if __name__ == "__main__":
    # small config: dim=32, depth=2, num_heads=4, window_size=4, H=W=8, B=2
    B, H, W = 2, 8, 8
    dim, depth, num_heads, window_size, mlp_ratio = 32, 2, 4, 4, 4.0

    key = jax.random.PRNGKey(0)
    kx, kp = jax.random.split(key)
    x = jax.random.normal(kx, (B, H * W, dim), jnp.float32)

    block_params = [
        init_block_params(k, dim, num_heads, window_size, mlp_ratio)
        for k in jax.random.split(kp, depth)
    ]

    out, Ho, Wo = basic_layer_forward(x, block_params, H, W, window_size, num_heads)
    out = jax.block_until_ready(out)
    assert out.shape == (B, H * W, dim) and (Ho, Wo) == (H, W)
    assert bool(jnp.all(jnp.isfinite(out)))
    print("KERNEL_OK")
</pallas_src>

<mosaic_0001>
module attributes {stable_mosaic.version = 11 : i64} {
  func.func @window_attn_kernel(%arg0: i32, %arg1: memref<4x16x32xf32, #tpu.memory_space<vmem>>, %arg2: memref<1x32xf32, #tpu.memory_space<vmem>>, %arg3: memref<1x32xf32, #tpu.memory_space<vmem>>, %arg4: memref<32x96xf32, #tpu.memory_space<vmem>>, %arg5: memref<1x96xf32, #tpu.memory_space<vmem>>, %arg6: memref<32x32xf32, #tpu.memory_space<vmem>>, %arg7: memref<1x32xf32, #tpu.memory_space<vmem>>, %arg8: memref<4x16x16xf32, #tpu.memory_space<vmem>>, %arg9: memref<4x16x32xf32, #tpu.memory_space<vmem>>) attributes {dimension_semantics = [#tpu.dimension_semantics<parallel>], iteration_bounds = array<i64: 2>, scalar_prefetch = 0 : i64, scratch_operands = 0 : i64, tpu.core_type = #tpu.core_type<tc>, window_params = [{transform_indices = @transform_0, window_bounds = array<i64: 4, 16, 32>}, {pipeline_mode = #tpu.pipeline_mode<synchronous>, transform_indices = @transform_1, window_bounds = array<i64: 1, 32>}, {pipeline_mode = #tpu.pipeline_mode<synchronous>, transform_indices = @transform_2, window_bounds = array<i64: 1, 32>}, {pipeline_mode = #tpu.pipeline_mode<synchronous>, transform_indices = @transform_3, window_bounds = array<i64: 32, 96>}, {pipeline_mode = #tpu.pipeline_mode<synchronous>, transform_indices = @transform_4, window_bounds = array<i64: 1, 96>}, {pipeline_mode = #tpu.pipeline_mode<synchronous>, transform_indices = @transform_5, window_bounds = array<i64: 32, 32>}, {pipeline_mode = #tpu.pipeline_mode<synchronous>, transform_indices = @transform_6, window_bounds = array<i64: 1, 32>}, {pipeline_mode = #tpu.pipeline_mode<synchronous>, transform_indices = @transform_7, window_bounds = array<i64: 4, 16, 16>}, {transform_indices = @transform_8, window_bounds = array<i64: 4, 16, 32>}]} {
    %c0 = arith.constant 0 : index
    %c0_0 = arith.constant 0 : index
    %c0_1 = arith.constant 0 : index
    %0 = vector.load %arg1[%c0, %c0_0, %c0_1] : memref<4x16x32xf32, #tpu.memory_space<vmem>>, vector<4x16x32xf32>
    %1 = vector.shape_cast %0 : vector<4x16x32xf32> to vector<64x32xf32>
    %cst = arith.constant dense<0.000000e+00> : vector<64xf32>
    %2 = vector.multi_reduction <add>, %1, %cst [1] : vector<64x32xf32> to vector<64xf32>
    %3 = vector.shape_cast %2 : vector<64xf32> to vector<64x1xf32>
    %cst_2 = arith.constant 3.200000e+01 : f32
    %4 = vector.broadcast %cst_2 : f32 to vector<64x1xf32>
    %5 = arith.divf %3, %4 : vector<64x1xf32>
    %6 = vector.broadcast %5 : vector<64x1xf32> to vector<64x32xf32>
    %7 = arith.subf %1, %6 : vector<64x32xf32>
    %8 = arith.mulf %7, %7 : vector<64x32xf32>
    %cst_3 = arith.constant dense<0.000000e+00> : vector<64xf32>
    %9 = vector.multi_reduction <add>, %8, %cst_3 [1] : vector<64x32xf32> to vector<64xf32>
    %10 = vector.shape_cast %9 : vector<64xf32> to vector<64x1xf32>
    %cst_4 = arith.constant 3.200000e+01 : f32
    %11 = vector.broadcast %cst_4 : f32 to vector<64x1xf32>
    %12 = arith.divf %10, %11 : vector<64x1xf32>
    %13 = vector.broadcast %5 : vector<64x1xf32> to vector<64x32xf32>
    %14 = arith.subf %1, %13 : vector<64x32xf32>
    %cst_5 = arith.constant 9.99999974E-6 : f32
    %15 = vector.broadcast %cst_5 : f32 to vector<64x1xf32>
    %16 = arith.addf %12, %15 : vector<64x1xf32>
    %17 = math.rsqrt %16 : vector<64x1xf32>
    %18 = vector.broadcast %17 : vector<64x1xf32> to vector<64x32xf32>
    %19 = arith.mulf %14, %18 : vector<64x32xf32>
    %c0_6 = arith.constant 0 : index
    %c0_7 = arith.constant 0 : index
    %20 = vector.load %arg2[%c0_6, %c0_7] : memref<1x32xf32, #tpu.memory_space<vmem>>, vector<1x32xf32>
    %21 = vector.broadcast %20 : vector<1x32xf32> to vector<64x32xf32>
    %22 = arith.mulf %19, %21 : vector<64x32xf32>
    %c0_8 = arith.constant 0 : index
    %c0_9 = arith.constant 0 : index
    %23 = vector.load %arg3[%c0_8, %c0_9] : memref<1x32xf32, #tpu.memory_space<vmem>>, vector<1x32xf32>
    %24 = vector.broadcast %23 : vector<1x32xf32> to vector<64x32xf32>
    %25 = arith.addf %22, %24 : vector<64x32xf32>
    %c0_10 = arith.constant 0 : index
    %c0_11 = arith.constant 0 : index
    %26 = vector.load %arg4[%c0_10, %c0_11] : memref<32x96xf32, #tpu.memory_space<vmem>>, vector<32x96xf32>
    %cst_12 = arith.constant dense<0.000000e+00> : vector<64x96xf32>
    %27 = tpu.matmul %25, %26, %cst_12 {dimension_numbers = #tpu.dot_dimension_numbers<[1], [0], [0], [1], [0, 0, 1, 1], [], []>} : vector<64x32xf32>, vector<32x96xf32>, vector<64x96xf32> -> vector<64x96xf32>
    %c0_13 = arith.constant 0 : index
    %c0_14 = arith.constant 0 : index
    %28 = vector.load %arg5[%c0_13, %c0_14] : memref<1x96xf32, #tpu.memory_space<vmem>>, vector<1x96xf32>
    %29 = vector.broadcast %28 : vector<1x96xf32> to vector<64x96xf32>
    %30 = arith.addf %27, %29 : vector<64x96xf32>
    %31 = vector.shape_cast %30 : vector<64x96xf32> to vector<4x16x12x8xf32>
    %32 = tpu.transpose %31, [0, 2, 1, 3] : vector<4x16x12x8xf32> -> vector<4x12x16x8xf32>
    %33 = vector.extract_strided_slice %32 {offsets = [0, 0, 0, 0], sizes = [4, 4, 16, 8], strides = [1, 1, 1, 1]} : vector<4x12x16x8xf32> to vector<4x4x16x8xf32>
    %34 = vector.shape_cast %33 : vector<4x4x16x8xf32> to vector<16x16x8xf32>
    %35 = vector.extract_strided_slice %32 {offsets = [0, 4, 0, 0], sizes = [4, 4, 16, 8], strides = [1, 1, 1, 1]} : vector<4x12x16x8xf32> to vector<4x4x16x8xf32>
    %36 = vector.shape_cast %35 : vector<4x4x16x8xf32> to vector<16x16x8xf32>
    %37 = vector.extract_strided_slice %32 {offsets = [0, 8, 0, 0], sizes = [4, 4, 16, 8], strides = [1, 1, 1, 1]} : vector<4x12x16x8xf32> to vector<4x4x16x8xf32>
    %38 = vector.shape_cast %37 : vector<4x4x16x8xf32> to vector<16x16x8xf32>
    %cst_15 = arith.constant dense<0.000000e+00> : vector<16x16x16xf32>
    %39 = tpu.matmul %34, %36, %cst_15 {dimension_numbers = #tpu.dot_dimension_numbers<[2], [2], [1], [1], [0, 0, 0, 1, 1, 1], [0], [0]>} : vector<16x16x8xf32>, vector<16x16x8xf32>, vector<16x16x16xf32> -> vector<16x16x16xf32>
    %40 = vector.shape_cast %39 : vector<16x16x16xf32> to vector<4x4x16x16xf32>
    %c0_16 = arith.constant 0 : index
    %c0_17 = arith.constant 0 : index
    %c0_18 = arith.constant 0 : index
    %41 = vector.load %arg8[%c0_16, %c0_17, %c0_18] : memref<4x16x16xf32, #tpu.memory_space<vmem>>, vector<4x16x16xf32>
    %42 = vector.shape_cast %41 : vector<4x16x16xf32> to vector<1x4x16x16xf32>
    %43 = vector.broadcast %42 : vector<1x4x16x16xf32> to vector<4x4x16x16xf32>
    %44 = arith.addf %40, %43 : vector<4x4x16x16xf32>
    %cst_19 = arith.constant dense<0xFF800000> : vector<4x4x16xf32>
    %45 = vector.multi_reduction <maximumf>, %44, %cst_19 [3] : vector<4x4x16x16xf32> to vector<4x4x16xf32>
    %46 = vector.shape_cast %45 : vector<4x4x16xf32> to vector<4x4x16x1xf32>
    %47 = vector.broadcast %46 : vector<4x4x16x1xf32> to vector<4x4x16x16xf32>
    %48 = arith.subf %44, %47 : vector<4x4x16x16xf32>
    %49 = math.exp %48 : vector<4x4x16x16xf32>
    %cst_20 = arith.constant dense<0.000000e+00> : vector<4x4x16xf32>
    %50 = vector.multi_reduction <add>, %49, %cst_20 [3] : vector<4x4x16x16xf32> to vector<4x4x16xf32>
    %51 = vector.shape_cast %50 : vector<4x4x16xf32> to vector<4x4x16x1xf32>
    %52 = tpu.reciprocal %51 {approx = true} : vector<4x4x16x1xf32> -> vector<4x4x16x1xf32>
    %53 = vector.broadcast %52 : vector<4x4x16x1xf32> to vector<4x4x16x16xf32>
    %54 = arith.mulf %49, %53 : vector<4x4x16x16xf32>
    %55 = vector.shape_cast %54 : vector<4x4x16x16xf32> to vector<16x16x16xf32>
    %cst_21 = arith.constant dense<0.000000e+00> : vector<16x16x8xf32>
    %56 = tpu.matmul %55, %38, %cst_21 {dimension_numbers = #tpu.dot_dimension_numbers<[2], [1], [1], [2], [0, 0, 0, 1, 1, 2], [0], [0]>} : vector<16x16x16xf32>, vector<16x16x8xf32>, vector<16x16x8xf32> -> vector<16x16x8xf32>
    %57 = vector.shape_cast %56 : vector<16x16x8xf32> to vector<4x4x16x8xf32>
    %58 = tpu.transpose %57, [0, 2, 1, 3] : vector<4x4x16x8xf32> -> vector<4x16x4x8xf32>
    %59 = vector.shape_cast %58 : vector<4x16x4x8xf32> to vector<64x32xf32>
    %c0_22 = arith.constant 0 : index
    %c0_23 = arith.constant 0 : index
    %60 = vector.load %arg6[%c0_22, %c0_23] : memref<32x32xf32, #tpu.memory_space<vmem>>, vector<32x32xf32>
    %cst_24 = arith.constant dense<0.000000e+00> : vector<64x32xf32>
    %61 = tpu.matmul %59, %60, %cst_24 {dimension_numbers = #tpu.dot_dimension_numbers<[1], [0], [0], [1], [0, 0, 1, 1], [], []>} : vector<64x32xf32>, vector<32x32xf32>, vector<64x32xf32> -> vector<64x32xf32>
    %c0_25 = arith.constant 0 : index
    %c0_26 = arith.constant 0 : index
    %62 = vector.load %arg7[%c0_25, %c0_26] : memref<1x32xf32, #tpu.memory_space<vmem>>, vector<1x32xf32>
    %63 = vector.broadcast %62 : vector<1x32xf32> to vector<64x32xf32>
    %64 = arith.addf %61, %63 : vector<64x32xf32>
    %65 = arith.addf %1, %64 : vector<64x32xf32>
    %66 = vector.shape_cast %65 : vector<64x32xf32> to vector<4x16x32xf32>
    %c0_27 = arith.constant 0 : index
    %c0_28 = arith.constant 0 : index
    %c0_29 = arith.constant 0 : index
    %67 = vector.load %arg9[%c0_27, %c0_28, %c0_29] : memref<4x16x32xf32, #tpu.memory_space<vmem>>, vector<4x16x32xf32>
    tpu.vector_store %arg9[%c0_27, %c0_28, %c0_29], %66 {strides = array<i32>} : memref<4x16x32xf32, #tpu.memory_space<vmem>>, vector<4x16x32xf32>,
    return
  }
  func.func @transform_0(%arg0: i32) -> (i32, i32, i32) {
    %c0_i32 = arith.constant 0 : i32
    %c0_i32_0 = arith.constant 0 : i32
    %c0_i32_1 = arith.constant 0 : i32
    return %arg0, %c0_i32, %c0_i32_0 : i32, i32, i32
  }
  func.func @transform_1(%arg0: i32) -> (i32, i32) {
    %c0_i32 = arith.constant 0 : i32
    %c0_i32_0 = arith.constant 0 : i32
    %c0_i32_1 = arith.constant 0 : i32
    return %c0_i32, %c0_i32_0 : i32, i32
  }
  func.func @transform_2(%arg0: i32) -> (i32, i32) {
    %c0_i32 = arith.constant 0 : i32
    %c0_i32_0 = arith.constant 0 : i32
    %c0_i32_1 = arith.constant 0 : i32
    return %c0_i32, %c0_i32_0 : i32, i32
  }
  func.func @transform_3(%arg0: i32) -> (i32, i32) {
    %c0_i32 = arith.constant 0 : i32
    %c0_i32_0 = arith.constant 0 : i32
    %c0_i32_1 = arith.constant 0 : i32
    return %c0_i32, %c0_i32_0 : i32, i32
  }
  func.func @transform_4(%arg0: i32) -> (i32, i32) {
    %c0_i32 = arith.constant 0 : i32
    %c0_i32_0 = arith.constant 0 : i32
    %c0_i32_1 = arith.constant 0 : i32
    return %c0_i32, %c0_i32_0 : i32, i32
  }
  func.func @transform_5(%arg0: i32) -> (i32, i32) {
    %c0_i32 = arith.constant 0 : i32
    %c0_i32_0 = arith.constant 0 : i32
    %c0_i32_1 = arith.constant 0 : i32
    return %c0_i32, %c0_i32_0 : i32, i32
  }
  func.func @transform_6(%arg0: i32) -> (i32, i32) {
    %c0_i32 = arith.constant 0 : i32
    %c0_i32_0 = arith.constant 0 : i32
    %c0_i32_1 = arith.constant 0 : i32
    return %c0_i32, %c0_i32_0 : i32, i32
  }
  func.func @transform_7(%arg0: i32) -> (i32, i32, i32) {
    %c0_i32 = arith.constant 0 : i32
    %c0_i32_0 = arith.constant 0 : i32
    %c0_i32_1 = arith.constant 0 : i32
    %c0_i32_2 = arith.constant 0 : i32
    return %c0_i32, %c0_i32_0, %c0_i32_1 : i32, i32, i32
  }
  func.func @transform_8(%arg0: i32) -> (i32, i32, i32) {
    %c0_i32 = arith.constant 0 : i32
    %c0_i32_0 = arith.constant 0 : i32
    %c0_i32_1 = arith.constant 0 : i32
    return %arg0, %c0_i32, %c0_i32_0 : i32, i32, i32
  }
}

</mosaic_0001>

<bundles_post_ra>
// kernel: tpu_custom_call.1
= control target key start
LH: loop header
LB: loop body
LE: loop exit
PB: predicated region body
PF: predicated region fallthrough
CT: control target
= control target key end

     0   :  { %s10780_s0 = inlined_call_operand.hbm [shape: f32[8,16,32], index: 0, kind: input, shape index: {}]   ;;  %s10781_s1 = inlined_call_operand.hbm [shape: f32[1,32], index: 1, kind: input, shape index: {}]   ;;  %s10782_s2 = inlined_call_operand.vmem [shape: f32[1,32], index: 2, kind: input, shape index: {}]   ;;  %s10783_s3 = inlined_call_operand.hbm [shape: f32[32,96], index: 3, kind: input, shape index: {}]   ;;  %s10784_s4 = inlined_call_operand.vmem [shape: f32[1,96], index: 4, kind: input, shape index: {}]   ;;  %s10785_s5 = inlined_call_operand.hbm [shape: f32[32,32], index: 5, kind: input, shape index: {}]   ;;  %s10786_s6 = inlined_call_operand.vmem [shape: f32[1,32], index: 6, kind: input, shape index: {}]   ;;  %s10787_s7 = inlined_call_operand.hbm [shape: f32[4,16,16], index: 7, kind: input, shape index: {}]   ;;  %s10788_s8 = inlined_call_operand.hbm [shape: f32[8,16,32], index: 8, kind: output, shape index: {}]  }
   0x1   :  { %10807 = sst [smem:[#allocation27_spill]] %s10781_s1 }
   0x2   :  { %10808 = sst [smem:[#allocation28_spill]] %s10783_s3 }
   0x3   :  { %13 = vsyncpa [#allocation3], 0 }
   0x4   :  { %15 = vsyncpa [#allocation3 + $0x1], 0 }
   0x5   :  { %16 = vsyncpa [#allocation6], 0 }
   0x6   :  { %17 = vsyncpa [#allocation9], 0 }
   0x7   :  { %18 = vsyncpa [#allocation4], 0 }
   0x8   :  { %20 = vsyncpa [#allocation4 + $0x1], 0  ;;  %s7055_s27 = smov 0   ;;  %s7057_s28 = smov 0  }
   0x9   :  { %s7059_s29 = smov 0   ;;  %s7061_s30 = smov 0  }
   0xa LB: > { %s7076_s9 = sadd.s32 4294967295, %s6984_s30   ;;  %s6263_s10 = sadd.s32 4294967294, %s6984_s30   ;;  %s6984_s30 = sphi %s7061_s30, %s10880_s30   ;;  %s6980_s29 = sphi %s7059_s29, %s10879_s29   ;;  %s6976_s28 = sphi %s7057_s28, %s10878_s28   ;;  %s6972_s27 = sphi %s7055_s27, %s10877_s27  }
   0xb   : > { %p46_p0 = scmp.ne.s32.totalorder %s6976_s28, %s6972_s27  ;;  %p47_p1 = scmp.eq.s32.totalorder %s7076_s9, 0 }
   0xc   : > { %p217_p2 = scmp.eq.s32.totalorder %s7076_s9, 1  ;;  %p223_p3 = scmp.eq.s32.totalorder %s6263_s10, 1 }
   0xd   : > { %p7085_p4 = por %p47_p1, %p46_p0  ;;  %p6264_p5 = scmp.ge.s32.totalorder %s6984_s30, 1 }
   0xe   : > { %p7090_p6 = por %p223_p3, %p46_p0  ;;  %p230_p7 = scmp.lt.s32.totalorder %s6984_s30, 3 }
   0xf   : > { %s10811_s1 = sld [smem:[#allocation27_spill]]  ;;  %s6986_s17 = smov [#allocation5]  }
  0x10   : > { %p7098_p8 = pnand %p6264_p5, %p230_p7  ;;  %s244_s18 = sshll.u32 %s6986_s17, 4  ;;  %s245_s18 = int_to_ptr.vmem [resolvable:$true] %s244_s18 }
  0x11   : > { %s273_s22 = sshll.u32 %s10785_s5, 4  ;;  %s6987_s23 = smov [#allocation8]   ;;  %s274_s22 = int_to_ptr.hbm [resolvable:$true] %s273_s22 }
  0x12   : > { %p6435_p10 = pneg %p7098_p8  ;;  %s275_s24 = sshll.u32 %s6987_s23, 4  ;;  %s276_s24 = int_to_ptr.vmem [resolvable:$true] %s275_s24 }
  0x13   : > { %s10814_s3 = sld [smem:[#allocation28_spill]]  ;;  %s10789_s13 = smov 128  }
  0x14   : > { %p7107_p11 = pnand %p6435_p10, %p47_p1  ;;  %s10790_s14 = smov 8  }
  0x15   : > { %s242_s15 = sshll.u32 %s10811_s1, 4  ;;  %s6990_s20 = smov [#allocation7]   ;;  %s243_s15 = int_to_ptr.hbm [resolvable:$true] %s242_s15 }
  0x16   : > { %6438 = dma.hbm_to_vmem [thread:$0]  (!%p7107_p11), %s243_s15, 16, %s245_s18, [#allocation6]  }
  0x17   : > { %6444 = dma.hbm_to_vmem [thread:$0]  (!%p7107_p11), %s274_s22, 512, %s276_s24, [#allocation9], %s10789_s13, %s10789_s13, %s10790_s14  }
  0x18   : > { %s290_s18 = sshll.u32 %s10787_s7, 4  ;;  %s258_s21 = sshll.u32 %s6990_s20, 4  ;;  %s291_s18 = int_to_ptr.hbm [resolvable:$true] %s290_s18  ;;  %s259_s21 = int_to_ptr.vmem [resolvable:$true] %s258_s21 }
  0x19   : > { %s256_s10 = sshll.u32 %s10814_s3, 4  ;;  %s6991_s23 = smov [#allocation10]   ;;  %s257_s10 = int_to_ptr.hbm [resolvable:$true] %s256_s10 }
  0x1a   : > { %6441 = dma.hbm_to_vmem [thread:$0]  (!%p7107_p11), %s257_s10, 512, %s259_s21, [#allocation6], %s10789_s13, %s10789_s13, %s10790_s14  }
  0x1b   : > { %s292_s22 = sshll.u32 %s6991_s23, 4  ;;  %s7138_s24 = sadd.s32 1, %s6984_s30   ;;  %s293_s22 = int_to_ptr.vmem [resolvable:$true] %s292_s22 }
  0x1c   : > { %6447 = dma.hbm_to_vmem [thread:$0]  (!%p7107_p11), %s291_s18, 1024, %s293_s22, [#allocation9], %s10789_s13, %s10789_s13, %s10790_s14  }
  0x1d   : > { %s33_s25 = sadd.s32 1, %s6980_s29  ;;  %s30_s26 = ssub.s32 %s6984_s30, %s7138_s24 }
  0x1e   : > { %p40_p12 = scmp.ne.s32.totalorder %s6980_s29, %s6976_s28  ;;  %p31_p13 = scmp.eq.s32.totalorder %s30_s26, 0 }
  0x1f   : > { %p41_p0 = scmp.eq.s32.totalorder %s6984_s30, 0  ;;  %p6460_p5 = scmp.lt.s32.totalorder %s6984_s30, 2 }
  0x20   : > { %p7148_p3 = por %p217_p2, %p40_p12  ;;  %s306_s19 = sand.u32 1, %s6980_s29  }
  0x21   : > { %s7154_s15 = scalar_select %p31_p13, %s6980_s29, %s33_s25  }
  0x22   : > { %p42_p7 = por %p41_p0, %p40_p12  ;;  %s6270_s17 = sshll.u32 %s306_s19, 6 }
  0x23   : > { %s6400_s18 = sshll.u32 %s6984_s30, 6  ;;  %s310_s22 = scalar_lea.vmem [#allocation2], %s6270_s17 }
  0x24   : > { %s316_s23 = scalar_lea.hbm %s10780_s0, %s6400_s18  ;;  %s319_s13 = sshll.u32 %s310_s22, 4  ;;  %s320_s13 = int_to_ptr.vmem [resolvable:$true] %s319_s13 }
  0x25   : > { %s317_s26 = sshll.u32 %s316_s23, 4  ;;  %p7161_p2 = pnand %p6460_p5, %p42_p7  ;;  %s318_s26 = int_to_ptr.hbm [resolvable:$true] %s317_s26 }
  0x26   : > { %s307_s25 = scalar_lea.sflag [#allocation3], %s306_s19  ;;  %s6880_s1 = sshra.s32 %s318_s26, 4  ;;  %s6881_s1 = int_to_ptr.hbm [resolvable:$true] %s6880_s1 }
  0x27   : > { %s6882_s3 = scalar_lea.hbm %s6881_s1, 64  ;;  %p6884_p11 = pneg %p7161_p2 }
  0x28   : > { %p6883_p10 = scmp.ne.s32.totalorder %s6881_s1, %s6882_s3  ;;  %s6887_s20 = scalar_lea.hbm %s10780_s0, 128 }
  0x29   : > { %p6888_p0 = scmp.lt.s32.totalorder %s6881_s1, %s10780_s0  ;;  %p6889_p5 = scmp.lt.s32.totalorder %s6887_s20, %s6882_s3 }
  0x2a   : > { %p6885_p12 = pnand %p6884_p11, %p6883_p10 }
  0x2b   : > { %p6890_p7 = por %p6889_p5, %p6888_p0 }
  0x2c   : > { %p6886_p13 = pneg %p6885_p12 }
  0x2e   : > { %p6891_p9 = pnand %p6890_p7, %p6886_p13 }
  0x30   : > { %6894 = shalt.err (!%p6891_p9)
}
  0x31   : > { %s10817_s19 = smov 8   ;;  %s10818_s22 = smov 128  }
  0x32   : > { %6451 = dma.hbm_to_vmem [thread:$0]  (!%p7161_p2), %s318_s26, 1024, %s320_s13, %s307_s25, %s10818_s22, %s10818_s22, %s10817_s19  }
  0x33   : > { %331 = sbr.rel (%p7098_p8) target bundleno = 1812 (0x714), region = 52 }
  0x38   : > { %s7181_s18 = sand.u32 1, %s6976_s28  }
  0x39   : > { %s6275_s1 = sshll.u32 %s7181_s18, 6  ;;  %s334_s3 = scalar_lea.sflag [#allocation3], %s7181_s18 }
  0x3a   : > { %s7187_s17 = scalar_lea.vmem [#allocation2], %s6275_s1 }
  0x3b   : > { %6955 = dma.done.wait (%p7085_p4), %s334_s3, 1024  }
  0x3c   : > { %6957 = vsyncadd (%p7085_p4), %s334_s3, 4294966272 }
  0x3d   : > { %6959 = dma.done.wait (%p47_p1), [#allocation6], 528  }
  0x3e   : > { %6961 = vsyncadd (%p47_p1), [#allocation6], 4294966768 }
  0x3f   : > { %6963 = dma.done.wait (%p47_p1), [#allocation9], 1536  }
  0x40   : > { %6965 = vsyncadd (%p47_p1), [#allocation9], 4294965760  ;;  %vm401_vm0 = vcmask 261120   ;;  %v397_v0 = vld [vmem:[%s7187_s17 + $0x20] sm:$0xff]  ;;  %v395_v1 = vld [vmem:[%s7187_s17 + $0x10] sm:$0xff]  ;;  %v6992_v14 = vmov 32.0  }
  0x41   : > { %v393_v2 = vld [vmem:[%s7187_s17] sm:$0xff]  ;;  %v414_v3 = vsel %vm401_vm0, %v397_v0, 0.0  ;;  %v408_v4 = vsel %vm401_vm0, %v395_v1, 0.0  ;;  %v398_v6 = vld [vmem:[%s7187_s17 + $0x28] sm:$0xff]  ;;  %v396_v7 = vld [vmem:[%s7187_s17 + $0x18] sm:$0xff]  ;;  %6606 = vrcp.f32 %v6992_v14  ;;  %s6993_s26 = smov 88  }
  0x42   : > { %v402_v5 = vsel %vm401_vm0, %v393_v2, 0.0  ;;  %415 = vadd.xlane.f32.xlu2 %v414_v3  ;;  %409 = vadd.xlane.f32.xlu1 %v408_v4  ;;  %v394_v8 = vld [vmem:[%s7187_s17 + $0x8] sm:$0xff]  ;;  %v417_v9 = vsel %vm401_vm0, %v398_v6, 0.0  ;;  %v411_v10 = vsel %vm401_vm0, %v396_v7, 0.0  ;;  %v399_v12 = vld [vmem:[%s7187_s17 + $0x30] sm:$0xff]  ;;  %v7251_v50 = vld [vmem:[%s7187_s17 + $0x38] sm:$0xff] }
  0x43   : > { %403 = vadd.xlane.f32.xlu0 %v402_v5  ;;  %v405_v11 = vsel %vm401_vm0, %v394_v8, 0.0  ;;  %v420_v13 = vsel %vm401_vm0, %v399_v12, 0.0  ;;  %v423_v54 = vsel %vm401_vm0, %v7251_v50, 0.0  ;;  %v612_v58 = vld [vmem:[#allocation7 + $0x18] sm:$0xff]  ;;  %v611_v59 = vld [vmem:[#allocation7 + $0x10] sm:$0xff]  ;;  %v610_v60 = vld [vmem:[#allocation7 + $0x8] sm:$0xff] }
  0x44   : > { %653 = vmatpush.msra.mxu0 %v612_v58  ;;  %6403 = vmatpush.msra.mxu1 %v612_v58  ;;  %v609_v61 = vld [vmem:[#allocation7] sm:$0xff]  ;;  %s6994_s25 = smov 112   ;;  %s6995_s20 = smov 104  }
  0x45   : > { %6404 = vmatpush.msra.mxu2 %v612_v58  ;;  %6405 = vmatpush.msra.mxu3 %v612_v58  ;;  %s6996_s21 = smov 80   ;;  %s6997_s23 = smov 96  }
  0x46   : > { %654 = vmatpush.msra.mxu0 %v611_v59  ;;  %6406 = vmatpush.msra.mxu1 %v611_v59  ;;  %s6998_s19 = smov 120   ;;  %s6999_s22 = smov 72  }
  0x47   : > { %v6607_v15 = vpop.eup %6606  ;;  %6407 = vmatpush.msra.mxu2 %v611_v59  ;;  %6408 = vmatpush.msra.mxu3 %v611_v59  ;;  %s7002_s3 = smov 64   ;;  %s7003_s11 = smov 48  }
  0x48   : > { %v427_v16 = vmul.f32 32.0, %v6607_v15  ;;  %vm431_vm1 = vweird.f32 %v6607_v15  ;;  %655 = vmatpush.msra.mxu0 %v610_v60  ;;  %6409 = vmatpush.msra.mxu1 %v610_v60  ;;  %s7004_s16 = smov 40   ;;  %s7005_s13 = smov 56  }
  0x49   : > { %6410 = vmatpush.msra.mxu2 %v610_v60  ;;  %6411 = vmatpush.msra.mxu3 %v610_v60  ;;  %s7006_s14 = smov 16  }
  0x4a   : > { %418 = vadd.xlane.f32.xlu2 %v417_v9  ;;  %412 = vadd.xlane.f32.xlu1 %v411_v10  ;;  %v428_v17 = vsub.f32 1.0, %v427_v16 }
  0x4b   : > { %406 = vadd.xlane.f32.xlu0 %v405_v11  ;;  %656 = vmatpush.msra.mxu0 %v609_v61 }
  0x4c   : > { %v429_v18 = vmul.f32 %v6607_v15, %v428_v17  ;;  %6412 = vmatpush.msra.mxu1 %v609_v61  ;;  %6413 = vmatpush.msra.mxu2 %v609_v61 }
  0x4d   : > { %6414 = vmatpush.msra.mxu3 %v609_v61 }
  0x4e   : > { %v430_v19 = vadd.f32 %v6607_v15, %v429_v18 }
  0x50   : > { %v7215_v20 = vsel %vm431_vm1, %v6607_v15, %v430_v19 }
  0x52   : > { %421 = vadd.xlane.f32.xlu2 %v420_v13 }
  0xb5   : > { %v416_v21 = vpop.xlane.xlu2 %415  ;;  %v410_v22 = vpop.xlane.xlu1 %409 }
  0xb6   : > { %v404_v23 = vpop.xlane.xlu0 %403  ;;  %v435_v24 = vmul.f32 %v7215_v20, %v410_v22  ;;  %v437_v34 = vmul.f32 %v7215_v20, %v416_v21 }
  0xb7   : > { %v433_v25 = vmul.f32 %v7215_v20, %v404_v23 }
  0xb8   : > { %v7221_v27 = vsub.f32 %v395_v1, %v435_v24  ;;  %v7237_v40 = vsub.f32 %v397_v0, %v437_v34 }
  0xb9   : > { %v7219_v26 = vsub.f32 %v393_v2, %v433_v25 }
  0xba   : > { %v451_v36 = vmul.f32 %v7221_v27, %v7221_v27  ;;  %v453_v48 = vmul.f32 %v7237_v40, %v7237_v40 }
  0xbb   : > { %v449_v28 = vmul.f32 %v7219_v26, %v7219_v26 }
  0xbc   : > { %v463_v41 = vsel %vm401_vm0, %v451_v36, 0.0  ;;  %v469_v53 = vsel %vm401_vm0, %v453_v48, 0.0  ;;  %v7301_v48 = vld [vmem:[%s10782_s2] ss:$0 sm:$0xff] }
  0xbd   : > { %v419_v29 = vpop.xlane.xlu2 %418  ;;  %v413_v30 = vpop.xlane.xlu1 %412  ;;  %v457_v31 = vsel %vm401_vm0, %v449_v28, 0.0 }
  0xbe   : > { %v436_v32 = vmul.f32 %v7215_v20, %v413_v30  ;;  %458 = vadd.xlane.f32.xlu0 %v457_v31  ;;  %v407_v33 = vpop.xlane.xlu0 %406  ;;  %v438_v47 = vmul.f32 %v7215_v20, %v419_v29 }
  0xbf   : > { %v434_v35 = vmul.f32 %v7215_v20, %v407_v33 }
  0xc0   : > { %v7231_v37 = vsub.f32 %v396_v7, %v436_v32  ;;  %v7255_v52 = vsub.f32 %v398_v6, %v438_v47 }
  0xc1   : > { %v7233_v38 = vsub.f32 %v394_v8, %v434_v35 }
  0xc2   : > { %v452_v39 = vmul.f32 %v7231_v37, %v7231_v37  ;;  %v454_v56 = vmul.f32 %v7255_v52, %v7255_v52 }
  0xc3   : > { %v450_v42 = vmul.f32 %v7233_v38, %v7233_v38 }
  0xc4   : > { %v466_v43 = vsel %vm401_vm0, %v452_v39, 0.0  ;;  %v472_v57 = vsel %vm401_vm0, %v454_v56, 0.0  ;;  %v7294_v39 = vld [vmem:[#allocation5] ss:$0 sm:$0xff] }
  0xc5   : > { %v422_v44 = vpop.xlane.xlu2 %421  ;;  %467 = vadd.xlane.f32.xlu2 %v466_v43  ;;  %v460_v45 = vsel %vm401_vm0, %v450_v42, 0.0 }
  0xc6   : > { %v439_v46 = vmul.f32 %v7215_v20, %v422_v44  ;;  %464 = vadd.xlane.f32.xlu0 %v463_v41  ;;  %461 = vadd.xlane.f32.xlu1 %v460_v45 }
  0xc8   : > { %v7248_v49 = vsub.f32 %v399_v12, %v439_v46 }
  0xca   : > { %v455_v51 = vmul.f32 %v7248_v49, %v7248_v49 }
  0xcc   : > { %v475_v55 = vsel %vm401_vm0, %v455_v51, 0.0 }
  0xcd   : > { %476 = vadd.xlane.f32.xlu2 %v475_v55 }
  0xce   : > { %470 = vadd.xlane.f32.xlu0 %v469_v53  ;;  %424 = vadd.xlane.f32.xlu1 %v423_v54 }
  0xd6   : > { %473 = vadd.xlane.f32.xlu1 %v472_v57 }
 0x131   : > { %v459_v62 = vpop.xlane.xlu0 %458 }
 0x132   : > { %v481_v63 = vmul.f32 %v459_v62, %v7215_v20 }
 0x134   : > { %v489_v0 = vadd.f32 1e-05, %v481_v63 }
 0x136   : > { %6608 = vrsqrt.f32 %v489_v0  ;;  %vm503_vm3 = vweird.f32 %v489_v0 }
 0x138   : > { %v468_v1 = vpop.xlane.xlu2 %467 }
 0x139   : > { %v484_v2 = vmul.f32 %v468_v1, %v7215_v20  ;;  %v462_v3 = vpop.xlane.xlu1 %461  ;;  %v465_v4 = vpop.xlane.xlu0 %464 }
 0x13a   : > { %v482_v5 = vmul.f32 %v462_v3, %v7215_v20  ;;  %v483_v6 = vmul.f32 %v465_v4, %v7215_v20 }
 0x13b   : > { %v7268_v7 = vadd.f32 1e-05, %v484_v2 }
 0x13c   : > { %v6609_v8 = vpop.eup %6608  ;;  %v7270_v9 = vadd.f32 1e-05, %v482_v5  ;;  %v491_v10 = vadd.f32 1e-05, %v483_v6 }
 0x13d   : > { %v498_v11 = vmul.f32 %v6609_v8, %v489_v0  ;;  %6610 = vrsqrt.f32 %v7268_v7  ;;  %vm504_vm2 = vweird.f32 %v6609_v8  ;;  %vm533_vm8 = vweird.f32 %v7268_v7 }
 0x13e   : > { %6612 = vrsqrt.f32 %v7270_v9  ;;  %vm505_vm4 = vmor %vm503_vm3, %vm504_vm2  ;;  %vm523_vm5 = vweird.f32 %v491_v10  ;;  %vm513_vm10 = vweird.f32 %v7270_v9 }
 0x13f   : > { %v499_v12 = vmul.f32 %v6609_v8, %v498_v11  ;;  %6614 = vrsqrt.f32 %v491_v10 }
 0x140   : > { %v477_v13 = vpop.xlane.xlu2 %476 }
 0x141   : > { %v500_v14 = vmul.f32 0.5, %v499_v12  ;;  %v487_v15 = vmul.f32 %v477_v13, %v7215_v20  ;;  %v425_v16 = vpop.xlane.xlu1 %424  ;;  %v471_v17 = vpop.xlane.xlu0 %470 }
 0x142   : > { %v440_v18 = vmul.f32 %v7215_v20, %v425_v16  ;;  %v485_v19 = vmul.f32 %v471_v17, %v7215_v20 }
 0x143   : > { %v7277_v21 = vpop.eup %6610  ;;  %v501_v22 = vsub.f32 1.5, %v500_v14  ;;  %v7279_v23 = vadd.f32 1e-05, %v487_v15 }
 0x144   : > { %v6613_v24 = vpop.eup %6612  ;;  %v528_v25 = vmul.f32 %v7277_v21, %v7268_v7  ;;  %v7284_v28 = vsub.f32 %v7251_v50, %v440_v18  ;;  %v7286_v29 = vadd.f32 1e-05, %v485_v19  ;;  %vm534_vm9 = vweird.f32 %v7277_v21 }
 0x145   : > { %v6615_v30 = vpop.eup %6614  ;;  %v502_v31 = vmul.f32 %v6609_v8, %v501_v22  ;;  %v508_v32 = vmul.f32 %v6613_v24, %v7270_v9  ;;  %6616 = vrsqrt.f32 %v7279_v23  ;;  %vm514_vm7 = vweird.f32 %v6613_v24  ;;  %vm7319_vm13 = vmor %vm533_vm8, %vm534_vm9 }
 0x146   : > { %v529_v33 = vmul.f32 %v7277_v21, %v528_v25  ;;  %v518_v34 = vmul.f32 %v6615_v30, %v491_v10  ;;  %6618 = vrsqrt.f32 %v7286_v29  ;;  %v456_v36 = vmul.f32 %v7284_v28, %v7284_v28  ;;  %vm515_vm12 = vmor %vm513_vm10, %vm514_vm7 }
 0x147   : > { %v509_v35 = vmul.f32 %v6613_v24, %v508_v32  ;;  %v506_v43 = vsel %vm505_vm4, %v6609_v8, %v502_v31  ;;  %vm524_vm6 = vweird.f32 %v6615_v30  ;;  %vm563_vm14 = vweird.f32 %v7279_v23 }
 0x148   : > { %v530_v41 = vmul.f32 0.5, %v529_v33  ;;  %v519_v42 = vmul.f32 %v6615_v30, %v518_v34  ;;  %v478_v45 = vsel %vm401_vm0, %v456_v36, 0.0  ;;  %v577_v47 = vmul.f32 %v506_v43, %v7219_v26  ;;  %vm7310_vm11 = vmor %vm523_vm5, %vm524_vm6 }
 0x149   : > { %v510_v44 = vmul.f32 0.5, %v509_v35  ;;  %v474_v46 = vpop.xlane.xlu1 %473  ;;  %479 = vadd.xlane.f32.xlu0 %v478_v45  ;;  %vm543_vm1 = vweird.f32 %v7286_v29 }
 0x14a   : > { %v531_v50 = vsub.f32 1.5, %v530_v41  ;;  %v520_v51 = vmul.f32 0.5, %v519_v42  ;;  %v486_v53 = vmul.f32 %v474_v46, %v7215_v20  ;;  %v589_v56 = vmul.f32 %v7294_v39, %v577_v47 }
 0x14b   : > { %v6617_v54 = vpop.eup %6616  ;;  %v511_v55 = vsub.f32 1.5, %v510_v44 }
 0x14c   : > { %v521_v26 = vsub.f32 1.5, %v520_v51  ;;  %v558_v57 = vmul.f32 %v6617_v54, %v7279_v23  ;;  %v6619_v58 = vpop.eup %6618  ;;  %v494_v61 = vadd.f32 1e-05, %v486_v53  ;;  %v601_v62 = vadd.f32 %v7301_v48, %v589_v56  ;;  %v7362_v51 = vld [vmem:[%s10784_s4] ss:$0 sm:$0xff] }
 0x14d   : > { %v512_v59 = vmul.f32 %v6613_v24, %v511_v55  ;;  %v532_v63 = vmul.f32 %v7277_v21, %v531_v50  ;;  %v538_v2 = vmul.f32 %v6619_v58, %v7286_v29  ;;  %vm564_vm15 = vweird.f32 %v6617_v54 }
 0x14e   : > { %v522_v0 = vmul.f32 %v6615_v30, %v521_v26  ;;  %v559_v1 = vmul.f32 %v6617_v54, %v558_v57  ;;  %6620 = vrsqrt.f32 %v494_v61  ;;  %6281 = vmatmul.msk.f32.vlgmr.msra.gmra.mxu0 %vm401_vm0, %v601_v62  ;;  %vm544_vm2 = vweird.f32 %v6619_v58  ;;  %vm565_vm3 = vmor %vm563_vm14, %vm564_vm15 }
 0x14f   : > { %v516_v4 = vsel %vm515_vm12, %v6613_v24, %v512_v59  ;;  %v539_v6 = vmul.f32 %v6619_v58, %v538_v2  ;;  %v536_v13 = vsel %vm7319_vm13, %v7277_v21, %v532_v63  ;;  %vm545_vm4 = vmor %vm543_vm1, %vm544_vm2  ;;  %vm553_vm5 = vweird.f32 %v494_v61 }
 0x150   : > { %v560_v5 = vmul.f32 0.5, %v559_v1  ;;  %v578_v8 = vmul.f32 %v516_v4, %v7233_v38  ;;  %v526_v9 = vsel %vm7310_vm11, %v6615_v30, %v522_v0  ;;  %v580_v18 = vmul.f32 %v536_v13, %v7231_v37 }
 0x151   : > { %v579_v7 = vmul.f32 %v526_v9, %v7221_v27  ;;  %v540_v11 = vmul.f32 0.5, %v539_v6  ;;  %v7000_v13 = vmov 1983009808   ;;  %vm955_vm11 = vcmask 1047556  }
 0x152   : > { %v561_v10 = vsub.f32 1.5, %v560_v5  ;;  %v590_v12 = vmul.f32 %v7294_v39, %v578_v8  ;;  %v592_v29 = vmul.f32 %v7294_v39, %v580_v18  ;;  %vm3627_vm12 = vcmask 64512  }
 0x153   : > { %v591_v38 = vmul.f32 %v7294_v39, %v579_v7  ;;  %v541_v15 = vsub.f32 1.5, %v540_v11  ;;  %vm4228_vm13 = vcmask 130048   ;;  %vm6037_vm14 = vcmask 195584  }
 0x154   : > { %v562_v14 = vmul.f32 %v6617_v54, %v561_v10  ;;  %v602_v16 = vadd.f32 %v7301_v48, %v590_v12  ;;  %v6621_v17 = vpop.eup %6620  ;;  %v604_v35 = vadd.f32 %v7301_v48, %v592_v29 }
 0x155   : > { %v603_v27 = vadd.f32 %v7301_v48, %v591_v38  ;;  %v542_v19 = vmul.f32 %v6619_v58, %v541_v15  ;;  %v548_v22 = vmul.f32 %v6621_v17, %v494_v61  ;;  %vm554_vm6 = vweird.f32 %v6621_v17 }
 0x156   : > { %v566_v24 = vsel %vm565_vm3, %v6617_v54, %v562_v14  ;;  %6282 = vmatmul.msk.f32.gmra.mxu0 %vm401_vm0, %v602_v16  ;;  %vm555_vm7 = vmor %vm553_vm5, %vm554_vm6  ;;  %v960_v38 = vunpack.c.l.s4 %v7000_v13 }
 0x157   : > { %6283 = vmatmul.msk.f32.vlgmr.msra.gmra.mxu1 %vm401_vm0, %v603_v27  ;;  %v583_v21 = vmul.f32 %v566_v24, %v7248_v49  ;;  %v549_v23 = vmul.f32 %v6621_v17, %v548_v22  ;;  %v546_v25 = vsel %vm545_vm4, %v6619_v58, %v542_v19 }
 0x158   : > { %v581_v30 = vmul.f32 %v546_v25, %v7237_v40  ;;  %v7492_v22 = vunpack.c.0.s8 %v960_v38 }
 0x159   : > { %v595_v31 = vmul.f32 %v7294_v39, %v583_v21  ;;  %v550_v32 = vmul.f32 0.5, %v549_v23 }
 0x15a   : > { %v593_v37 = vmul.f32 %v7294_v39, %v581_v30 }
 0x15b   : > { %v607_v33 = vadd.f32 %v7301_v48, %v595_v31  ;;  %v551_v34 = vsub.f32 1.5, %v550_v32 }
 0x15c   : > { %v605_v49 = vadd.f32 %v7301_v48, %v593_v37 }
 0x15d   : > { %6287 = vmatmul.msk.f32.vlgmr.msra.gmra.mxu3 %vm401_vm0, %v607_v33  ;;  %v552_v36 = vmul.f32 %v6621_v17, %v551_v34 }
 0x15e   : > { %6285 = vmatmul.msk.f32.vlgmr.msra.gmra.mxu2 %vm401_vm0, %v605_v49 }
 0x15f   : > { %6284 = vmatmul.msk.f32.gmra.mxu1 %vm401_vm0, %v604_v35  ;;  %v556_v40 = vsel %vm555_vm7, %v6621_v17, %v552_v36 }
 0x160   : > { %v582_v41 = vmul.f32 %v556_v40, %v7255_v52 }
 0x162   : > { %v594_v42 = vmul.f32 %v7294_v39, %v582_v41 }
 0x164   : > { %v606_v43 = vadd.f32 %v7301_v48, %v594_v42 }
 0x166   : > { %6286 = vmatmul.msk.f32.gmra.mxu2 %vm401_vm0, %v606_v43  ;;  %v7001_v43 = vmov 1934713408  }
 0x1bc   : > { %v480_v44 = vpop.xlane.xlu0 %479 }
 0x1bd   : > { %v488_v45 = vmul.f32 %v480_v44, %v7215_v20  ;;  %v1008_v44 = vunpack.c.l.s4 %v7001_v43 }
 0x1bf   : > { %v496_v46 = vadd.f32 1e-05, %v488_v45 }
 0x1c1   : > { %6622 = vrsqrt.f32 %v496_v46  ;;  %vm573_vm9 = vweird.f32 %v496_v46 }
 0x1c7   : > { %v6623_v47 = vpop.eup %6622 }
 0x1c8   : > { %v568_v50 = vmul.f32 %v6623_v47, %v496_v46  ;;  %vm574_vm8 = vweird.f32 %v6623_v47 }
 0x1c9   : > { %vm575_vm10 = vmor %vm573_vm9, %vm574_vm8 }
 0x1ca   : > { %v569_v53 = vmul.f32 %v6623_v47, %v568_v50 }
 0x1cb   : > { %v658_v52 = vpop.f32.mrf.mxu0 }
 0x1cc   : > { %v570_v54 = vmul.f32 0.5, %v569_v53  ;;  %v7365_v55 = vadd.f32 %v7362_v51, %v658_v52 }
 0x1ce   : > { %v571_v56 = vsub.f32 1.5, %v570_v54  ;;  %786 = vrot.lane.b32.xlu1 %v7365_v55, %s6993_s26  ;;  %714 = vrot.lane.b32.xlu2 %v7365_v55, %s6994_s25  ;;  %v957_v15 = vrot.slane %v7365_v55, 4 }
 0x1cf   : > { %738 = vrot.lane.b32.xlu0 %v7365_v55, %s6995_s20 }
 0x1d0   : > { %v572_v20 = vmul.f32 %v6623_v47, %v571_v56 }
 0x1d2   : > { %v576_v26 = vsel %vm575_vm10, %v6623_v47, %v572_v20 }
 0x1d3   : > { %v584_v57 = vmul.f32 %v576_v26, %v7284_v28  ;;  %v661_v61 = vpop.f32.mrf.mxu0 }
 0x1d4   : > { %v664_v60 = vpop.f32.mrf.mxu1  ;;  %v7414_v62 = vadd.f32 %v7362_v51, %v661_v61 }
 0x1d5   : > { %v596_v58 = vmul.f32 %v7294_v39, %v584_v57  ;;  %v7384_v28 = vadd.f32 %v7362_v51, %v664_v60 }
 0x1d6   : > { %810 = vrot.lane.b32.xlu1 %v7365_v55, %s6996_s21  ;;  %762 = vrot.lane.b32.xlu2 %v7365_v55, %s6997_s23  ;;  %v7489_v18 = vpack.i.bf16 %v7365_v55, %v7414_v62  ;;  %v1125_v19 = vrot.slane %v7414_v62, 4 }
 0x1d7   : > { %690 = vrot.lane.b32.xlu0 %v7365_v55, %s6998_s19  ;;  %v608_v59 = vadd.f32 %v7301_v48, %v596_v58  ;;  %v1293_v16 = vrot.slane %v7384_v28, 4 }
 0x1d9   : > { %6288 = vmatmul.msk.f32.gmra.mxu3 %vm401_vm0, %v608_v59  ;;  %v7524_v59 = vunpack.c.0.s8 %v1008_v44 }
 0x1dc   : > { %v667_v63 = vpop.f32.mrf.mxu1 }
 0x1dd   : > { %v7429_v0 = vadd.f32 %v7362_v51, %v667_v63 }
 0x1de   : > { %790 = vrot.lane.b32.xlu1 %v7384_v28, %s6993_s26  ;;  %742 = vrot.lane.b32.xlu2 %v7384_v28, %s6995_s20 }
 0x1df   : > { %834 = vrot.lane.b32.xlu0 %v7365_v55, %s6999_s22  ;;  %v7497_v23 = vpack.i.bf16 %v7384_v28, %v7429_v0 }
 0x1e0   : > { %v676_v4 = vpop.f32.mrf.mxu3 }
 0x1e1   : > { %v670_v39 = vpop.f32.mrf.mxu2  ;;  %v7459_v5 = vadd.f32 %v7362_v51, %v676_v4 }
 0x1e2   : > { %v7399_v48 = vadd.f32 %v7362_v51, %v670_v39 }
 0x1e3   : > { %10823 = vst [vmem:[#allocation16_spill] sm:$0xff] %v7459_v5 }
 0x1e4   : > { %v1629_v41 = vrot.slane %v7399_v48, 4 }
 0x1e6   : > { %766 = vrot.lane.b32.xlu1 %v7384_v28, %s6997_s23  ;;  %718 = vrot.lane.b32.xlu2 %v7384_v28, %s6994_s25 }
 0x1e7   : > { %694 = vrot.lane.b32.xlu0 %v7384_v28, %s6998_s19 }
 0x1e9   : > { %v673_v1 = vpop.f32.mrf.mxu2 }
 0x1ea   : > { %v7450_v2 = vadd.f32 %v7362_v51, %v673_v1 }
 0x1ec   : > { %v7517_v52 = vpack.i.bf16 %v7399_v48, %v7450_v2 }
 0x1ee   : > { %814 = vrot.lane.b32.xlu2 %v7384_v28, %s6996_s21  ;;  %698 = vrot.lane.b32.xlu1 %v7399_v48, %s6998_s19 }
 0x1ef   : > { %838 = vrot.lane.b32.xlu0 %v7384_v28, %s6999_s22 }
 0x1f6   : > { %794 = vrot.lane.b32.xlu2 %v7399_v48, %s6993_s26  ;;  %842 = vrot.lane.b32.xlu1 %v7399_v48, %s6999_s22 }
 0x1f7   : > { %746 = vrot.lane.b32.xlu0 %v7399_v48, %s6995_s20 }
 0x1fe   : > { %770 = vrot.lane.b32.xlu2 %v7399_v48, %s6997_s23  ;;  %740 = vrot.lane.b32.xlu1 %v7414_v62, %s6995_s20 }
 0x1ff   : > { %722 = vrot.lane.b32.xlu0 %v7399_v48, %s6994_s25 }
 0x206   : > { %692 = vrot.lane.b32.xlu2 %v7414_v62, %s6998_s19  ;;  %836 = vrot.lane.b32.xlu1 %v7414_v62, %s6999_s22 }
 0x207   : > { %716 = vrot.lane.b32.xlu0 %v7414_v62, %s6994_s25 }
 0x20e   : > { %788 = vrot.lane.b32.xlu2 %v7414_v62, %s6993_s26  ;;  %812 = vrot.lane.b32.xlu1 %v7414_v62, %s6996_s21 }
 0x20f   : > { %696 = vrot.lane.b32.xlu0 %v7429_v0, %s6998_s19 }
 0x216   : > { %764 = vrot.lane.b32.xlu2 %v7414_v62, %s6997_s23  ;;  %792 = vrot.lane.b32.xlu1 %v7429_v0, %s6993_s26 }
 0x217   : > { %840 = vrot.lane.b32.xlu0 %v7429_v0, %s6999_s22 }
 0x21e   : > { %744 = vrot.lane.b32.xlu2 %v7429_v0, %s6995_s20  ;;  %768 = vrot.lane.b32.xlu1 %v7429_v0, %s6997_s23 }
 0x21f   : > { %816 = vrot.lane.b32.xlu0 %v7429_v0, %s6996_s21 }
 0x226   : > { %720 = vrot.lane.b32.xlu2 %v7429_v0, %s6994_s25  ;;  %700 = vrot.lane.b32.xlu1 %v7450_v2, %s6998_s19 }
 0x227   : > { %748 = vrot.lane.b32.xlu0 %v7450_v2, %s6995_s20 }
 0x228   : > { %v715_v3 = vpop.permute.xlu2 %714 }
 0x229   : > { %v954_v27 = vrot.slane %v715_v3, 4  ;;  %v958_v21 = vsel %vm955_vm11, %v715_v3, %v957_v15 }
 0x22a   : > { %v966_v35 = vperm.slane %v958_v21, %v7492_v22 }
 0x22b   : > { %v956_v32 = vsel %vm955_vm11, %v954_v27, %v7365_v55 }
 0x22c   : > { %v962_v47 = vperm.slane %v956_v32, %v7492_v22  ;;  %v1017_v57 = vrot.slane %v966_v35, 4 }
 0x22e   : > { %796 = vrot.lane.b32.xlu2 %v7450_v2, %s6993_s26  ;;  %702 = vrot.lane.b32.xlu1 %v7459_v5, %s6998_s19  ;;  %v1005_v39 = vrot.slane %v962_v47, 4 }
 0x22f   : > { %724 = vrot.lane.b32.xlu0 %v7450_v2, %s6994_s25 }
 0x230   : > { %v763_v6 = vpop.permute.xlu2 %762 }
 0x231   : > { %v981_v24 = vrot.slane %v763_v6, 4 }
 0x236   : > { %772 = vrot.lane.b32.xlu2 %v7450_v2, %s6997_s23  ;;  %846 = vrot.lane.b32.xlu1 %v7459_v5, %s6999_s22 }
 0x237   : > { %818 = vrot.lane.b32.xlu0 %v7399_v48, %s6996_s21 }
 0x238   : > { %v7473_v8 = vpop.permute.xlu2 %742 }
 0x23e   : > { %774 = vrot.lane.b32.xlu2 %v7459_v5, %s6997_s23  ;;  %844 = vrot.lane.b32.xlu1 %v7450_v2, %s6999_s22 }
 0x23f   : > { %798 = vrot.lane.b32.xlu0 %v7459_v5, %s6993_s26 }
 0x240   : > { %v787_v9 = vpop.permute.xlu1 %786  ;;  %v719_v7 = vpop.permute.xlu2 %718 }
 0x241   : > { %v739_v10 = vpop.permute.xlu0 %738  ;;  %v993_v49 = vrot.slane %v787_v9, 4  ;;  %v1291_v50 = vrot.slane %v719_v7, 4  ;;  %v1294_v63 = vsel %vm955_vm11, %v719_v7, %v1293_v16 }
 0x242   : > { %v967_v29 = vrot.slane %v739_v10, 4  ;;  %v7539_v16 = vperm.slane %v1294_v63, %v7492_v22 }
 0x243   : > { %v1292_v61 = vsel %vm955_vm11, %v1291_v50, %v7384_v28 }
 0x244   : > { %v1298_v7 = vperm.slane %v1292_v61, %v7492_v22 }
 0x246   : > { %820 = vrot.lane.b32.xlu1 %v7450_v2, %s6996_s21 }
 0x248   : > { %v811_v11 = vpop.permute.xlu1 %810  ;;  %v7483_v12 = vpop.permute.xlu2 %814 }
 0x249   : > { %v691_v14 = vpop.permute.xlu0 %690  ;;  %v982_v30 = vsel %vm955_vm11, %v811_v11, %v981_v24  ;;  %v979_v37 = vrot.slane %v811_v11, 4  ;;  %v1315_v3 = vrot.slane %v7483_v12, 4  ;;  %v1303_v24 = vrot.slane %v7473_v8, 4 }
 0x24a   : > { %v969_v17 = vrot.slane %v691_v14, 4  ;;  %v968_v36 = vsel %vm955_vm11, %v967_v29, %v691_v14  ;;  %v990_v42 = vperm.slane %v982_v30, %v7492_v22 }
 0x24b   : > { %v980_v54 = vsel %vm955_vm11, %v979_v37, %v763_v6  ;;  %v974_v55 = vperm.slane %v968_v36, %v7492_v22 }
 0x24c   : > { %v970_v31 = vsel %vm955_vm11, %v739_v10, %v969_v17  ;;  %v1041_v58 = vrot.slane %v990_v42, 4  ;;  %v986_v1 = vperm.slane %v980_v54, %v7492_v22 }
 0x24d   : > { %v978_v45 = vperm.slane %v970_v31, %v7492_v22  ;;  %v1003_v4 = vrot.slane %v974_v55, 4  ;;  %v1006_v13 = vsel %vm955_vm11, %v974_v55, %v1005_v39 }
 0x24e   : > { %v1029_v21 = vrot.slane %v986_v1, 4  ;;  %v7547_v32 = vperm.slane %v1006_v13, %v7524_v59 }
 0x24f   : > { %v1015_v60 = vrot.slane %v978_v45, 4  ;;  %v1018_v38 = vsel %vm955_vm11, %v978_v45, %v1017_v57  ;;  %v1004_v31 = vsel %vm955_vm11, %v1003_v4, %v962_v47  ;;  %v1341_v45 = vrot.slane %v1298_v7, 4 }
 0x250   : > { %v7504_v33 = vpop.permute.xlu1 %790  ;;  %v7506_v34 = vpop.permute.xlu2 %794  ;;  %v1026_v37 = vperm.slane %v1018_v38, %v7524_v59 }
 0x251   : > { %v835_v40 = vpop.permute.xlu0 %834  ;;  %v1016_v17 = vsel %vm955_vm11, %v1015_v60, %v966_v35  ;;  %v1057_v60 = vrot.slane %v7547_v32, 4 }
 0x252   : > { %v991_v46 = vrot.slane %v835_v40, 4  ;;  %v994_v53 = vsel %vm955_vm11, %v835_v40, %v993_v49  ;;  %v1022_v35 = vperm.slane %v1016_v17, %v7524_v59  ;;  %v1065_v61 = vrot.slane %v1026_v37, 4 }
 0x253   : > { %v1002_v20 = vperm.slane %v994_v53, %v7492_v22 }
 0x254   : > { %v992_v56 = vsel %vm955_vm11, %v991_v46, %v787_v9  ;;  %v1353_v46 = vrot.slane %v7539_v16, 4  ;;  %v1061_v39 = vrot.slane %v1022_v35, 4 }
 0x255   : > { %v998_v26 = vperm.slane %v992_v56, %v7492_v22  ;;  %v1039_v6 = vrot.slane %v1002_v20, 4  ;;  %v1042_v9 = vsel %vm955_vm11, %v1002_v20, %v1041_v58  ;;  %v1010_v56 = vperm.slane %v1004_v31, %v7524_v59 }
 0x256   : > { %v1050_v29 = vperm.slane %v1042_v9, %v7524_v59 }
 0x257   : > { %v1027_v14 = vrot.slane %v998_v26, 4  ;;  %v1040_v49 = vsel %vm955_vm11, %v1039_v6, %v990_v42  ;;  %v1030_v47 = vsel %vm955_vm11, %v998_v26, %v1029_v21  ;;  %v1053_v38 = vrot.slane %v1010_v56, 4 }
 0x258   : > { %v767_v10 = vpop.permute.xlu1 %766  ;;  %v7532_v11 = vpop.permute.xlu2 %770  ;;  %v1046_v53 = vperm.slane %v1040_v49, %v7524_v59  ;;  %v1063_v54 = vrot.slane %v1050_v29, 4 }
 0x259   : > { %v695_v15 = vpop.permute.xlu0 %694  ;;  %v1316_v27 = vsel %vm955_vm11, %v1315_v3, %v767_v10  ;;  %v1317_v30 = vrot.slane %v767_v10, 4  ;;  %v1028_v40 = vsel %vm955_vm11, %v1027_v14, %v986_v1  ;;  %v1038_v1 = vperm.slane %v1030_v47, %v7524_v59 }
 0x25a   : > { %v1304_v44 = vsel %vm955_vm11, %v1303_v24, %v695_v15  ;;  %v1305_v50 = vrot.slane %v695_v15, 4  ;;  %v1034_v20 = vperm.slane %v1028_v40, %v7524_v59  ;;  %v1059_v6 = vrot.slane %v1046_v53, 4 }
 0x25b   : > { %v1318_v43 = vsel %vm955_vm11, %v7483_v12, %v1317_v30  ;;  %v1310_v42 = vperm.slane %v1304_v44, %v7492_v22  ;;  %v1329_v12 = vrot.slane %v7504_v33, 4  ;;  %v7584_v9 = vsel %vm955_vm11, %v1063_v54, %v1026_v37 }
 0x25c   : > { %v679_v36 = vpop.f32.mrf.mxu3  ;;  %v1306_v57 = vsel %vm955_vm11, %v7473_v8, %v1305_v50  ;;  %v7587_v10 = vsel %vm955_vm11, %v1050_v29, %v1065_v61  ;;  %v1051_v14 = vrot.slane %v1034_v20, 4  ;;  %v7590_v15 = vsel %vm955_vm11, %v1046_v53, %v1061_v39 }
 0x25d   : > { %v7561_v55 = vadd.f32 %v7362_v51, %v679_v36  ;;  %v1665_v51 = vrot.slane %v7506_v34, 4  ;;  %v1314_v8 = vperm.slane %v1306_v57, %v7492_v22  ;;  %v1339_v13 = vrot.slane %v1310_v42, 4 }
 0x25e   : > { %v1322_v24 = vperm.slane %v1316_v27, %v7492_v22  ;;  %v1326_v21 = vperm.slane %v1318_v43, %v7492_v22  ;;  %v1342_v30 = vsel %vm955_vm11, %v1310_v42, %v1341_v45  ;;  %v1055_v37 = vrot.slane %v1038_v1, 4 }
 0x25f   : > { %10824 = vst [vmem:[#allocation17_spill] sm:$0xff] %v7561_v55  ;;  %776 = vrot.lane.b32.xlu0 %v7561_v55, %s6997_s23  ;;  %704 = vrot.lane.b32.xlu1 %v7561_v55, %s6998_s19  ;;  %v1351_v36 = vrot.slane %v1314_v8, 4  ;;  %v7601_v40 = vsel %vm955_vm11, %v1059_v6, %v1022_v35  ;;  %v2337_v44 = vrot.slane %v7590_v15, 4  ;;  %v1340_v27 = vsel %vm955_vm11, %v1339_v13, %v1298_v7  ;;  %s10720_s23 = scalar_lea.vmem [#allocation11], %s6275_s1  ;;  %s6402_s1 = sshll.u32 %s7076_s9, 6 }
 0x260   : > { %v7568_v58 = vpop.permute.xlu2 %692  ;;  %v7570_v26 = vpop.permute.xlu1 %698  ;;  %800 = vrot.lane.b32.xlu2 %v7561_v55, %s6993_s26  ;;  %v7607_v45 = vperm.slane %v1342_v30, %v7524_v59  ;;  %v1365_v42 = vrot.slane %v1322_v24, 4  ;;  %v1377_v35 = vrot.slane %v1326_v21, 4  ;;  %v7621_v57 = vsel %vm955_vm11, %v1034_v20, %v1053_v38  ;;  %s7007_s26 = smov 24   ;;  %s6136_s9 = scalar_lea.sflag [#allocation4], %s7181_s18 }
 0x261   : > { %v839_v63 = vpop.permute.xlu0 %838  ;;  %v1352_v39 = vsel %vm955_vm11, %v1351_v36, %v7539_v16  ;;  %v1137_v61 = vrot.slane %v7568_v58, 4  ;;  %v1641_v16 = vrot.slane %v7570_v26, 4  ;;  %v7642_v13 = vpack.i.bf16 %v7459_v5, %v7561_v55 }
 0x262   : > { %v1327_v3 = vrot.slane %v839_v63, 4  ;;  %v1330_v4 = vsel %vm955_vm11, %v839_v63, %v1329_v12  ;;  %10825 = vst [vmem:[#allocation18_spill] sm:$0xff] %v7607_v45  ;;  %v7618_v12 = vsel %vm955_vm11, %v1051_v14, %v1010_v56  ;;  %v7633_v63 = vsel %vm955_vm11, %v1055_v37, %v7547_v32 }
 0x263   : > { %v1338_v17 = vperm.slane %v1330_v4, %v7492_v22  ;;  %v1358_v38 = vperm.slane %v1352_v39, %v7524_v59  ;;  %v7656_v36 = vsel %vm955_vm11, %v1038_v1, %v1057_v60 }
 0x264   : > { %v1328_v31 = vsel %vm955_vm11, %v1327_v3, %v7504_v33  ;;  %v1354_v33 = vsel %vm955_vm11, %v1314_v8, %v1353_v46  ;;  %v7624_v46 = vperm.slane %v1340_v27, %v7524_v59 }
 0x265   : > { %v1375_v47 = vrot.slane %v1338_v17, 4  ;;  %v1334_v50 = vperm.slane %v1328_v31, %v7492_v22  ;;  %v1362_v56 = vperm.slane %v1354_v33, %v7524_v59  ;;  %v1378_v8 = vsel %vm955_vm11, %v1338_v17, %v1377_v35 }
 0x266   : > { %v1386_v31 = vperm.slane %v1378_v8, %v7524_v59  ;;  %v1389_v27 = vrot.slane %v7624_v46, 4  ;;  %v1397_v1 = vrot.slane %v1358_v38, 4 }
 0x267   : > { %728 = vrot.lane.b32.xlu0 %v7561_v55, %s6994_s25  ;;  %752 = vrot.lane.b32.xlu1 %v7561_v55, %s6995_s20  ;;  %v1376_v20 = vsel %vm955_vm11, %v1375_v47, %v1326_v21  ;;  %v1363_v6 = vrot.slane %v1334_v50, 4  ;;  %v1366_v14 = vsel %vm955_vm11, %v1334_v50, %v1365_v42  ;;  %v1401_v47 = vrot.slane %v1362_v56, 4 }
 0x268   : > { %v7611_v53 = vpop.permute.xlu2 %788  ;;  %v843_v54 = vpop.permute.xlu1 %842  ;;  %848 = vrot.lane.b32.xlu2 %v7561_v55, %s6999_s22  ;;  %v1382_v17 = vperm.slane %v1376_v20, %v7524_v59  ;;  %v7663_v50 = vperm.slane %v1366_v14, %v7524_v59  ;;  %v1399_v20 = vrot.slane %v1386_v31, 4 }
 0x269   : > { %v747_v7 = vpop.permute.xlu0 %746  ;;  %v1663_v3 = vrot.slane %v843_v54, 4  ;;  %v7649_v21 = vsel %vm955_vm11, %v843_v54, %v1665_v51  ;;  %v1364_v51 = vsel %vm955_vm11, %v1363_v6, %v1322_v24  ;;  %v1402_v6 = vsel %vm955_vm11, %v1386_v31, %v1401_v47 }
 0x26a   : > { %v1639_v37 = vrot.slane %v747_v7, 4  ;;  %v1642_v33 = vsel %vm955_vm11, %v747_v7, %v1641_v16  ;;  %10826 = vst [vmem:[#allocation19_spill] sm:$0xff] %v7663_v50  ;;  %v2301_v7 = vrot.slane %v7618_v12, 4  ;;  %v7683_v16 = vperm.slane %v1364_v51, %v7524_v59 }
 0x26b   : > { %v1664_v30 = vsel %vm955_vm11, %v1663_v3, %v7506_v34  ;;  %v1650_v32 = vperm.slane %v1642_v33, %v7492_v22  ;;  %v7697_v31 = vsel %vm955_vm11, %v1399_v20, %v1362_v56  ;;  %v2667_v47 = vrot.slane %v1402_v6, 4 }
 0x26c   : > { %v1640_v54 = vsel %vm955_vm11, %v1639_v37, %v7570_v26  ;;  %v1395_v26 = vrot.slane %v1382_v17, 4  ;;  %10827 = vst [vmem:[#allocation20_spill] sm:$0xff] %v7683_v16  ;;  %v2313_v20 = vrot.slane %v7621_v57, 4 }
 0x26d   : > { %v1646_v35 = vperm.slane %v1640_v54, %v7492_v22  ;;  %v1687_v14 = vrot.slane %v1650_v32, 4  ;;  %v1398_v54 = vsel %vm955_vm11, %v1382_v17, %v1397_v1  ;;  %10829 = vst [vmem:[#allocation22_spill] sm:$0xff] %v7697_v31 }
 0x26e   : > { %v2669_v17 = vrot.slane %v1398_v54, 4 }
 0x26f   : > { %750 = vrot.lane.b32.xlu0 %v7459_v5, %s6995_s20  ;;  %726 = vrot.lane.b32.xlu1 %v7459_v5, %s6994_s25  ;;  %v1675_v43 = vrot.slane %v1646_v35, 4  ;;  %s7008_s25 = smov 8  }
 0x270   : > { %v7668_v42 = vpop.permute.xlu2 %764  ;;  %v741_v60 = vpop.permute.xlu1 %740  ;;  %824 = vrot.lane.b32.xlu2 %v7561_v55, %s6996_s21 }
 0x271   : > { %v723_v24 = vpop.permute.xlu0 %722  ;;  %v1135_v4 = vrot.slane %v741_v60, 4 }
 0x272   : > { %v1627_v8 = vrot.slane %v723_v24, 4  ;;  %v1630_v3 = vsel %vm955_vm11, %v723_v24, %v1629_v41  ;;  %v7694_v24 = vsel %vm955_vm11, %v1395_v26, %v1358_v38  ;;  %v1138_v38 = vsel %vm955_vm11, %v741_v60, %v1137_v61 }
 0x273   : > { %v1638_v37 = vperm.slane %v1630_v3, %v7492_v22  ;;  %10828 = vst [vmem:[#allocation21_spill] sm:$0xff] %v7694_v24  ;;  %v1161_v3 = vrot.slane %v7611_v53, 4  ;;  %v7728_v60 = vsel %vm955_vm11, %v2667_v47, %v1398_v54  ;;  %v2314_v47 = vsel %vm955_vm11, %v7656_v36, %v2313_v20 }
 0x274   : > { %v1628_v28 = vsel %vm955_vm11, %v1627_v8, %v7399_v48  ;;  %v7704_v8 = vperm.slane %v1664_v30, %v7492_v22  ;;  %10832 = vst [vmem:[#allocation25_spill] sm:$0xff] %v7728_v60 }
 0x275   : > { %v1634_v49 = vperm.slane %v1628_v28, %v7492_v22  ;;  %v1688_v41 = vsel %vm955_vm11, %v1687_v14, %v1638_v37  ;;  %v1689_v51 = vrot.slane %v1638_v37, 4  ;;  %v1146_v14 = vperm.slane %v1138_v38, %v7492_v22 }
 0x276   : > { %v7771_v28 = vperm.slane %v2314_v47, %v7492_v22 }
 0x277   : > { %v1676_v1 = vsel %vm955_vm11, %v1675_v43, %v1634_v49  ;;  %v1677_v33 = vrot.slane %v1634_v49, 4  ;;  %v1690_v48 = vsel %vm955_vm11, %v1650_v32, %v1689_v51  ;;  %v7714_v43 = vsel %vm955_vm11, %v7683_v16, %v1389_v27  ;;  %6523 = vrot.lane.b32.xlu0 %v7489_v18, %s7002_s3  ;;  %6533 = vrot.lane.b32.xlu1 %v7489_v18, %s7003_s11 }
 0x278   : > { %v7709_v56 = vpop.permute.xlu2 %744  ;;  %v837_v26 = vpop.permute.xlu1 %836  ;;  %10830 = vst [vmem:[#allocation23_spill] sm:$0xff] %v7714_v43  ;;  %v1136_v32 = vsel %vm955_vm11, %v1135_v4, %v7568_v58  ;;  %v7732_v58 = vperm.slane %v7649_v21, %v7492_v22  ;;  %822 = vrot.lane.b32.xlu2 %v7459_v5, %s6996_s21  ;;  %v2359_v25 = vrot.slane %v7771_v28, 4  ;;  %s6930_s21 = scalar_lea.hbm %s10788_s8, 128 }
 0x279   : > { %v7720_v30 = vsel %vm955_vm11, %v1646_v35, %v1677_v33  ;;  %v717_v61 = vpop.permute.xlu0 %716  ;;  %v1159_v4 = vrot.slane %v837_v26, 4  ;;  %v7737_v35 = vsel %vm955_vm11, %v1402_v6, %v2669_v17  ;;  %v2302_v33 = vsel %vm955_vm11, %v7633_v63, %v2301_v7 }
 0x27a   : > { %10831 = vst [vmem:[#allocation24_spill] sm:$0xff] %v7720_v30  ;;  %v1123_v37 = vrot.slane %v717_v61, 4  ;;  %v1142_v51 = vperm.slane %v1136_v32, %v7492_v22  ;;  %v1126_v21 = vsel %vm955_vm11, %v717_v61, %v1125_v19  ;;  %v7750_v6 = vperm.slane %v1688_v41, %v7524_v59 }
 0x27b   : > { %10833 = vst [vmem:[#allocation26_spill] sm:$0xff] %v7737_v35  ;;  %v1162_v17 = vsel %vm955_vm11, %v837_v26, %v1161_v3  ;;  %v2338_v7 = vsel %vm955_vm11, %v7587_v10, %v2337_v44  ;;  %v1149_v19 = vrot.slane %v7668_v42, 4  ;;  %v1160_v20 = vsel %vm955_vm11, %v1159_v4, %v7611_v53 }
 0x27c   : > { %v1124_v38 = vsel %vm955_vm11, %v1123_v37, %v7414_v62  ;;  %v2325_v41 = vrot.slane %v7601_v40, 4  ;;  %v1183_v61 = vrot.slane %v1146_v14, 4  ;;  %v1134_v26 = vperm.slane %v1126_v21, %v7492_v22 }
 0x27d   : > { %v1130_v3 = vperm.slane %v1124_v38, %v7492_v22  ;;  %v7767_v62 = vperm.slane %v2302_v33, %v7492_v22  ;;  %v1171_v37 = vrot.slane %v1142_v51, 4  ;;  %v1170_v44 = vperm.slane %v1162_v17, %v7492_v22 }
 0x27e   : > { %v7774_v53 = vperm.slane %v2338_v7, %v7492_v22  ;;  %v7777_v4 = vperm.slane %v1676_v1, %v7524_v59  ;;  %v7780_v38 = vperm.slane %v1690_v48, %v7524_v59  ;;  %v1166_v21 = vperm.slane %v1160_v20, %v7492_v22 }
 0x27f   : > { %6538 = vrot.lane.b32.xlu0 %v7489_v18, %s7004_s16  ;;  %6543 = vrot.lane.b32.xlu1 %v7497_v23, %s7002_s3  ;;  %v1471_v17 = vrot.slane %v7709_v56, 4  ;;  %v2326_v7 = vsel %vm955_vm11, %v7584_v9, %v2325_v41  ;;  %v1173_v20 = vrot.slane %v1130_v3, 4  ;;  %v1184_v33 = vsel %vm955_vm11, %v1183_v61, %v1134_v26 }
 0x280   : > { %v721_v49 = vpop.permute.xlu2 %720  ;;  %v813_v27 = vpop.permute.xlu1 %812  ;;  %6528 = vrot.lane.b32.xlu2 %v7489_v18, %s7005_s13  ;;  %v1185_v32 = vrot.slane %v1134_v26, 4  ;;  %v1207_v29 = vrot.slane %v1170_v44, 4  ;;  %v1195_v18 = vrot.slane %v1166_v21, 4  ;;  %v1172_v41 = vsel %vm955_vm11, %v1171_v37, %v1130_v3 }
 0x281   : > { %v697_v47 = vpop.permute.xlu0 %696  ;;  %v1147_v1 = vrot.slane %v813_v27, 4  ;;  %v1150_v48 = vsel %vm955_vm11, %v813_v27, %v1149_v19  ;;  %v1459_v54 = vrot.slane %v721_v49, 4  ;;  %v7801_v27 = vperm.slane %v2326_v7, %v7492_v22 }
 0x282   : > { %v1158_v34 = vperm.slane %v1150_v48, %v7492_v22  ;;  %v2383_v19 = vrot.slane %v7774_v53, 4  ;;  %v1190_v61 = vperm.slane %v1184_v33, %v7524_v59  ;;  %v10834_v7 = vrot.slane %v7429_v0, 4 }
 0x283   : > { %v1148_v39 = vsel %vm955_vm11, %v1147_v1, %v7668_v42  ;;  %v1174_v42 = vsel %vm955_vm11, %v1142_v51, %v1173_v20  ;;  %v1186_v1 = vsel %vm955_vm11, %v1146_v14, %v1185_v32  ;;  %v1460_v48 = vsel %vm955_vm11, %v1459_v54, %v7429_v0 }
 0x284   : > { %v1154_v55 = vperm.slane %v1148_v39, %v7492_v22  ;;  %v1208_v26 = vsel %vm955_vm11, %v1207_v29, %v1158_v34  ;;  %v1209_v5 = vrot.slane %v1158_v34, 4  ;;  %v1462_v30 = vsel %vm955_vm11, %v721_v49, %v10834_v7 }
 0x285   : > { %v1473_v3 = vrot.slane %v697_v47, 4  ;;  %v2360_v29 = vsel %vm955_vm11, %v2359_v25, %v7767_v62  ;;  %v1178_v51 = vperm.slane %v1172_v41, %v7524_v59  ;;  %v1214_v54 = vperm.slane %v1208_v26, %v7524_v59 }
 0x286   : > { %v1197_v39 = vrot.slane %v1154_v55, 4  ;;  %v1196_v60 = vsel %vm955_vm11, %v1195_v18, %v1154_v55  ;;  %v1210_v14 = vsel %vm955_vm11, %v1170_v44, %v1209_v5  ;;  %v1182_v55 = vperm.slane %v1174_v42, %v7524_v59 }
 0x287   : > { %6548 = vrot.lane.b32.xlu0 %v7497_v23, %s7005_s13  ;;  %6573 = vrot.lane.b32.xlu1 %v7517_v52, %s7003_s11  ;;  %v1194_v49 = vperm.slane %v1186_v1, %v7524_v59  ;;  %v1466_v25 = vperm.slane %v1460_v48, %v7492_v22  ;;  %v1472_v32 = vsel %vm955_vm11, %v1471_v17, %v697_v47  ;;  %v1221_v17 = vrot.slane %v1178_v51, 4 }
 0x288   : > { %v793_v37 = vpop.permute.xlu1 %792  ;;  %6553 = vrot.lane.b32.xlu2 %v7497_v23, %s7003_s11  ;;  %v1470_v44 = vperm.slane %v1462_v30, %v7492_v22  ;;  %v1198_v33 = vsel %vm955_vm11, %v1166_v21, %v1197_v39  ;;  %v1202_v20 = vperm.slane %v1196_v60, %v7524_v59  ;;  %v1218_v18 = vperm.slane %v1210_v14, %v7524_v59  ;;  %v7854_v5 = vpop.permute.xlu2 %796 }
 0x289   : > { %v841_v0 = vpop.permute.xlu0 %840  ;;  %v1474_v41 = vsel %vm955_vm11, %v7709_v56, %v1473_v3  ;;  %v7839_v26 = vperm.slane %v2360_v29, %v7524_v59  ;;  %v7843_v47 = vsel %vm955_vm11, %v2383_v19, %v7801_v27  ;;  %v1229_v42 = vrot.slane %v1190_v61, 4 }
 0x28a   : > { %v1227_v1 = vrot.slane %v1214_v54, 4  ;;  %v1478_v30 = vperm.slane %v1472_v32, %v7492_v22  ;;  %v1225_v21 = vrot.slane %v1182_v55, 4  ;;  %v1233_v48 = vrot.slane %v1194_v49, 4 }
 0x28b   : > { %v1509_v60 = vrot.slane %v1466_v25, 4  ;;  %v1206_v39 = vperm.slane %v1198_v33, %v7524_v59  ;;  %v1521_v7 = vrot.slane %v1470_v44, 4  ;;  %v1219_v14 = vrot.slane %v1202_v20, 4 }
 0x28c   : > { %v7848_v56 = vsel %vm955_vm11, %v1202_v20, %v1221_v17  ;;  %v1482_v3 = vperm.slane %v1474_v41, %v7492_v22  ;;  %v7852_v19 = vsel %vm955_vm11, %v1214_v54, %v1229_v42  ;;  %v1231_v29 = vrot.slane %v1218_v18, 4 }
 0x28d   : > { %v1497_v34 = vrot.slane %v793_v37, 4  ;;  %v1495_v32 = vrot.slane %v841_v0, 4  ;;  %v7857_v31 = vsel %vm955_vm11, %v1227_v1, %v1190_v61  ;;  %v1234_v33 = vsel %vm955_vm11, %v1218_v18, %v1233_v48 }
 0x28e   : > { %v1507_v24 = vrot.slane %v1478_v30, 4  ;;  %v1223_v41 = vrot.slane %v1206_v39, 4  ;;  %v2425_v17 = vrot.slane %v7848_v56, 4  ;;  %v1519_v1 = vrot.slane %v1482_v3, 4 }
 0x28f   : > { %6558 = vrot.lane.b32.xlu0 %v7497_v23, %s7004_s16  ;;  %6578 = vrot.lane.b32.xlu1 %v7517_v52, %s7004_s16  ;;  %v1496_v42 = vsel %vm955_vm11, %v1495_v32, %v793_v37  ;;  %v1498_v18 = vsel %vm955_vm11, %v841_v0, %v1497_v34  ;;  %v7871_v23 = vsel %vm955_vm11, %v1219_v14, %v1178_v51 }
 0x290   : > { %v769_v35 = vpop.permute.xlu1 %768  ;;  %6568 = vrot.lane.b32.xlu2 %v7517_v52, %s7005_s13  ;;  %v7874_v43 = vsel %vm955_vm11, %v1231_v29, %v1194_v49  ;;  %v1510_v50 = vsel %vm955_vm11, %v1478_v30, %v1509_v60  ;;  %v1502_v45 = vperm.slane %v1496_v42, %v7492_v22  ;;  %v1508_v32 = vsel %vm955_vm11, %v1507_v24, %v1466_v25 }
 0x291   : > { %v1485_v54 = vrot.slane %v769_v35, 4  ;;  %v817_v20 = vpop.permute.xlu0 %816  ;;  %v1522_v16 = vsel %vm955_vm11, %v1482_v3, %v1521_v7  ;;  %v7883_v0 = vsel %vm955_vm11, %v1206_v39, %v1225_v21  ;;  %v1506_v51 = vperm.slane %v1498_v18, %v7492_v22 }
 0x292   : > { %v1483_v61 = vrot.slane %v817_v20, 4  ;;  %v7888_v14 = vsel %vm955_vm11, %v1223_v41, %v1182_v55  ;;  %v2413_v30 = vrot.slane %v7871_v23, 4  ;;  %v2447_v60 = vrot.slane %v1234_v33, 4  ;;  %v7913_v41 = vpop.permute.xlu2 %772 }
 0x293   : > { %v1486_v48 = vsel %vm955_vm11, %v817_v20, %v1485_v54  ;;  %v2449_v24 = vrot.slane %v7852_v19, 4  ;;  %v1520_v25 = vsel %vm955_vm11, %v1519_v1, %v1470_v44  ;;  %v7895_v7 = vperm.slane %v1508_v32, %v7524_v59 }
 0x294   : > { %v1484_v37 = vsel %vm955_vm11, %v1483_v61, %v769_v35  ;;  %v1494_v34 = vperm.slane %v1486_v48, %v7492_v22  ;;  %v2437_v35 = vrot.slane %v7857_v31, 4  ;;  %v7898_v21 = vperm.slane %v1510_v50, %v7524_v59 }
 0x295   : > { %v1490_v49 = vperm.slane %v1484_v37, %v7492_v22  ;;  %v1531_v39 = vrot.slane %v1502_v45, 4  ;;  %v2426_v55 = vsel %vm955_vm11, %v7883_v0, %v2425_v17  ;;  %v7904_v29 = vperm.slane %v1522_v16, %v7524_v59 }
 0x296   : > { %v1545_v54 = vrot.slane %v1494_v34, 4  ;;  %v2414_v20 = vsel %vm955_vm11, %v7888_v14, %v2413_v30  ;;  %v7911_v44 = vperm.slane %v1520_v25, %v7524_v59  ;;  %v1543_v50 = vrot.slane %v1506_v51, 4 }
 0x297   : > { %6563 = vrot.lane.b32.xlu0 %v7517_v52, %s7002_s3  ;;  %v1532_v17 = vsel %vm955_vm11, %v1531_v39, %v1490_v49  ;;  %v1533_v42 = vrot.slane %v1490_v49, 4  ;;  %v7920_v16 = vsel %vm955_vm11, %v2447_v60, %v7852_v19  ;;  %v2434_v52 = vperm.slane %v2426_v55, %v7492_v22 }
 0x298   : > { %6588 = vrot.lane.b32.xlu2 %v7642_v13, %s7005_s13  ;;  %v2438_v1 = vsel %vm955_vm11, %v7874_v43, %v2437_v35  ;;  %v1557_v18 = vrot.slane %v7895_v7, 4  ;;  %v1544_v37 = vsel %vm955_vm11, %v1543_v50, %v1494_v34  ;;  %v2422_v32 = vperm.slane %v2414_v20, %v7492_v22 }
 0x299   : > { %v1569_v49 = vrot.slane %v7904_v29, 4  ;;  %v7933_v30 = vperm.slane %v1532_v17, %v7524_v59  ;;  %v1546_v60 = vsel %vm955_vm11, %v1506_v51, %v1545_v54  ;;  %v1565_v25 = vrot.slane %v7911_v44, 4 }
 0x29a   : > { %v1534_v35 = vsel %vm955_vm11, %v1502_v45, %v1533_v42  ;;  %v2446_v39 = vperm.slane %v2438_v1, %v7492_v22  ;;  %v2450_v55 = vsel %vm955_vm11, %v1234_v33, %v2449_v24  ;;  %v7941_v34 = vperm.slane %v1544_v37, %v7524_v59 }
 0x29b   : > { %v2411_v20 = vrot.slane %v7888_v14, 4  ;;  %v2458_v50 = vperm.slane %v2450_v55, %v7492_v22  ;;  %v2471_v19 = vrot.slane %v2434_v52, 4  ;;  %v7946_v17 = vperm.slane %v1546_v60, %v7524_v59 }
 0x29c   : > { %v2473_v54 = vrot.slane %v2422_v32, 4  ;;  %v2497_v61 = vrot.slane %v2446_v39, 4  ;;  %v7950_v45 = vperm.slane %v1534_v35, %v7524_v59  ;;  %v1555_v33 = vrot.slane %v7933_v30, 4 }
 0x29d   : > { %v2472_v24 = vsel %vm955_vm11, %v2471_v19, %v2422_v32  ;;  %v2495_v42 = vrot.slane %v2458_v50, 4  ;;  %v7956_v1 = vsel %vm955_vm11, %v7933_v30, %v1557_v18  ;;  %v1563_v3 = vrot.slane %v7941_v34, 4 }
 0x29e   : > { %v2478_v37 = vperm.slane %v2472_v24, %v7524_v59  ;;  %v2474_v60 = vsel %vm955_vm11, %v2434_v52, %v2473_v54  ;;  %v2498_v55 = vsel %vm955_vm11, %v2458_v50, %v2497_v61  ;;  %v7967_v32 = vsel %vm955_vm11, %v7941_v34, %v1565_v25 }
 0x29f   : > { %v2496_v35 = vsel %vm955_vm11, %v2495_v42, %v2446_v39  ;;  %v2482_v48 = vperm.slane %v2474_v60, %v7524_v59  ;;  %v2506_v51 = vperm.slane %v2498_v55, %v7524_v59  ;;  %v7973_v61 = vsel %vm955_vm11, %v7946_v17, %v1569_v49  ;;  %v749_v55 = vpop.permute.xlu0 %748  ;;  %6583 = vrot.lane.b32.xlu0 %v7642_v13, %s7002_s3  ;;  %s6148_s3 = scalar_lea.hbm %s10788_s8, %s6402_s1 }
 0x2a0   : > { %v2502_v19 = vperm.slane %v2496_v35, %v7524_v59  ;;  %v2517_v30 = vrot.slane %v2478_v37, 4  ;;  %v2390_v39 = vperm.slane %v7843_v47, %v7524_v59  ;;  %v2405_v25 = vrot.slane %v7839_v26, 4 }
 0x2a1   : > { %v2519_v52 = vrot.slane %v2506_v51, 4  ;;  %v2521_v50 = vrot.slane %v2482_v48, 4  ;;  %v2757_v42 = vrot.slane %v7956_v1, 4 }
 0x2a2   : > { %v2515_v54 = vrot.slane %v2502_v19, 4  ;;  %v2518_v24 = vsel %vm955_vm11, %v2502_v19, %v2517_v30  ;;  %v2403_v49 = vrot.slane %v2390_v39, 4  ;;  %v2406_v47 = vsel %vm955_vm11, %v2390_v39, %v2405_v25 }
 0x2a3   : > { %6293 = vmatpush.xpose.msk.msrb.mxu2 %vm3627_vm12, %v2518_v24  ;;  %v2520_v60 = vsel %vm955_vm11, %v2519_v52, %v2482_v48  ;;  %v2522_v35 = vsel %vm955_vm11, %v2506_v51, %v2521_v50  ;;  %v2361_v19 = vrot.slane %v7767_v62, 4  ;;  %v2385_v30 = vrot.slane %v7801_v27, 4  ;;  %v701_v50 = vpop.permute.xlu1 %700 }
 0x2a4   : > { %v2516_v18 = vsel %vm955_vm11, %v2515_v54, %v2478_v37  ;;  %6297 = vmatpush.xpose.msk.msrb.mxu3 %vm3627_vm12, %v2520_v60  ;;  %v2404_v24 = vsel %vm955_vm11, %v2403_v49, %v7839_v26  ;;  %v10835_v48 = vrot.slane %v7633_v63, 4  ;;  %v10836_v37 = vrot.slane %v7656_v36, 4 }
 0x2a5   : > { %6289 = vmatpush.xpose.msk.msrb.mxu1 %vm3627_vm12, %v2516_v18  ;;  %v10837_v62 = vrot.slane %v7584_v9, 4  ;;  %v2362_v18 = vsel %vm955_vm11, %v7771_v28, %v2361_v19  ;;  %v2386_v26 = vsel %vm955_vm11, %v7774_v53, %v2385_v30  ;;  %v8020_v25 = vsel %vm955_vm11, %v1555_v33, %v7895_v7 }
 0x2a6   : > { %v2300_v51 = vsel %vm955_vm11, %v10835_v48, %v7618_v12  ;;  %v2312_v52 = vsel %vm955_vm11, %v10836_v37, %v7621_v57  ;;  %v2370_v57 = vperm.slane %v2362_v18, %v7524_v59  ;;  %v2394_v36 = vperm.slane %v2386_v26, %v7524_v59 }
 0x2a7   : > { %v2324_v27 = vsel %vm955_vm11, %v10837_v62, %v7601_v40  ;;  %v2306_v63 = vperm.slane %v2300_v51, %v7492_v22  ;;  %v2318_v12 = vperm.slane %v2312_v52, %v7492_v22  ;;  %6294 = vmatpush.xpose.msk.msrb.mxu2 %vm3627_vm12, %v2406_v47  ;;  %v10838_v40 = vrot.slane %v7587_v10, 4  ;;  %6593 = vrot.lane.b32.xlu0 %v7642_v13, %s7003_s11  ;;  %s6149_s11 = sshll.u32 %s10720_s23, 4  ;;  %s6150_s11 = int_to_ptr.vmem [resolvable:$true] %s6149_s11 }
 0x2a8   : > { %v2330_v9 = vperm.slane %v2324_v27, %v7492_v22  ;;  %v2407_v60 = vrot.slane %v2394_v36, 4  ;;  %v2409_v47 = vrot.slane %v2370_v57, 4  ;;  %v1809_v19 = vrot.slane %v701_v50, 4 }
 0x2a9   : > { %v2336_v28 = vsel %vm955_vm11, %v10838_v40, %v7590_v15  ;;  %v2347_v39 = vrot.slane %v2318_v12, 4  ;;  %v2349_v54 = vrot.slane %v2306_v63, 4  ;;  %6290 = vmatpush.xpose.msk.msrb.mxu1 %vm3627_vm12, %v2404_v24  ;;  %v1807_v48 = vrot.slane %v749_v55, 4 }
 0x2aa   : > { %v2342_v53 = vperm.slane %v2336_v28, %v7492_v22  ;;  %v2373_v49 = vrot.slane %v2330_v9, 4  ;;  %v2408_v7 = vsel %vm955_vm11, %v2407_v60, %v2370_v57  ;;  %v2781_v51 = vrot.slane %v7967_v32, 4 }
 0x2ab   : > { %v2348_v10 = vsel %vm955_vm11, %v2347_v39, %v2306_v63  ;;  %v2350_v15 = vsel %vm955_vm11, %v2318_v12, %v2349_v54  ;;  %6298 = vmatpush.xpose.msk.msrb.mxu3 %vm3627_vm12, %v2408_v7  ;;  %v1559_v62 = vrot.slane %v7950_v45, 4  ;;  %v2410_v26 = vsel %vm955_vm11, %v2394_v36, %v2409_v47  ;;  %v8043_v63 = vpop.permute.xlu0 %724 }
 0x2ac   : > { %v2371_v30 = vrot.slane %v2342_v53, 4  ;;  %v2354_v33 = vperm.slane %v2348_v10, %v7524_v59  ;;  %v2374_v24 = vsel %vm955_vm11, %v2342_v53, %v2373_v49  ;;  %v8035_v37 = vperm.slane %v2350_v15, %v7524_v59 }
 0x2ad   : > { %6301 = vmatpush.xpose.msk.msra.mxu1 %vm3627_vm12, %v2522_v35  ;;  %v8038_v52 = vperm.slane %v2374_v24, %v7524_v59  ;;  %v2779_v12 = vrot.slane %v7973_v61, 4  ;;  %v1810_v57 = vsel %vm955_vm11, %v749_v55, %v1809_v19  ;;  %v2412_v40 = vsel %vm955_vm11, %v2411_v20, %v7871_v23 }
 0x2ae   : > { %v2372_v35 = vsel %vm955_vm11, %v2371_v30, %v2330_v9  ;;  %v2397_v18 = vrot.slane %v2354_v33, 4  ;;  %v1808_v28 = vsel %vm955_vm11, %v1807_v48, %v701_v50  ;;  %v10839_v39 = vrot.slane %v7883_v0, 4 }
 0x2af   : > { %v2378_v27 = vperm.slane %v2372_v35, %v7524_v59  ;;  %v2399_v9 = vrot.slane %v8038_v52, 4  ;;  %v10840_v55 = vrot.slane %v7898_v21, 4  ;;  %v8069_v23 = vsel %vm955_vm11, %v1563_v3, %v7911_v44 }
 0x2b0   : > { %v2424_v54 = vsel %vm955_vm11, %v10839_v39, %v7848_v56  ;;  %v2782_v14 = vsel %vm955_vm11, %v7973_v61, %v2781_v51  ;;  %v10841_v0 = vrot.slane %v7946_v17, 4  ;;  %v2418_v44 = vperm.slane %v2412_v40, %v7492_v22  ;;  %v8135_v40 = vpop.permute.xlu1 %702 }
 0x2b1   : > { %6302 = vmatpush.xpose.msk.msra.mxu1 %vm3627_vm12, %v2410_v26  ;;  %v2395_v53 = vrot.slane %v2378_v27, 4  ;;  %v2398_v36 = vsel %vm955_vm11, %v2378_v27, %v2397_v18  ;;  %v8063_v60 = vsel %vm955_vm11, %v7950_v45, %v10840_v55  ;;  %v2400_v56 = vsel %vm955_vm11, %v2399_v9, %v8035_v37 }
 0x2b2   : > { %6295 = vmatmul.msk.f32.vlgmr.msrb.gmra.mxu2 %vm3627_vm12, %v2398_v36  ;;  %v8080_v20 = vsel %vm955_vm11, %v10841_v0, %v7904_v29  ;;  %v8083_v45 = vperm.slane %v1810_v57, %v7492_v22  ;;  %6299 = vmatmul.msk.f32.vlgmr.msrb.gmra.mxu3 %vm3627_vm12, %v2400_v56  ;;  %v8089_v34 = vperm.slane %v1808_v28, %v7492_v22  ;;  %v10842_v29 = vrot.slane %v7874_v43, 4 }
 0x2b3   : > { %v2396_v3 = vsel %vm955_vm11, %v2395_v53, %v2354_v33  ;;  %v2430_v61 = vperm.slane %v2424_v54, %v7492_v22  ;;  %v2454_v50 = vperm.slane %v7920_v16, %v7492_v22  ;;  %v2745_v49 = vrot.slane %v8020_v25, 4 }
 0x2b4   : > { %6291 = vmatmul.msk.f32.vlgmr.msrb.gmra.mxu1 %vm3627_vm12, %v2396_v3  ;;  %v2436_v17 = vsel %vm955_vm11, %v10842_v29, %v7857_v31  ;;  %v2769_v47 = vrot.slane %v8069_v23, 4  ;;  %v8103_v19 = vsel %vm955_vm11, %v2779_v12, %v7967_v32  ;;  %v8106_v10 = vperm.slane %v2782_v14, %v7492_v22 }
 0x2b5   : > { %v1795_v30 = vrot.slane %v8043_v63, 4  ;;  %v2442_v43 = vperm.slane %v2436_v17, %v7492_v22  ;;  %v2459_v15 = vrot.slane %v2430_v61, 4  ;;  %v2483_v31 = vrot.slane %v2454_v50, 4 }
 0x2b6   : > { %v1855_v48 = vrot.slane %v8083_v45, 4  ;;  %v2461_v16 = vrot.slane %v2418_v44, 4  ;;  %v8113_v7 = vsel %vm955_vm11, %v1559_v62, %v7898_v21  ;;  %v1843_v33 = vrot.slane %v8089_v34, 4  ;;  %v819_v62 = vpop.permute.xlu0 %818 }
 0x2b7   : > { %v2460_v32 = vsel %vm955_vm11, %v2459_v15, %v2418_v44  ;;  %v2484_v24 = vsel %vm955_vm11, %v2483_v31, %v2442_v43  ;;  %v2485_v51 = vrot.slane %v2442_v43, 4  ;;  %v2746_v21 = vsel %vm955_vm11, %v8113_v7, %v2745_v49 }
 0x2b8   : > { %v2466_v35 = vperm.slane %v2460_v32, %v7524_v59  ;;  %v2490_v27 = vperm.slane %v2484_v24, %v7524_v59  ;;  %v2462_v18 = vsel %vm955_vm11, %v2430_v61, %v2461_v16  ;;  %v1796_v26 = vsel %vm955_vm11, %v1795_v30, %v7450_v2 }
 0x2b9   : > { %v8128_v12 = vperm.slane %v2462_v18, %v7524_v59  ;;  %v2486_v57 = vsel %vm955_vm11, %v2454_v50, %v2485_v51  ;;  %v2758_v9 = vsel %vm955_vm11, %v8063_v60, %v2757_v42  ;;  %v2754_v54 = vperm.slane %v2746_v21, %v7492_v22 }
 0x2ba   : > { %v2507_v28 = vrot.slane %v2490_v27, 4  ;;  %v2509_v53 = vrot.slane %v2466_v35, 4  ;;  %v8138_v36 = vperm.slane %v2486_v57, %v7524_v59  ;;  %v2766_v39 = vperm.slane %v2758_v9, %v7492_v22 }
 0x2bb   : > { %v2770_v55 = vsel %vm955_vm11, %v8080_v20, %v2769_v47  ;;  %v2827_v14 = vrot.slane %v8106_v10, 4  ;;  %v1651_v56 = vrot.slane %v819_v62, 4  ;;  %v8150_v61 = vperm.slane %v1796_v26, %v7492_v22 }
 0x2bc   : > { %v2508_v0 = vsel %vm955_vm11, %v2507_v28, %v2466_v35  ;;  %v2510_v42 = vsel %vm955_vm11, %v2490_v27, %v2509_v53  ;;  %v2511_v3 = vrot.slane %v8138_v36, 4  ;;  %v2778_v44 = vperm.slane %v2770_v55, %v7492_v22 }
 0x2bd   : > { %6292 = vmatmul.msk.f32.gmra.mxu1 %vm3627_vm12, %v2508_v0  ;;  %6296 = vmatmul.msk.f32.gmra.mxu2 %vm3627_vm12, %v2510_v42  ;;  %v2803_v29 = vrot.slane %v2766_v39, 4  ;;  %v1652_v17 = vsel %vm955_vm11, %v1651_v56, %v7532_v11  ;;  %v10843_v50 = vrot.slane %v7532_v11, 4  ;;  %v10844_v31 = vrot.slane %v7450_v2, 4  ;;  %v8196_v42 = vpop.permute.xlu1 %846 }
 0x2be   : > { %v2512_v47 = vsel %vm955_vm11, %v2511_v3, %v8128_v12  ;;  %v2828_v30 = vsel %vm955_vm11, %v2827_v14, %v2778_v44  ;;  %v8163_v43 = vperm.slane %v1652_v17, %v7492_v22  ;;  %v2829_v24 = vrot.slane %v2778_v44, 4 }
 0x2bf   : > { %v1654_v49 = vsel %vm955_vm11, %v819_v62, %v10843_v50  ;;  %v1798_v16 = vsel %vm955_vm11, %v8043_v63, %v10844_v31  ;;  %6300 = vmatmul.msk.f32.gmra.mxu3 %vm3627_vm12, %v2512_v47  ;;  %v2804_v11 = vsel %vm955_vm11, %v2803_v29, %v2754_v54  ;;  %v2834_v32 = vperm.slane %v2828_v30, %v7524_v59 }
 0x2c0   : > { %v1662_v15 = vperm.slane %v1654_v49, %v7492_v22  ;;  %v2810_v51 = vperm.slane %v2804_v11, %v7524_v59  ;;  %v10845_v35 = vrot.slane %v7704_v8, 4  ;;  %v10846_v18 = vrot.slane %v7732_v58, 4 }
 0x2c1   : > { %v2805_v21 = vrot.slane %v2754_v54, 4  ;;  %v2847_v63 = vrot.slane %v2834_v32, 4  ;;  %v2401_v9 = vrot.slane %v8035_v37, 4  ;;  %v8185_v28 = vperm.slane %v1798_v16, %v7492_v22 }
 0x2c2   : > { %v1700_v27 = vsel %vm955_vm11, %v10845_v35, %v8163_v43  ;;  %v1712_v2 = vsel %vm955_vm11, %v10846_v18, %v1662_v15  ;;  %v1713_v26 = vrot.slane %v1662_v15, 4  ;;  %v1844_v53 = vsel %vm955_vm11, %v1843_v33, %v8150_v61  ;;  %v10853_v18 = vld [vmem:[#allocation19_spill] sm:$0xff] }
 0x2c3   : > { %v1706_v62 = vperm.slane %v1700_v27, %v7524_v59  ;;  %v1718_v57 = vperm.slane %v1712_v2, %v7524_v59  ;;  %v2849_v55 = vrot.slane %v2810_v51, 4  ;;  %v2848_v14 = vsel %vm955_vm11, %v2847_v63, %v2810_v51  ;;  %v10852_v27 = vld [vmem:[#allocation18_spill] sm:$0xff] }
 0x2c4   : > { %v1714_v54 = vsel %vm955_vm11, %v7732_v58, %v1713_v26  ;;  %v2830_v0 = vsel %vm955_vm11, %v8106_v10, %v2829_v24  ;;  %6305 = vmatpush.xpose.msk.msra.mxu2 %vm3627_vm12, %v2848_v14  ;;  %v10847_v33 = vrot.slane %v7777_v4, 4  ;;  %v1845_v58 = vrot.slane %v8150_v61, 4 }
 0x2c5   : > { %v1723_v56 = vrot.slane %v1706_v62, 4  ;;  %v2850_v37 = vsel %vm955_vm11, %v2834_v32, %v2849_v55  ;;  %v1722_v3 = vperm.slane %v1714_v54, %v7524_v59  ;;  %v1731_v29 = vrot.slane %v1718_v57, 4  ;;  %v10856_v54 = vld [vmem:[#allocation23_spill] sm:$0xff] }
 0x2c6   : > { %v8202_v44 = vsel %vm955_vm11, %v1706_v62, %v10847_v33  ;;  %6309 = vmatpush.xpose.msk.msra.mxu3 %vm3627_vm12, %v2850_v37  ;;  %v10848_v17 = vrot.slane %v7750_v6, 4  ;;  %v2806_v49 = vsel %vm955_vm11, %v2766_v39, %v2805_v21  ;;  %v10849_v15 = vrot.slane %v7780_v38, 4  ;;  %v10850_v39 = vld [vmem:[#allocation20_spill] sm:$0xff] }
 0x2c7   : > { %v8208_v10 = vsel %vm955_vm11, %v1723_v56, %v7777_v4  ;;  %v8216_v47 = vsel %vm955_vm11, %v1731_v29, %v7750_v6  ;;  %v1735_v30 = vrot.slane %v1722_v3, 4  ;;  %v8225_v4 = vsel %vm955_vm11, %v1855_v48, %v8185_v28  ;;  %v10859_v29 = vld [vmem:[#allocation22_spill] sm:$0xff] }
 0x2c8   : > { %v1734_v50 = vsel %vm955_vm11, %v1718_v57, %v10848_v17  ;;  %v1738_v31 = vsel %vm955_vm11, %v1722_v3, %v10849_v15  ;;  %v2838_v32 = vperm.slane %v2830_v0, %v7524_v59  ;;  %v10851_v24 = vrot.slane %v10850_v39, 4  ;;  %v10857_v3 = vld [vmem:[#allocation21_spill] sm:$0xff] }
 0x2c9   : > { %v3001_v16 = vrot.slane %v1734_v50, 4  ;;  %v2999_v11 = vrot.slane %v1738_v31, 4  ;;  %v8234_v51 = vsel %vm955_vm11, %v1735_v30, %v7780_v38  ;;  %v10854_v2 = vrot.slane %v10853_v18, 4 }
 0x2ca   : > { %v1388_v6 = vsel %vm955_vm11, %v10851_v24, %v7624_v46  ;;  %v10855_v21 = vrot.slane %v10852_v27, 4  ;;  %v2987_v62 = vrot.slane %v8234_v51, 4  ;;  %v2814_v38 = vperm.slane %v2806_v49, %v7524_v59 }
 0x2cb   : > { %v8237_v35 = vsel %vm955_vm11, %v1738_v31, %v3001_v16  ;;  %v1392_v48 = vsel %vm955_vm11, %v10854_v2, %v10852_v27  ;;  %v8249_v46 = vsel %vm955_vm11, %v2999_v11, %v1734_v50  ;;  %v2851_v26 = vrot.slane %v2838_v32, 4  ;;  %v10860_v50 = vld [vmem:[#allocation26_spill] sm:$0xff] }
 0x2cc   : > { %v1394_v63 = vsel %vm955_vm11, %v10853_v18, %v10855_v21  ;;  %v2631_v57 = vrot.slane %v1392_v48, 4  ;;  %v2633_v55 = vrot.slane %v1388_v6, 4  ;;  %v2645_v56 = vrot.slane %v10856_v54, 4 }
 0x2cd   : > { %v2643_v14 = vrot.slane %v1394_v63, 4  ;;  %v8255_v0 = vsel %vm955_vm11, %v2987_v62, %v8216_v47  ;;  %v2852_v37 = vsel %vm955_vm11, %v2851_v26, %v2814_v38  ;;  %v10858_v33 = vrot.slane %v10857_v3, 4 }
 0x2ce   : > { %v2678_v49 = vperm.slane %v10860_v50, %v7492_v22  ;;  %6313 = vmatpush.xpose.msk.msrb.mxu1 %vm3627_vm12, %v2852_v37  ;;  %v2634_v30 = vsel %vm955_vm11, %v1392_v48, %v2633_v55  ;;  %v2646_v15 = vsel %vm955_vm11, %v1394_v63, %v2645_v56  ;;  %v2402_v16 = vsel %vm955_vm11, %v8038_v52, %v2401_v9  ;;  %v845_v9 = vpop.permute.xlu1 %844 }
 0x2cf   : > { %v2658_v17 = vsel %vm955_vm11, %v10859_v29, %v10858_v33  ;;  %v8271_v11 = vperm.slane %v1844_v53, %v7524_v59  ;;  %v2642_v39 = vperm.slane %v2634_v30, %v7492_v22  ;;  %v2654_v24 = vperm.slane %v2646_v15, %v7492_v22  ;;  %6303 = vmatmul.msk.f32.vlgmr.msra.gmra.mxu1 %vm3627_vm12, %v2402_v16 }
 0x2d0   : > { %v2666_v31 = vperm.slane %v2658_v17, %v7492_v22  ;;  %v2715_v27 = vrot.slane %v2678_v49, 4  ;;  %v2632_v2 = vsel %vm955_vm11, %v2631_v57, %v1388_v6  ;;  %v2644_v48 = vsel %vm955_vm11, %v2643_v14, %v10856_v54  ;;  %v10862_v17 = vld [vmem:[#allocation25_spill] sm:$0xff] }
 0x2d1   : > { %v10861_v21 = vrot.slane %v10859_v29, 4  ;;  %v2691_v53 = vrot.slane %v2654_v24, 4  ;;  %v2853_v62 = vrot.slane %v2814_v38, 4  ;;  %v2693_v26 = vrot.slane %v2642_v39, 4 }
 0x2d2   : > { %v2717_v18 = vrot.slane %v2666_v31, 4  ;;  %v2716_v63 = vsel %vm955_vm11, %v2715_v27, %v2666_v31  ;;  %v8287_v6 = vperm.slane %v2632_v2, %v7492_v22  ;;  %v8290_v57 = vperm.slane %v2644_v48, %v7492_v22 }
 0x2d3   : > { %v2656_v52 = vsel %vm955_vm11, %v10861_v21, %v10857_v3  ;;  %v2722_v55 = vperm.slane %v2716_v63, %v7524_v59  ;;  %v2692_v14 = vsel %vm955_vm11, %v2691_v53, %v2642_v39  ;;  %v2694_v54 = vsel %vm955_vm11, %v2654_v24, %v2693_v26  ;;  %v8333_v63 = vpop.permute.xlu2 %774 }
 0x2d4   : > { %v2718_v56 = vsel %vm955_vm11, %v2678_v49, %v2717_v18  ;;  %v8296_v3 = vperm.slane %v2656_v52, %v7492_v22  ;;  %v2698_v38 = vperm.slane %v2692_v14, %v7524_v59  ;;  %v2702_v29 = vperm.slane %v2694_v54, %v7524_v59 }
 0x2d5   : > { %v2726_v37 = vperm.slane %v2718_v56, %v7524_v59  ;;  %v2735_v33 = vrot.slane %v2722_v55, 4  ;;  %v8302_v50 = vperm.slane %v10862_v17, %v7492_v22  ;;  %v1857_v49 = vrot.slane %v8185_v28, 4 }
 0x2d6   : > { %v2679_v15 = vrot.slane %v8290_v57, 4  ;;  %v1831_v31 = vrot.slane %v845_v9, 4  ;;  %v1846_v16 = vsel %vm955_vm11, %v8089_v34, %v1845_v58  ;;  %v2737_v24 = vrot.slane %v2698_v38, 4  ;;  %v821_v14 = vpop.permute.xlu1 %820 }
 0x2d7   : > { %v2739_v30 = vrot.slane %v2726_v37, 4  ;;  %v2736_v39 = vsel %vm955_vm11, %v2735_v33, %v2698_v38  ;;  %v2703_v27 = vrot.slane %v8302_v50, 4  ;;  %v2854_v18 = vsel %vm955_vm11, %v2838_v32, %v2853_v62 }
 0x2d8   : > { %6306 = vmatpush.xpose.msk.msra.mxu2 %vm3627_vm12, %v2736_v39  ;;  %v2680_v2 = vsel %vm955_vm11, %v2679_v15, %v8287_v6  ;;  %v2741_v48 = vrot.slane %v2702_v29, 4  ;;  %v2767_v61 = vrot.slane %v8080_v20, 4  ;;  %v2738_v21 = vsel %vm955_vm11, %v2722_v55, %v2737_v24 }
 0x2d9   : > { %v2740_v28 = vsel %vm955_vm11, %v2739_v30, %v2702_v29  ;;  %v2686_v34 = vperm.slane %v2680_v2, %v7524_v59  ;;  %v2704_v58 = vsel %vm955_vm11, %v2703_v27, %v8296_v3  ;;  %v8326_v32 = vperm.slane %v8225_v4, %v7524_v59  ;;  %6310 = vmatpush.xpose.msk.msra.mxu3 %vm3627_vm12, %v2738_v21 }
 0x2da   : > { %6314 = vmatpush.xpose.msk.msrb.mxu1 %vm3627_vm12, %v2740_v28  ;;  %v2710_v52 = vperm.slane %v2704_v58, %v7524_v59  ;;  %v1832_v20 = vsel %vm955_vm11, %v1831_v31, %v7854_v5  ;;  %v2742_v53 = vsel %vm955_vm11, %v2726_v37, %v2741_v48  ;;  %v8336_v62 = vperm.slane %v1846_v16, %v7524_v59 }
 0x2db   : > { %v2729_v26 = vrot.slane %v2686_v34, 4  ;;  %v10863_v55 = vrot.slane %v7854_v5, 4  ;;  %v2513_v56 = vrot.slane %v8128_v12, 4  ;;  %v1858_v54 = vsel %vm955_vm11, %v8083_v45, %v1857_v49 }
 0x2dc   : > { %6317 = vmatpush.xpose.msk.msrb.mxu2 %vm3627_vm12, %v2854_v18  ;;  %v2727_v38 = vrot.slane %v2710_v52, 4  ;;  %v2743_v33 = vrot.slane %v8113_v7, 4  ;;  %v2755_v37 = vrot.slane %v8063_v60, 4  ;;  %v1893_v29 = vrot.slane %v8271_v11, 4 }
 0x2dd   : > { %v1834_v4 = vsel %vm955_vm11, %v845_v9, %v10863_v55  ;;  %v2730_v17 = vsel %vm955_vm11, %v2710_v52, %v2729_v26  ;;  %v1838_v30 = vperm.slane %v1832_v20, %v7492_v22  ;;  %v2514_v5 = vsel %vm955_vm11, %v8138_v36, %v2513_v56 }
 0x2de   : > { %v2728_v12 = vsel %vm955_vm11, %v2727_v38, %v2686_v34  ;;  %6311 = vmatmul.msk.f32.vlgmr.msra.gmra.mxu3 %vm3627_vm12, %v2730_v17  ;;  %v1842_v45 = vperm.slane %v1834_v4, %v7492_v22  ;;  %6304 = vmatmul.msk.f32.gmra.mxu1 %vm3627_vm12, %v2514_v5  ;;  %v2744_v60 = vsel %vm955_vm11, %v2743_v33, %v8020_v25  ;;  %v1819_v7 = vrot.slane %v821_v14, 4 }
 0x2df   : > { %v8359_v9 = vperm.slane %v1858_v54, %v7524_v59  ;;  %6307 = vmatmul.msk.f32.vlgmr.msra.gmra.mxu2 %vm3627_vm12, %v2728_v12  ;;  %v2756_v36 = vsel %vm955_vm11, %v2755_v37, %v7956_v1  ;;  %v2768_v49 = vsel %vm955_vm11, %v2767_v61, %v8069_v23  ;;  %v8368_v15 = vperm.slane %v8103_v19, %v7492_v22 }
 0x2e0   : > { %6318 = vmatpush.xpose.msk.msrb.mxu2 %vm3627_vm12, %v2742_v53  ;;  %v8371_v31 = vperm.slane %v2744_v60, %v7492_v22  ;;  %v8374_v25 = vperm.slane %v2756_v36, %v7492_v22  ;;  %v8377_v16 = vperm.slane %v2768_v49, %v7492_v22  ;;  %v1820_v39 = vsel %vm955_vm11, %v1819_v7, %v7913_v41 }
 0x2e1   : > { %v1867_v1 = vrot.slane %v1838_v30, 4  ;;  %v2815_v24 = vrot.slane %v8368_v15, 4  ;;  %v10864_v23 = vrot.slane %v7913_v41, 4  ;;  %v1826_v27 = vperm.slane %v1820_v39, %v7492_v22  ;;  %v8393_v41 = vpop.permute.xlu2 %800 }
 0x2e2   : > { %v1901_v18 = vrot.slane %v8326_v32, 4  ;;  %v1879_v28 = vrot.slane %v1842_v45, 4  ;;  %v2791_v2 = vrot.slane %v8374_v25, 4  ;;  %v1905_v61 = vrot.slane %v8359_v9, 4 }
 0x2e3   : > { %v1822_v19 = vsel %vm955_vm11, %v821_v14, %v10864_v23  ;;  %v2816_v21 = vsel %vm955_vm11, %v2815_v24, %v8377_v16  ;;  %v1868_v34 = vsel %vm955_vm11, %v1867_v1, %v1826_v27  ;;  %v1869_v58 = vrot.slane %v1826_v27, 4 }
 0x2e4   : > { %v1830_v48 = vperm.slane %v1822_v19, %v7492_v22  ;;  %v2792_v52 = vsel %vm955_vm11, %v2791_v2, %v8371_v31  ;;  %v2822_v20 = vperm.slane %v2816_v21, %v7524_v59  ;;  %v1874_v53 = vperm.slane %v1868_v34, %v7524_v59 }
 0x2e5   : > { %v2798_v55 = vperm.slane %v2792_v52, %v7524_v59  ;;  %v1870_v4 = vsel %vm955_vm11, %v1838_v30, %v1869_v58  ;;  %v1701_v54 = vrot.slane %v8163_v43, 4  ;;  %v2681_v37 = vrot.slane %v8287_v6, 4 }
 0x2e6   : > { %v1880_v26 = vsel %vm955_vm11, %v1879_v28, %v1830_v48  ;;  %v1881_v56 = vrot.slane %v1830_v48, 4  ;;  %v2839_v38 = vrot.slane %v2822_v20, 4  ;;  %v1891_v33 = vrot.slane %v1874_v53, 4  ;;  %v10865_v28 = vld [vmem:[#allocation24_spill] sm:$0xff] }
 0x2e7   : > { %v1886_v14 = vperm.slane %v1880_v26, %v7524_v59  ;;  %v2841_v17 = vrot.slane %v2798_v55, 4  ;;  %v1878_v5 = vperm.slane %v1870_v4, %v7524_v59  ;;  %v2705_v60 = vrot.slane %v8296_v3, 4 }
 0x2e8   : > { %v1882_v12 = vsel %vm955_vm11, %v1842_v45, %v1881_v56  ;;  %v2840_v7 = vsel %vm955_vm11, %v2839_v38, %v2798_v55  ;;  %v1897_v43 = vrot.slane %v8336_v62, 4  ;;  %v1702_v39 = vsel %vm955_vm11, %v7704_v8, %v1701_v54 }
 0x2e9   : > { %v1890_v30 = vperm.slane %v1882_v12, %v7524_v59  ;;  %v1899_v36 = vrot.slane %v1886_v14, 4  ;;  %v8411_v49 = vsel %vm955_vm11, %v1886_v14, %v1901_v18  ;;  %6308 = vmatmul.msk.f32.gmra.mxu2 %vm3627_vm12, %v2840_v7  ;;  %v2842_v6 = vsel %vm955_vm11, %v2822_v20, %v2841_v17 }
 0x2ea   : > { %6312 = vmatmul.msk.f32.gmra.mxu3 %vm3627_vm12, %v2842_v6  ;;  %v8421_v3 = vsel %vm955_vm11, %v1891_v33, %v8271_v11  ;;  %v8424_v45 = vsel %vm955_vm11, %v1874_v53, %v1893_v29  ;;  %v1895_v24 = vrot.slane %v1878_v5, 4  ;;  %v3113_v23 = vrot.slane %v8411_v49, 4 }
 0x2eb   : > { %v8427_v1 = vsel %vm955_vm11, %v1890_v30, %v1905_v61  ;;  %v2682_v19 = vsel %vm955_vm11, %v8290_v57, %v2681_v37  ;;  %v2706_v8 = vsel %vm955_vm11, %v8302_v50, %v2705_v60  ;;  %v8436_v27 = vsel %vm955_vm11, %v1899_v36, %v8326_v32  ;;  %v8446_v50 = vpop.permute.xlu2 %848 }
 0x2ec   : > { %v1903_v11 = vrot.slane %v1890_v30, 4  ;;  %v2690_v29 = vperm.slane %v2682_v19, %v7524_v59  ;;  %v2714_v18 = vperm.slane %v2706_v8, %v7524_v59  ;;  %v1686_v2 = vperm.slane %v10865_v28, %v7524_v59 }
 0x2ed   : > { %v1710_v48 = vperm.slane %v1702_v39, %v7524_v59  ;;  %v3077_v61 = vrot.slane %v8421_v3, 4  ;;  %v3114_v57 = vsel %vm955_vm11, %v8427_v1, %v3113_v23  ;;  %v8449_v32 = vsel %vm955_vm11, %v1878_v5, %v1897_v43  ;;  %v799_v39 = vpop.permute.xlu0 %798 }
 0x2ee   : > { %v3089_v21 = vrot.slane %v8424_v45, 4  ;;  %v2731_v34 = vrot.slane %v2714_v18, 4  ;;  %v2733_v58 = vrot.slane %v2690_v29, 4  ;;  %v3101_v52 = vrot.slane %v8436_v27, 4 }
 0x2ef   : > { %v3122_v20 = vperm.slane %v3114_v57, %v7492_v22  ;;  %v2793_v53 = vrot.slane %v8371_v31, 4  ;;  %v2817_v26 = vrot.slane %v8377_v16, 4  ;;  %v8458_v55 = vsel %vm955_vm11, %v1903_v11, %v8359_v9 }
 0x2f0   : > { %v2732_v4 = vsel %vm955_vm11, %v2731_v34, %v2690_v29  ;;  %v2734_v56 = vsel %vm955_vm11, %v2714_v18, %v2733_v58  ;;  %v8464_v14 = vsel %vm955_vm11, %v1895_v24, %v8336_v62  ;;  %v1727_v54 = vrot.slane %v1710_v48, 4 }
 0x2f1   : > { %6315 = vmatmul.msk.f32.vlgmr.msrb.gmra.mxu1 %vm3627_vm12, %v2732_v4  ;;  %6319 = vmatmul.msk.f32.vlgmr.msrb.gmra.mxu2 %vm3627_vm12, %v2734_v56  ;;  %v2794_v31 = vsel %vm955_vm11, %v8374_v25, %v2793_v53  ;;  %v2818_v9 = vsel %vm955_vm11, %v8368_v15, %v2817_v26  ;;  %v3078_v16 = vsel %vm955_vm11, %v8464_v14, %v3077_v61  ;;  %v3159_v5 = vrot.slane %v3122_v20, 4 }
 0x2f2   : > { %v2802_v38 = vperm.slane %v2794_v31, %v7524_v59  ;;  %v2826_v33 = vperm.slane %v2818_v9, %v7524_v59  ;;  %v3086_v62 = vperm.slane %v3078_v16, %v7492_v22  ;;  %v3090_v37 = vsel %vm955_vm11, %v8449_v32, %v3089_v21  ;;  %v10866_v16 = vld [vmem:[#allocation16_spill] sm:$0xff] }
 0x2f3   : > { %v3098_v17 = vperm.slane %v3090_v37, %v7492_v22  ;;  %v3102_v25 = vsel %vm955_vm11, %v8458_v55, %v3101_v52  ;;  %v1728_v36 = vsel %vm955_vm11, %v1727_v54, %v1686_v2  ;;  %v1729_v43 = vrot.slane %v1686_v2, 4  ;;  %v8485_v24 = vpop.permute.xlu2 %824 }
 0x2f4   : > { %v2843_v12 = vrot.slane %v2826_v33, 4  ;;  %v2845_v15 = vrot.slane %v2802_v38, 4  ;;  %v3110_v60 = vperm.slane %v3102_v25, %v7492_v22  ;;  %v3137_v7 = vrot.slane %v3086_v62, 4 }
 0x2f5   : > { %v3135_v30 = vrot.slane %v3098_v17, 4  ;;  %v8494_v2 = vsel %vm955_vm11, %v1710_v48, %v1729_v43  ;;  %v1999_v61 = vrot.slane %v8196_v42, 4  ;;  %v2001_v34 = vrot.slane %v799_v39, 4 }
 0x2f6   : > { %v3160_v6 = vsel %vm955_vm11, %v3159_v5, %v3110_v60  ;;  %v3138_v8 = vsel %vm955_vm11, %v3098_v17, %v3137_v7  ;;  %v3161_v11 = vrot.slane %v3110_v60, 4  ;;  %v2844_v29 = vsel %vm955_vm11, %v2843_v12, %v2802_v38 }
 0x2f7   : > { %v3136_v23 = vsel %vm955_vm11, %v3135_v30, %v3086_v62  ;;  %v3166_v19 = vperm.slane %v3160_v6, %v7524_v59  ;;  %v2846_v18 = vsel %vm955_vm11, %v2826_v33, %v2845_v15  ;;  %v8501_v52 = vperm.slane %v3138_v8, %v7524_v59 }
 0x2f8   : > { %v3142_v28 = vperm.slane %v3136_v23, %v7524_v59  ;;  %v3162_v21 = vsel %vm955_vm11, %v3122_v20, %v3161_v11  ;;  %v2977_v48 = vrot.slane %v8202_v44, 4  ;;  %v2989_v26 = vrot.slane %v8216_v47, 4 }
 0x2f9   : > { %6316 = vmatmul.msk.f32.gmra.mxu1 %vm3627_vm12, %v2844_v29  ;;  %6320 = vmatmul.msk.f32.gmra.mxu2 %vm3627_vm12, %v2846_v18  ;;  %v3179_v57 = vrot.slane %v3166_v19, 4  ;;  %v8504_v53 = vperm.slane %v3162_v21, %v7524_v59  ;;  %v2000_v4 = vsel %vm955_vm11, %v1999_v61, %v799_v39  ;;  %v2167_v31 = vrot.slane %v8446_v50, 4 }
 0x2fa   : > { %v3181_v58 = vrot.slane %v3142_v28, 4  ;;  %v2965_v9 = vrot.slane %v8208_v10, 4  ;;  %v1965_v38 = vrot.slane %v10866_v16, 4  ;;  %v1989_v47 = vrot.slane %v8333_v63, 4 }
 0x2fb   : > { %v3180_v56 = vsel %vm955_vm11, %v3179_v57, %v3142_v28  ;;  %v3183_v54 = vrot.slane %v8504_v53, 4  ;;  %v2002_v33 = vsel %vm955_vm11, %v8196_v42, %v2001_v34  ;;  %v8521_v62 = vperm.slane %v2000_v4, %v7492_v22  ;;  %v823_v6 = vpop.permute.xlu2 %822  ;;  %v8557_v57 = vpop.permute.xlu1 %704 }
 0x2fc   : > { %6321 = vmatpush.xpose.msk.msrb.mxu3 %vm3627_vm12, %v3180_v56  ;;  %v3182_v20 = vsel %vm955_vm11, %v3166_v19, %v3181_v58  ;;  %v2963_v17 = vrot.slane %v1728_v36, 4  ;;  %v2966_v25 = vsel %vm955_vm11, %v1728_v36, %v2965_v9  ;;  %v2978_v5 = vsel %vm955_vm11, %v8494_v2, %v2977_v48  ;;  %v777_v9 = vpop.permute.xlu0 %776 }
 0x2fd   : > { %6325 = vmatpush.xpose.msk.msra.mxu1 %vm3627_vm12, %v3182_v20  ;;  %v3184_v37 = vsel %vm955_vm11, %v3183_v54, %v8501_v52  ;;  %v2990_v12 = vsel %vm955_vm11, %v8234_v51, %v2989_v26  ;;  %v1977_v15 = vrot.slane %v8135_v40, 4  ;;  %v2974_v42 = vperm.slane %v2966_v25, %v7492_v22 }
 0x2fe   : > { %6329 = vmatpush.xpose.msk.msra.mxu2 %vm3627_vm12, %v3184_v37  ;;  %v2986_v60 = vperm.slane %v2978_v5, %v7492_v22  ;;  %v2998_v7 = vperm.slane %v2990_v12, %v7492_v22  ;;  %v8537_v30 = vperm.slane %v8249_v46, %v7492_v22  ;;  %v2169_v36 = vrot.slane %v8393_v41, 4 }
 0x2ff   : > { %v2168_v43 = vsel %vm955_vm11, %v2167_v31, %v8393_v41  ;;  %v3010_v51 = vperm.slane %v8237_v35, %v7492_v22  ;;  %v8545_v39 = vperm.slane %v2002_v33, %v7492_v22  ;;  %v2035_v23 = vrot.slane %v8521_v62, 4 }
 0x300   : > { %v3023_v19 = vrot.slane %v2986_v60, 4  ;;  %v3025_v8 = vrot.slane %v2974_v42, 4  ;;  %v3111_v11 = vrot.slane %v8427_v1, 4  ;;  %v2170_v46 = vsel %vm955_vm11, %v8446_v50, %v2169_v36 }
 0x301   : > { %v3047_v29 = vrot.slane %v3010_v51, 4  ;;  %v2964_v41 = vsel %vm955_vm11, %v2963_v17, %v8208_v10  ;;  %v8554_v18 = vperm.slane %v2168_v43, %v7492_v22  ;;  %v1987_v35 = vrot.slane %v823_v6, 4 }
 0x302   : > { %v3024_v28 = vsel %vm955_vm11, %v3023_v19, %v2974_v42  ;;  %v3049_v61 = vrot.slane %v2998_v7, 4  ;;  %v3185_v34 = vrot.slane %v8501_v52, 4  ;;  %v3026_v50 = vsel %vm955_vm11, %v2986_v60, %v3025_v8 }
 0x303   : > { %v3030_v21 = vperm.slane %v3024_v28, %v7524_v59  ;;  %v3048_v1 = vsel %vm955_vm11, %v3047_v29, %v2998_v7  ;;  %v2047_v58 = vrot.slane %v8545_v39, 4  ;;  %v3099_v10 = vrot.slane %v8458_v55, 4 }
 0x304   : > { %v2975_v48 = vrot.slane %v8494_v2, 4  ;;  %v3054_v26 = vperm.slane %v3048_v1, %v7524_v59  ;;  %v8569_v4 = vsel %vm955_vm11, %v3111_v11, %v8411_v49  ;;  %v8572_v56 = vperm.slane %v2170_v46, %v7492_v22  ;;  %v753_v1 = vpop.permute.xlu1 %752 }
 0x305   : > { %v2155_v20 = vrot.slane %v8485_v24, 4  ;;  %v3069_v52 = vrot.slane %v3030_v21, 4  ;;  %v2203_v54 = vrot.slane %v8554_v18, 4  ;;  %v3034_v33 = vperm.slane %v3026_v50, %v7524_v59 }
 0x306   : > { %v3067_v31 = vrot.slane %v3054_v26, 4  ;;  %v3050_v2 = vsel %vm955_vm11, %v3010_v51, %v3049_v61  ;;  %v1988_v37 = vsel %vm955_vm11, %v1987_v35, %v8333_v63  ;;  %v1990_v49 = vsel %vm955_vm11, %v823_v6, %v1989_v47 }
 0x307   : > { %v3186_v17 = vsel %vm955_vm11, %v8504_v53, %v3185_v34  ;;  %v3070_v25 = vsel %vm955_vm11, %v3054_v26, %v3069_v52  ;;  %v3058_v12 = vperm.slane %v3050_v2, %v7524_v59  ;;  %v2970_v42 = vperm.slane %v2964_v41, %v7492_v22 }
 0x308   : > { %v3068_v5 = vsel %vm955_vm11, %v3067_v31, %v3030_v21  ;;  %6326 = vmatpush.xpose.msk.msra.mxu1 %vm3627_vm12, %v3070_v25  ;;  %v2976_v60 = vsel %vm955_vm11, %v2975_v48, %v8202_v44  ;;  %v2157_v63 = vrot.slane %v777_v9, 4  ;;  %v2994_v53 = vperm.slane %v8255_v0, %v7492_v22 }
 0x309   : > { %6322 = vmatpush.xpose.msk.msrb.mxu3 %vm3627_vm12, %v3068_v5  ;;  %v2982_v47 = vperm.slane %v2976_v60, %v7492_v22  ;;  %v3035_v7 = vrot.slane %v8537_v30, 4  ;;  %v1998_v36 = vperm.slane %v1990_v49, %v7492_v22  ;;  %v3071_v43 = vrot.slane %v3058_v12, 4 }
 0x30a   : > { %v3013_v6 = vrot.slane %v2970_v42, 4  ;;  %v3073_v51 = vrot.slane %v3034_v33, 4  ;;  %v2156_v19 = vsel %vm955_vm11, %v2155_v20, %v777_v9  ;;  %v3037_v11 = vrot.slane %v2994_v53, 4 }
 0x30b   : > { %v3011_v44 = vrot.slane %v2982_v47, 4  ;;  %v3036_v8 = vsel %vm955_vm11, %v3035_v7, %v2994_v53  ;;  %v3072_v46 = vsel %vm955_vm11, %v3071_v43, %v3034_v33  ;;  %v1994_v35 = vperm.slane %v1988_v37, %v7492_v22 }
 0x30c   : > { %v3042_v29 = vperm.slane %v3036_v8, %v7524_v59  ;;  %v3014_v0 = vsel %vm955_vm11, %v2982_v47, %v3013_v6  ;;  %v3074_v41 = vsel %vm955_vm11, %v3058_v12, %v3073_v51  ;;  %v2158_v28 = vsel %vm955_vm11, %v8485_v24, %v2157_v63  ;;  %6330 = vmatpush.xpose.msk.msra.mxu2 %vm3627_vm12, %v3072_v46 }
 0x30d   : > { %6333 = vmatpush.xpose.msk.msra.mxu3 %vm3627_vm12, %v3186_v17  ;;  %v3012_v61 = vsel %vm955_vm11, %v3011_v44, %v2970_v42  ;;  %v3038_v21 = vsel %vm955_vm11, %v8537_v30, %v3037_v11  ;;  %v8612_v48 = vperm.slane %v3014_v0, %v7524_v59  ;;  %v2145_v24 = vrot.slane %v8557_v57, 4 }
 0x30e   : > { %v3018_v34 = vperm.slane %v3012_v61, %v7524_v59  ;;  %v3059_v50 = vrot.slane %v3042_v29, 4  ;;  %v8615_v26 = vperm.slane %v3038_v21, %v7524_v59  ;;  %v2048_v20 = vsel %vm955_vm11, %v2047_v58, %v1998_v36  ;;  %v729_v58 = vpop.permute.xlu0 %728 }
 0x30f   : > { %v2049_v52 = vrot.slane %v1998_v36, 4  ;;  %v2162_v31 = vperm.slane %v2156_v19, %v7492_v22  ;;  %v2143_v2 = vrot.slane %v753_v1, 4  ;;  %v2215_v37 = vrot.slane %v8572_v56, 4  ;;  %v10867_v36 = vld [vmem:[#allocation17_spill] sm:$0xff] }
 0x310   : > { %v3060_v30 = vsel %vm955_vm11, %v3059_v50, %v3018_v34  ;;  %v3061_v9 = vrot.slane %v3018_v34, 4  ;;  %v3063_v33 = vrot.slane %v8615_v26, 4  ;;  %v2036_v49 = vsel %vm955_vm11, %v2035_v23, %v1994_v35 }
 0x311   : > { %6334 = vmatpush.xpose.msk.msra.mxu3 %vm3627_vm12, %v3074_v41  ;;  %v2037_v17 = vrot.slane %v1994_v35, 4  ;;  %v2166_v25 = vperm.slane %v2158_v28, %v7492_v22  ;;  %v2146_v42 = vsel %vm955_vm11, %v753_v1, %v2145_v24  ;;  %v3075_v60 = vrot.slane %v8464_v14, 4  ;;  %v8685_v28 = vpop.permute.xlu2 %6528 }
 0x312   : > { %6323 = vmatmul.msk.f32.vlgmr.msrb.gmra.mxu3 %vm3627_vm12, %v3060_v30  ;;  %v3062_v5 = vsel %vm955_vm11, %v3042_v29, %v3061_v9  ;;  %v3064_v12 = vsel %vm955_vm11, %v3063_v33, %v8612_v48  ;;  %v2050_v63 = vsel %vm955_vm11, %v8545_v39, %v2049_v52  ;;  %v8637_v23 = vperm.slane %v2048_v20, %v7524_v59 }
 0x313   : > { %v2205_v47 = vrot.slane %v2162_v31, 4  ;;  %6327 = vmatmul.msk.f32.vlgmr.msra.gmra.mxu1 %vm3627_vm12, %v3062_v5  ;;  %6331 = vmatmul.msk.f32.vlgmr.msra.gmra.mxu2 %vm3627_vm12, %v3064_v12  ;;  %v3087_v53 = vrot.slane %v8449_v32, 4  ;;  %v2144_v7 = vsel %vm955_vm11, %v2143_v2, %v8557_v57  ;;  %v2133_v43 = vrot.slane %v10867_v36, 4 }
 0x314   : > { %v2131_v6 = vrot.slane %v729_v58, 4  ;;  %v3076_v14 = vsel %vm955_vm11, %v3075_v60, %v8421_v3  ;;  %v2204_v39 = vsel %vm955_vm11, %v2203_v54, %v2162_v31  ;;  %v2216_v51 = vsel %vm955_vm11, %v2215_v37, %v2166_v25  ;;  %v727_v37 = vpop.permute.xlu1 %726 }
 0x315   : > { %v2217_v19 = vrot.slane %v2166_v25, 4  ;;  %v2154_v44 = vperm.slane %v2146_v42, %v7492_v22  ;;  %v2134_v32 = vsel %vm955_vm11, %v729_v58, %v2133_v43  ;;  %v3082_v8 = vperm.slane %v3076_v14, %v7492_v22 }
 0x316   : > { %v3088_v57 = vsel %vm955_vm11, %v3087_v53, %v8424_v45  ;;  %v3118_v11 = vperm.slane %v8569_v4, %v7492_v22  ;;  %v2038_v3 = vsel %vm955_vm11, %v8521_v62, %v2037_v17  ;;  %v8661_v54 = vperm.slane %v2036_v49, %v7524_v59 }
 0x317   : > { %v2150_v46 = vperm.slane %v2144_v7, %v7492_v22  ;;  %v3100_v29 = vsel %vm955_vm11, %v3099_v10, %v8436_v27  ;;  %v8669_v0 = vperm.slane %v2050_v63, %v7524_v59  ;;  %v2206_v45 = vsel %vm955_vm11, %v8554_v18, %v2205_v47  ;;  %v751_v63 = vpop.permute.xlu0 %750 }
 0x318   : > { %v8674_v4 = vperm.slane %v2204_v39, %v7524_v59  ;;  %v2132_v62 = vsel %vm955_vm11, %v2131_v6, %v10867_v36  ;;  %v8679_v41 = vperm.slane %v2216_v51, %v7524_v59  ;;  %v2191_v35 = vrot.slane %v2154_v44, 4 }
 0x319   : > { %v2142_v55 = vperm.slane %v2134_v32, %v7492_v22  ;;  %v3094_v27 = vperm.slane %v3088_v57, %v7492_v22  ;;  %v2218_v10 = vsel %vm955_vm11, %v8572_v56, %v2217_v19  ;;  %v3106_v18 = vperm.slane %v3100_v29, %v7492_v22 }
 0x31a   : > { %v3147_v61 = vrot.slane %v3118_v11, 4  ;;  %v3125_v21 = vrot.slane %v3082_v8, 4  ;;  %v8689_v1 = vperm.slane %v2038_v3, %v7524_v59  ;;  %v2067_v34 = vrot.slane %v8637_v23, 4 }
 0x31b   : > { %v2179_v50 = vrot.slane %v2150_v46, 4  ;;  %v2138_v24 = vperm.slane %v2132_v62, %v7492_v22  ;;  %v2059_v20 = vrot.slane %v8661_v54, 4  ;;  %v2071_v52 = vrot.slane %v8669_v0, 4 }
 0x31c   : > { %v8696_v56 = vperm.slane %v2206_v45, %v7524_v59  ;;  %v2227_v31 = vrot.slane %v8674_v4, 4  ;;  %v8700_v30 = vperm.slane %v2218_v10, %v7524_v59  ;;  %v2192_v9 = vsel %vm955_vm11, %v2191_v35, %v2142_v55 }
 0x31d   : > { %v2193_v33 = vrot.slane %v2142_v55, 4  ;;  %v3123_v2 = vrot.slane %v3094_v27, 4  ;;  %v2235_v49 = vrot.slane %v8679_v41, 4  ;;  %v3148_v17 = vsel %vm955_vm11, %v3147_v61, %v3106_v18  ;;  %v8733_v55 = vpop.permute.xlu2 %6553 }
 0x31e   : > { %v3126_v25 = vsel %vm955_vm11, %v3094_v27, %v3125_v21  ;;  %v3149_v58 = vrot.slane %v3106_v18, 4  ;;  %v2180_v5 = vsel %vm955_vm11, %v2179_v50, %v2138_v24  ;;  %v2181_v12 = vrot.slane %v2138_v24, 4 }
 0x31f   : > { %v3124_v42 = vsel %vm955_vm11, %v3123_v2, %v3082_v8  ;;  %v3154_v60 = vperm.slane %v3148_v17, %v7524_v59  ;;  %v2198_v47 = vperm.slane %v2192_v9, %v7524_v59  ;;  %v1963_v36 = vrot.slane %v727_v37, 4 }
 0x320   : > { %v3130_v53 = vperm.slane %v3124_v42, %v7524_v59  ;;  %v3150_v7 = vsel %vm955_vm11, %v3118_v11, %v3149_v58  ;;  %v2194_v43 = vsel %vm955_vm11, %v2154_v44, %v2193_v33  ;;  %v8714_v14 = vperm.slane %v3126_v25, %v7524_v59 }
 0x321   : > { %v3171_v6 = vrot.slane %v3154_v60, 4  ;;  %v8717_v39 = vperm.slane %v3150_v7, %v7524_v59  ;;  %v2239_v51 = vrot.slane %v8700_v30, 4  ;;  %v6531_v19 = vunpack.i.h.bf16 %v8685_v28 }
 0x322   : > { %v3173_v32 = vrot.slane %v3130_v53, 4  ;;  %v1975_v8 = vrot.slane %v751_v63, 4  ;;  %v2186_v57 = vperm.slane %v2180_v5, %v7524_v59  ;;  %v1966_v44 = vsel %vm955_vm11, %v727_v37, %v1965_v38 }
 0x323   : > { %v3172_v11 = vsel %vm955_vm11, %v3171_v6, %v3130_v53  ;;  %v3175_v3 = vrot.slane %v8717_v39, 4  ;;  %v6530_v29 = vunpack.i.l.bf16 %v8685_v28  ;;  %v2202_v45 = vperm.slane %v2194_v43, %v7524_v59 }
 0x324   : > { %6324 = vmatmul.msk.f32.gmra.mxu3 %vm3627_vm12, %v3172_v11  ;;  %v3174_v62 = vsel %vm955_vm11, %v3154_v60, %v3173_v32  ;;  %v1964_v35 = vsel %vm955_vm11, %v1963_v36, %v10866_v16  ;;  %v2182_v27 = vsel %vm955_vm11, %v2150_v46, %v2181_v12  ;;  %v2236_v10 = vsel %vm955_vm11, %v2235_v49, %v2198_v47 }
 0x325   : > { %6328 = vmatmul.msk.f32.gmra.mxu1 %vm3627_vm12, %v3174_v62  ;;  %v3176_v38 = vsel %vm955_vm11, %v3175_v3, %v8714_v14  ;;  %v3065_v18 = vrot.slane %v8612_v48, 4  ;;  %v2237_v61 = vrot.slane %v2198_v47, 4  ;;  %v1974_v21 = vperm.slane %v1966_v44, %v7492_v22  ;;  %v8777_v47 = vpop.permute.xlu1 %6533  ;;  %v8794_v3 = vpop.permute.xlu2 %6568 }
 0x326   : > { %6332 = vmatmul.msk.f32.gmra.mxu2 %vm3627_vm12, %v3176_v38  ;;  %v1976_v16 = vsel %vm955_vm11, %v1975_v8, %v8135_v40  ;;  %v1978_v46 = vsel %vm955_vm11, %v751_v63, %v1977_v15  ;;  %v2063_v50 = vrot.slane %v8689_v1, 4  ;;  %v2231_v24 = vrot.slane %v8696_v56, 4  ;;  %v8796_v44 = vpop.permute.xlu0 %6523 }
 0x327   : > { %v2229_v9 = vrot.slane %v2186_v57, 4  ;;  %v1970_v33 = vperm.slane %v1964_v35, %v7492_v22  ;;  %v2190_v48 = vperm.slane %v2182_v27, %v7524_v59  ;;  %v8753_v2 = vsel %vm955_vm11, %v2227_v31, %v2186_v57 }
 0x328   : > { %v2240_v37 = vsel %vm955_vm11, %v2239_v51, %v2202_v45  ;;  %v3066_v49 = vsel %vm955_vm11, %v8615_v26, %v3065_v18  ;;  %v2241_v40 = vrot.slane %v2202_v45, 4  ;;  %v3433_v17 = vrot.slane %v2236_v10, 4 }
 0x329   : > { %v1982_v15 = vperm.slane %v1976_v16, %v7492_v22  ;;  %v1986_v25 = vperm.slane %v1978_v46, %v7492_v22  ;;  %v8762_v58 = vrot.slane %v6531_v19, 4  ;;  %v8766_v5 = vrot.slane %v6530_v29, 4 }
 0x32a   : > { %v8770_v31 = vsel %vm955_vm11, %v8679_v41, %v2237_v61  ;;  %v2025_v12 = vrot.slane %v1974_v21, 4  ;;  %v8774_v26 = vsel %vm955_vm11, %v8674_v4, %v2229_v9  ;;  %v3409_v42 = vrot.slane %v8753_v2, 4 }
 0x32b   : > { %v3431_v60 = vrot.slane %v2240_v37, 4  ;;  %v2013_v63 = vrot.slane %v1970_v33, 4  ;;  %v8780_v53 = vsel %vm955_vm11, %v2231_v24, %v2190_v48  ;;  %v2233_v7 = vrot.slane %v2190_v48, 4 }
 0x32c   : > { %v6556_v36 = vunpack.i.h.bf16 %v8733_v55  ;;  %v6555_v41 = vunpack.i.l.bf16 %v8733_v55  ;;  %6335 = vmatmul.msk.f32.vlgmr.msra.gmra.mxu3 %vm3627_vm12, %v3066_v49  ;;  %v8787_v4 = vsel %vm955_vm11, %v8700_v30, %v2241_v40  ;;  %v3434_v43 = vsel %vm955_vm11, %v2240_v37, %v3433_v17 }
 0x32d   : > { %v2011_v6 = vrot.slane %v1982_v15, 4  ;;  %v2023_v51 = vrot.slane %v1986_v25, 4  ;;  %v3421_v32 = vrot.slane %v8774_v26, 4  ;;  %v3445_v8 = vrot.slane %v8770_v31, 4 }
 0x32e   : > { %v2026_v57 = vsel %vm955_vm11, %v1986_v25, %v2025_v12  ;;  %v6536_v11 = vunpack.i.h.bf16 %v8777_v47  ;;  %v8799_v45 = vsel %vm955_vm11, %v3431_v60, %v2236_v10  ;;  %v2014_v30 = vsel %vm955_vm11, %v1982_v15, %v2013_v63 }
 0x32f   : > { %v6535_v62 = vunpack.i.l.bf16 %v8777_v47  ;;  %v3177_v35 = vrot.slane %v8714_v14, 4  ;;  %v8805_v27 = vperm.slane %v3434_v43, %v7492_v22  ;;  %v8810_v18 = vrot.slane %v6556_v36, 4 }
 0x330   : > { %v8814_v61 = vrot.slane %v6555_v41, 4  ;;  %v2012_v10 = vsel %vm955_vm11, %v2011_v6, %v1970_v33  ;;  %v2024_v16 = vsel %vm955_vm11, %v2023_v51, %v1974_v21  ;;  %v2034_v46 = vperm.slane %v2026_v57, %v7524_v59 }
 0x331   : > { %v10806_v14 = vunpack.i.h.bf16 %v8794_v3  ;;  %v8821_v24 = vperm.slane %v2014_v30, %v7524_v59  ;;  %v1067_v9 = vrot.slane %v6536_v11, 4  ;;  %v10805_v48 = vunpack.i.l.bf16 %v8794_v3 }
 0x332   : > { %v3410_v37 = vsel %vm955_vm11, %v8780_v53, %v3409_v42  ;;  %v1235_v33 = vrot.slane %v6535_v62, 4  ;;  %v3178_v21 = vsel %vm955_vm11, %v8717_v39, %v3177_v35  ;;  %v8834_v49 = vsel %vm955_vm11, %v8696_v56, %v2233_v7 }
 0x333   : > { %v3418_v40 = vperm.slane %v3410_v37, %v7492_v22  ;;  %v8838_v17 = vperm.slane %v2012_v10, %v7524_v59  ;;  %v2030_v15 = vperm.slane %v2024_v16, %v7524_v59  ;;  %v3422_v25 = vsel %vm955_vm11, %v8834_v49, %v3421_v32  ;;  %v8876_v10 = vpop.permute.xlu0 %6538 }
 0x334   : > { %6336 = vmatmul.msk.f32.gmra.mxu3 %vm3627_vm12, %v3178_v21  ;;  %v3446_v12 = vsel %vm955_vm11, %v8787_v4, %v3445_v8  ;;  %v2073_v39 = vrot.slane %v2034_v46, 4  ;;  %v3430_v42 = vperm.slane %v3422_v25, %v7492_v22  ;;  %v2072_v63 = vsel %vm955_vm11, %v2071_v52, %v2034_v46  ;;  %v6544_v25 = vpop.permute.xlu1 %6543 }
 0x335   : > { %v3454_v56 = vperm.slane %v3446_v12, %v7492_v22  ;;  %v3469_v60 = vrot.slane %v3418_v40, 4  ;;  %v8853_v7 = vrot.slane %v10806_v14, 4  ;;  %v6526_v43 = vunpack.i.h.bf16 %v8796_v44 }
 0x336   : > { %v3493_v6 = vrot.slane %v8805_v27, 4  ;;  %v8861_v51 = vsel %vm955_vm11, %v2063_v50, %v8821_v24  ;;  %v6525_v8 = vunpack.i.l.bf16 %v8796_v44  ;;  %v8870_v57 = vsel %vm955_vm11, %v2059_v20, %v8838_v17 }
 0x337   : > { %v3470_v52 = vsel %vm955_vm11, %v3430_v42, %v3469_v60  ;;  %v2068_v30 = vsel %vm955_vm11, %v2067_v34, %v2030_v15  ;;  %v2069_v35 = vrot.slane %v2030_v15, 4  ;;  %v8880_v44 = vsel %vm955_vm11, %v8669_v0, %v2073_v39 }
 0x338   : > { %v3494_v50 = vsel %vm955_vm11, %v3454_v56, %v3493_v6  ;;  %v3319_v16 = vrot.slane %v2072_v63, 4  ;;  %v8883_v46 = vperm.slane %v3470_v52, %v7524_v59  ;;  %v8892_v21 = vrot.slane %v10805_v48, 4 }
 0x339   : > { %v8886_v20 = vperm.slane %v3494_v50, %v7524_v59  ;;  %v1069_v15 = vrot.slane %v6526_v43, 4  ;;  %v3321_v12 = vrot.slane %v2068_v30, 4  ;;  %v1237_v0 = vrot.slane %v6525_v8, 4 }
 0x33a   : > { %v6541_v60 = vunpack.i.h.bf16 %v8876_v10  ;;  %v8898_v6 = vsel %vm955_vm11, %v8637_v23, %v2069_v35  ;;  %v1068_v38 = vsel %vm955_vm11, %v1067_v9, %v6526_v43  ;;  %v3320_v48 = vsel %vm955_vm11, %v3319_v16, %v2068_v30 }
 0x33b   : > { %v3515_v39 = vrot.slane %v8886_v20, 4  ;;  %v1236_v14 = vsel %vm955_vm11, %v1235_v33, %v6525_v8  ;;  %v6546_v32 = vunpack.i.h.bf16 %v6544_v25  ;;  %v1070_v37 = vsel %vm955_vm11, %v6536_v11, %v1069_v15 }
 0x33c   : > { %v6545_v23 = vunpack.i.l.bf16 %v6544_v25  ;;  %v3467_v35 = vrot.slane %v3430_v42, 4  ;;  %v3491_v52 = vrot.slane %v3454_v56, 4  ;;  %v3322_v50 = vsel %vm955_vm11, %v2072_v63, %v3321_v12 }
 0x33d   : > { %v3516_v34 = vsel %vm955_vm11, %v3515_v39, %v8883_v46  ;;  %v8913_v9 = vperm.slane %v1068_v38, %v7492_v22  ;;  %v1238_v33 = vsel %vm955_vm11, %v6535_v62, %v1237_v0  ;;  %v1079_v43 = vrot.slane %v6541_v60, 4 }
 0x33e   : > { %6345 = vmatpush.xpose.msk.msrb.mxu2 %vm3627_vm12, %v3516_v34  ;;  %v1082_v8 = vsel %vm955_vm11, %v6541_v60, %v8762_v58  ;;  %v6540_v11 = vunpack.i.l.bf16 %v8876_v10  ;;  %v3468_v30 = vsel %vm955_vm11, %v3467_v35, %v3418_v40  ;;  %v3492_v42 = vsel %vm955_vm11, %v3491_v52, %v8805_v27 }
 0x33f   : > { %v1078_v56 = vperm.slane %v1070_v37, %v7492_v22  ;;  %v8926_v38 = vperm.slane %v1236_v14, %v7492_v22  ;;  %v1405_v63 = vrot.slane %v6546_v32, 4  ;;  %v1404_v47 = vsel %vm955_vm11, %v8810_v18, %v6546_v32 }
 0x340   : > { %v3333_v62 = vrot.slane %v8898_v6, 4  ;;  %v8932_v58 = vperm.slane %v1238_v33, %v7492_v22  ;;  %v1572_v40 = vsel %vm955_vm11, %v8814_v61, %v6545_v23  ;;  %v1573_v10 = vrot.slane %v6545_v23, 4 }
 0x341   : > { %v1080_v27 = vsel %vm955_vm11, %v1079_v43, %v6531_v19  ;;  %v1090_v14 = vperm.slane %v1082_v8, %v7492_v22  ;;  %v3474_v16 = vperm.slane %v3468_v30, %v7524_v59  ;;  %v3498_v37 = vperm.slane %v3492_v42, %v7524_v59 }
 0x342   : > { %v8943_v18 = vperm.slane %v3320_v48, %v7492_v22  ;;  %v8946_v32 = vperm.slane %v3322_v50, %v7492_v22  ;;  %v8949_v34 = vperm.slane %v1404_v47, %v7492_v22  ;;  %v1247_v61 = vrot.slane %v6540_v11, 4 }
 0x343   : > { %v1093_v15 = vrot.slane %v8913_v9, 4  ;;  %v1105_v25 = vrot.slane %v1078_v56, 4  ;;  %v1261_v19 = vrot.slane %v8926_v38, 4  ;;  %v1406_v12 = vsel %vm955_vm11, %v6556_v36, %v1405_v63 }
 0x344   : > { %v1273_v0 = vrot.slane %v8932_v58, 4  ;;  %v1574_v48 = vsel %vm955_vm11, %v6555_v41, %v1573_v10  ;;  %v8961_v39 = vperm.slane %v1572_v40, %v7492_v22  ;;  %v1086_v60 = vperm.slane %v1080_v27, %v7492_v22 }
 0x345   : > { %v1103_v52 = vrot.slane %v1090_v14, 4  ;;  %v1106_v50 = vsel %vm955_vm11, %v1090_v14, %v1105_v25  ;;  %v3511_v23 = vrot.slane %v3498_v37, 4  ;;  %v3513_v35 = vrot.slane %v3474_v16, 4 }
 0x346   : > { %v8966_v33 = vperm.slane %v1406_v12, %v7492_v22  ;;  %v1429_v36 = vrot.slane %v8949_v34, 4  ;;  %v1248_v55 = vsel %vm955_vm11, %v1247_v61, %v6530_v29  ;;  %v1250_v41 = vsel %vm955_vm11, %v6540_v11, %v8766_v5 }
 0x347   : > { %v3512_v43 = vsel %vm955_vm11, %v3511_v23, %v3474_v16  ;;  %v3517_v8 = vrot.slane %v8883_v46, 4  ;;  %v3514_v30 = vsel %vm955_vm11, %v3498_v37, %v3513_v35  ;;  %v10868_v42 = vrot.slane %v8838_v17, 4 }
 0x348   : > { %v8982_v47 = vperm.slane %v1574_v48, %v7492_v22  ;;  %v1091_v28 = vrot.slane %v1086_v60, 4  ;;  %v8985_v29 = vsel %vm955_vm11, %v1086_v60, %v1093_v15  ;;  %v1114_v5 = vperm.slane %v1106_v50, %v7524_v59  ;;  %6337 = vmatpush.xpose.msk.msrb.mxu0 %vm3627_vm12, %v3512_v43  ;;  %6341 = vmatpush.xpose.msk.msrb.mxu1 %vm3627_vm12, %v3514_v30  ;;  %v9020_v48 = vpop.permute.xlu1 %6573 }
 0x349   : > { %v2062_v63 = vsel %vm955_vm11, %v8661_v54, %v10868_v42  ;;  %v1104_v46 = vsel %vm955_vm11, %v1103_v52, %v1078_v56  ;;  %v8992_v17 = vperm.slane %v1248_v55, %v7492_v22  ;;  %v3518_v54 = vsel %vm955_vm11, %v8886_v20, %v3517_v8 }
 0x34a   : > { %v10869_v11 = vrot.slane %v8821_v24, 4  ;;  %v9001_v10 = vperm.slane %v1250_v41, %v7492_v22  ;;  %6349 = vmatpush.xpose.msk.msrb.mxu3 %vm3627_vm12, %v3518_v54  ;;  %v10870_v27 = vrot.slane %v8870_v57, 4  ;;  %v3309_v14 = vrot.slane %v2062_v63, 4 }
 0x34b   : > { %v3334_v16 = vsel %vm955_vm11, %v8880_v44, %v3333_v62  ;;  %v1597_v20 = vrot.slane %v8961_v39, 4  ;;  %v3381_v37 = vrot.slane %v8946_v32, 4  ;;  %v1102_v61 = vperm.slane %v8985_v29, %v7524_v59 }
 0x34c   : > { %v2066_v40 = vsel %vm955_vm11, %v8689_v1, %v10869_v11  ;;  %v3298_v56 = vsel %vm955_vm11, %v8861_v51, %v10870_v27  ;;  %v3342_v1 = vperm.slane %v3334_v16, %v7492_v22  ;;  %v9017_v15 = vperm.slane %v1104_v46, %v7524_v59  ;;  %v9053_v27 = vpop.permute.xlu0 %6548 }
 0x34d   : > { %v3306_v24 = vperm.slane %v3298_v56, %v7492_v22  ;;  %v3307_v25 = vrot.slane %v2066_v40, 4  ;;  %v3310_v12 = vsel %vm955_vm11, %v2066_v40, %v3309_v14  ;;  %v9022_v62 = vrot.slane %v1114_v5, 4 }
 0x34e   : > { %v3318_v60 = vperm.slane %v3310_v12, %v7492_v22  ;;  %v3382_v50 = vsel %vm955_vm11, %v3342_v1, %v3381_v37  ;;  %v9028_v23 = vsel %vm955_vm11, %v1091_v28, %v8913_v9  ;;  %v9032_v35 = vsel %vm955_vm11, %v8992_v17, %v1261_v19 }
 0x34f   : > { %v3357_v52 = vrot.slane %v3306_v24, 4  ;;  %v1271_v55 = vrot.slane %v9001_v10, 4  ;;  %v3390_v41 = vperm.slane %v3382_v50, %v7524_v59  ;;  %v3379_v30 = vrot.slane %v3342_v1, 4 }
 0x350   : > { %v3355_v8 = vrot.slane %v3318_v60, 4  ;;  %v10871_v42 = vrot.slane %v8861_v51, 4  ;;  %v3308_v19 = vsel %vm955_vm11, %v3307_v25, %v2062_v63  ;;  %v10872_v40 = vrot.slane %v8880_v44, 4 }
 0x351   : > { %v3358_v43 = vsel %vm955_vm11, %v3318_v60, %v3357_v52  ;;  %v3403_v28 = vrot.slane %v3390_v41, 4  ;;  %v3380_v54 = vsel %vm955_vm11, %v3379_v30, %v8946_v32  ;;  %v3314_v11 = vperm.slane %v3308_v19, %v7492_v22 }
 0x352   : > { %v3296_v29 = vsel %vm955_vm11, %v10871_v42, %v8870_v57  ;;  %v3366_v9 = vperm.slane %v3358_v43, %v7524_v59  ;;  %v3356_v46 = vsel %vm955_vm11, %v3355_v8, %v3306_v24  ;;  %v3332_v51 = vsel %vm955_vm11, %v10872_v40, %v8898_v6 }
 0x353   : > { %v3302_v5 = vperm.slane %v3296_v29, %v7492_v22  ;;  %v3362_v56 = vperm.slane %v3356_v46, %v7524_v59  ;;  %v3386_v63 = vperm.slane %v3380_v54, %v7524_v59  ;;  %v3338_v32 = vperm.slane %v3332_v51, %v7492_v22 }
 0x354   : > { %v3404_v57 = vsel %vm955_vm11, %v3403_v28, %v3366_v9  ;;  %v3405_v14 = vrot.slane %v3366_v9, 4  ;;  %v3369_v24 = vrot.slane %v8943_v18, 4  ;;  %v3343_v1 = vrot.slane %v3314_v11, 4 }
 0x355   : > { %6346 = vmatpush.xpose.msk.msrb.mxu2 %vm3627_vm12, %v3404_v57  ;;  %v3345_v16 = vrot.slane %v3302_v5, 4  ;;  %v1274_v44 = vsel %vm955_vm11, %v9001_v10, %v1273_v0  ;;  %v3399_v6 = vrot.slane %v3386_v63, 4  ;;  %v3401_v25 = vrot.slane %v3362_v56, 4  ;;  %v6579_v10 = vpop.permute.xlu1 %6578 }
 0x356   : > { %v3406_v37 = vsel %vm955_vm11, %v3390_v41, %v3405_v14  ;;  %v3370_v60 = vsel %vm955_vm11, %v3338_v32, %v3369_v24  ;;  %v3344_v52 = vsel %vm955_vm11, %v3343_v1, %v3302_v5  ;;  %v3367_v50 = vrot.slane %v3338_v32, 4  ;;  %v6559_v24 = vpop.permute.xlu0 %6558 }
 0x357   : > { %6350 = vmatpush.xpose.msk.msrb.mxu3 %vm3627_vm12, %v3406_v37  ;;  %v3346_v12 = vsel %vm955_vm11, %v3314_v11, %v3345_v16  ;;  %v3400_v43 = vsel %vm955_vm11, %v3399_v6, %v3362_v56  ;;  %v3378_v30 = vperm.slane %v3370_v60, %v7524_v59  ;;  %v3402_v0 = vsel %vm955_vm11, %v3386_v63, %v3401_v25 }
 0x358   : > { %v3354_v8 = vperm.slane %v3346_v12, %v7524_v59  ;;  %v1259_v41 = vrot.slane %v8992_v17, 4  ;;  %v1270_v42 = vperm.slane %v9032_v35, %v7524_v59  ;;  %6338 = vmatpush.xpose.msk.msrb.mxu0 %vm3627_vm12, %v3400_v43  ;;  %6342 = vmatpush.xpose.msk.msrb.mxu1 %vm3627_vm12, %v3402_v0  ;;  %v3350_v29 = vperm.slane %v3344_v52, %v7524_v59 }
 0x359   : > { %v3368_v9 = vsel %vm955_vm11, %v3367_v50, %v8943_v18  ;;  %v1282_v28 = vperm.slane %v1274_v44, %v7524_v59  ;;  %v3395_v5 = vrot.slane %v3378_v30, 4  ;;  %v9083_v54 = vrot.slane %v1102_v61, 4 }
 0x35a   : > { %v3374_v19 = vperm.slane %v3368_v9, %v7524_v59  ;;  %v3397_v46 = vrot.slane %v3354_v8, 4  ;;  %v1272_v17 = vsel %vm955_vm11, %v1271_v55, %v8932_v58  ;;  %v3393_v35 = vrot.slane %v3350_v29, 4 }
 0x35b   : > { %v6581_v11 = vunpack.i.h.bf16 %v6579_v10  ;;  %v3396_v40 = vsel %vm955_vm11, %v3395_v5, %v3354_v8  ;;  %v6580_v56 = vunpack.i.l.bf16 %v6579_v10  ;;  %v1441_v18 = vrot.slane %v8966_v33, 4 }
 0x35c   : > { %v3391_v51 = vrot.slane %v3374_v19, 4  ;;  %v3398_v57 = vsel %vm955_vm11, %v3378_v30, %v3397_v46  ;;  %v1609_v63 = vrot.slane %v8982_v47, 4  ;;  %v1260_v14 = vsel %vm955_vm11, %v1259_v41, %v8926_v38  ;;  %6347 = vmatmul.msk.f32.vlgmr.msrb.gmra.mxu2 %vm3627_vm12, %v3396_v40 }
 0x35d   : > { %6351 = vmatmul.msk.f32.vlgmr.msrb.gmra.mxu3 %vm3627_vm12, %v3398_v57  ;;  %v3394_v58 = vsel %vm955_vm11, %v3374_v19, %v3393_v35  ;;  %v9097_v61 = vperm.slane %v1272_v17, %v7524_v59  ;;  %v9099_v55 = vrot.slane %v1270_v42, 4  ;;  %v1289_v32 = vrot.slane %v1282_v28, 4 }
 0x35e   : > { %v3392_v16 = vsel %vm955_vm11, %v3391_v51, %v3350_v29  ;;  %6343 = vmatmul.msk.f32.vlgmr.msrb.gmra.mxu1 %vm3627_vm12, %v3394_v58  ;;  %v9105_v38 = vperm.slane %v9028_v23, %v7524_v59  ;;  %v1119_v1 = vrot.slane %v9017_v15, 4  ;;  %v6551_v44 = vunpack.i.h.bf16 %v9053_v27 }
 0x35f   : > { %6339 = vmatmul.msk.f32.vlgmr.msrb.gmra.mxu0 %vm3627_vm12, %v3392_v16  ;;  %v1751_v6 = vrot.slane %v6581_v11, 4  ;;  %v9112_v37 = vsel %vm955_vm11, 0.0, %v9083_v54  ;;  %v9116_v25 = vsel %vm955_vm11, 0.0, %v9022_v62  ;;  %v1919_v12 = vrot.slane %v6580_v56, 4 }
 0x360   : > { %v3407_v60 = vrot.slane %v8780_v53, 4  ;;  %v9120_v23 = vperm.slane %v1260_v14, %v7524_v59  ;;  %v6550_v52 = vunpack.i.l.bf16 %v9053_v27  ;;  %v6561_v50 = vunpack.i.h.bf16 %v6559_v24 }
 0x361   : > { %v3419_v43 = vrot.slane %v8834_v49, 4  ;;  %v9126_v8 = vsel %vm955_vm11, 0.0, %v9099_v55  ;;  %v1287_v30 = vrot.slane %v9097_v61, 4  ;;  %v9130_v0 = vsel %vm955_vm11, 0.0, %v1289_v32 }
 0x362   : > { %v2588_v53 = vsel %vm955_vm11, %v1289_v32, %v9097_v61  ;;  %v1417_v10 = vrot.slane %v6551_v44, 4  ;;  %v10873_v41 = vunpack.i.h.bf16 %v8794_v3  ;;  %v1754_v49 = vsel %vm955_vm11, %v6581_v11, %v8853_v7 }
 0x363   : > { %v6560_v42 = vunpack.i.l.bf16 %v6559_v24  ;;  %v6576_v29 = vunpack.i.h.bf16 %v9020_v48  ;;  %v6575_v9 = vunpack.i.l.bf16 %v9020_v48  ;;  %v10874_v28 = vunpack.i.l.bf16 %v8794_v3 }
 0x364   : > { %v1752_v27 = vsel %vm955_vm11, %v1751_v6, %v10873_v41  ;;  %v3408_v19 = vsel %vm955_vm11, %v3407_v60, %v8753_v2  ;;  %v1585_v46 = vrot.slane %v6550_v52, 4  ;;  %v1922_v17 = vsel %vm955_vm11, %v6580_v56, %v8892_v21 }
 0x365   : > { %v1920_v5 = vsel %vm955_vm11, %v1919_v12, %v10874_v28  ;;  %v1418_v35 = vsel %vm955_vm11, %v6561_v50, %v1417_v10  ;;  %v3420_v7 = vsel %vm955_vm11, %v3419_v43, %v8774_v26  ;;  %v9152_v11 = vperm.slane %v1752_v27, %v7492_v22 }
 0x366   : > { %v9155_v40 = vperm.slane %v1754_v49, %v7492_v22  ;;  %v1415_v3 = vrot.slane %v6561_v50, 4  ;;  %v10875_v51 = vrot.slane %v8787_v4, 4  ;;  %v9162_v57 = vperm.slane %v1920_v5, %v7492_v22 }
 0x367   : > { %v1583_v21 = vrot.slane %v6560_v42, 4  ;;  %v3414_v56 = vperm.slane %v3408_v19, %v7492_v22  ;;  %v3438_v26 = vperm.slane %v8799_v45, %v7492_v22  ;;  %v2582_v14 = vrot.slane %v9126_v8, 4 }
 0x368   : > { %v3444_v2 = vsel %vm955_vm11, %v10875_v51, %v8770_v31  ;;  %v9169_v58 = vperm.slane %v1922_v17, %v7492_v22  ;;  %v9172_v61 = vperm.slane %v1418_v35, %v7492_v22  ;;  %v3426_v4 = vperm.slane %v3420_v7, %v7492_v22 }
 0x369   : > { %v2593_v31 = vrot.slane %v9130_v0, 4  ;;  %v9178_v32 = vrot.slane %v6576_v29, 4  ;;  %v1586_v16 = vsel %vm955_vm11, %v6560_v42, %v1585_v46  ;;  %v3450_v45 = vperm.slane %v3444_v2, %v7492_v22 }
 0x36a   : > { %v9184_v24 = vrot.slane %v6575_v9, 4  ;;  %v1763_v6 = vrot.slane %v9152_v11, 4  ;;  %v1775_v12 = vrot.slane %v9155_v40, 4  ;;  %v1416_v60 = vsel %vm955_vm11, %v1415_v3, %v6551_v44 }
 0x36b   : > { %v1931_v50 = vrot.slane %v9162_v57, 4  ;;  %v1584_v43 = vsel %vm955_vm11, %v1583_v21, %v6550_v52  ;;  %v3457_v8 = vrot.slane %v3414_v56, 4  ;;  %v3481_v0 = vrot.slane %v3438_v26, 4 }
 0x36c   : > { %v1943_v10 = vrot.slane %v9169_v58, 4  ;;  %v9196_v41 = vsel %vm955_vm11, %v9172_v61, %v1441_v18  ;;  %v9199_v27 = vperm.slane %v1586_v16, %v7492_v22  ;;  %v3455_v49 = vrot.slane %v3426_v4, 4 }
 0x36d   : > { %v9202_v44 = vperm.slane %v1416_v60, %v7492_v22  ;;  %v3458_v42 = vsel %vm955_vm11, %v3426_v4, %v3457_v8  ;;  %v3482_v52 = vsel %vm955_vm11, %v3450_v45, %v3481_v0  ;;  %v3479_v28 = vrot.slane %v3450_v45, 4 }
 0x36e   : > { %v1439_v5 = vrot.slane %v9172_v61, 4  ;;  %v9208_v19 = vperm.slane %v1584_v43, %v7492_v22  ;;  %v3466_v18 = vperm.slane %v3458_v42, %v7524_v59  ;;  %v3490_v46 = vperm.slane %v3482_v52, %v7524_v59 }
 0x36f   : > { %v1450_v17 = vperm.slane %v9196_v41, %v7524_v59  ;;  %v3456_v35 = vsel %vm955_vm11, %v3455_v49, %v3414_v56  ;;  %v3480_v7 = vsel %vm955_vm11, %v3479_v28, %v3438_v26  ;;  %v1283_v3 = vrot.slane %v9120_v23, 4  ;;  %v6564_v49 = vpop.permute.xlu0 %6563 }
 0x370   : > { %v3507_v51 = vrot.slane %v3490_v46, 4  ;;  %v3462_v2 = vperm.slane %v3456_v35, %v7524_v59  ;;  %v3486_v21 = vperm.slane %v3480_v7, %v7524_v59  ;;  %v3509_v4 = vrot.slane %v3466_v18, 4 }
 0x371   : > { %v1284_v16 = vsel %vm955_vm11, 0.0, %v1283_v3  ;;  %v1288_v45 = vsel %vm955_vm11, 0.0, %v1287_v30  ;;  %v2577_v60 = vsel %vm955_vm11, %v9099_v55, %v9120_v23  ;;  %v9225_v56 = vperm.slane %v2588_v53, %v7492_v22 }
 0x372   : > { %v3508_v26 = vsel %vm955_vm11, %v3507_v51, %v3466_v18  ;;  %v3503_v43 = vrot.slane %v3486_v21, 4  ;;  %v3510_v8 = vsel %vm955_vm11, %v3490_v46, %v3509_v4  ;;  %v3505_v0 = vrot.slane %v3462_v2, 4 }
 0x373   : > { %6348 = vmatmul.msk.f32.gmra.mxu2 %vm3627_vm12, %v3508_v26  ;;  %6352 = vmatmul.msk.f32.gmra.mxu3 %vm3627_vm12, %v3510_v8  ;;  %v2581_v30 = vperm.slane %v2577_v60, %v7492_v22  ;;  %v2583_v42 = vsel %vm955_vm11, %v2582_v14, %v1284_v16  ;;  %v2594_v55 = vsel %vm955_vm11, %v2593_v31, %v1288_v45  ;;  %v2613_v23 = vrot.slane %v9225_v56, 4 }
 0x374   : > { %v3504_v53 = vsel %vm955_vm11, %v3503_v43, %v3462_v2  ;;  %v3506_v52 = vsel %vm955_vm11, %v3486_v21, %v3505_v0  ;;  %v2587_v28 = vperm.slane %v2583_v42, %v7492_v22  ;;  %v2598_v18 = vperm.slane %v2594_v55, %v7492_v22 }
 0x375   : > { %v1607_v46 = vrot.slane %v9199_v27, 4  ;;  %6340 = vmatmul.msk.f32.gmra.mxu0 %vm3627_vm12, %v3504_v53  ;;  %6344 = vmatmul.msk.f32.gmra.mxu1 %vm3627_vm12, %v3506_v52  ;;  %v2601_v35 = vrot.slane %v2581_v30, 4  ;;  %v6566_v14 = vunpack.i.h.bf16 %v6564_v49  ;;  %v6565_v7 = vunpack.i.l.bf16 %v6564_v49  ;;  %v9301_v53 = vpop.f32.mrf.mxu1 }
 0x376   : > { %v1427_v31 = vrot.slane %v9202_v44, 4  ;;  %v9247_v3 = vsel %vm955_vm11, %v9202_v44, %v1429_v36  ;;  %v1610_v51 = vsel %vm955_vm11, %v9199_v27, %v1609_v63  ;;  %v2614_v2 = vsel %vm955_vm11, %v2598_v18, %v2613_v23 }
 0x377   : > { %v2602_v21 = vsel %vm955_vm11, %v2587_v28, %v2601_v35  ;;  %v9256_v4 = vperm.slane %v2614_v2, %v7524_v59  ;;  %v1740_v16 = vsel %vm955_vm11, %v9178_v32, %v6566_v14  ;;  %v1741_v45 = vrot.slane %v6566_v14, 4 }
 0x378   : > { %v9261_v60 = vperm.slane %v2602_v21, %v7524_v59  ;;  %v1746_v36 = vperm.slane %v1740_v16, %v7492_v22  ;;  %v1908_v44 = vsel %vm955_vm11, %v9184_v24, %v6565_v7  ;;  %v1909_v63 = vrot.slane %v6565_v7, 4 }
 0x379   : > { %v1598_v27 = vsel %vm955_vm11, %v9208_v19, %v1597_v20  ;;  %v2627_v26 = vrot.slane %v9256_v4, 4  ;;  %v1742_v32 = vsel %vm955_vm11, %v6576_v29, %v1741_v45  ;;  %v1914_v43 = vperm.slane %v1908_v44, %v7492_v22 }
 0x37a   : > { %v1750_v8 = vperm.slane %v1742_v32, %v7492_v22  ;;  %v9279_v24 = vsel %vm955_vm11, %v1763_v6, %v1746_v36  ;;  %v1765_v0 = vrot.slane %v1746_v36, 4  ;;  %v1910_v20 = vsel %vm955_vm11, %v6575_v9, %v1909_v63 }
 0x37b   : > { %v2628_v49 = vsel %vm955_vm11, %v2627_v26, %v9261_v60  ;;  %v1918_v42 = vperm.slane %v1910_v20, %v7492_v22  ;;  %v9290_v29 = vsel %vm955_vm11, %v1931_v50, %v1914_v43  ;;  %v2599_v55 = vrot.slane %v2587_v28, 4 }
 0x37c   : > { %4659 = vmatpush.msra.mxu2 %v2628_v49  ;;  %v9294_v6 = vsel %vm955_vm11, %v9152_v11, %v1765_v0  ;;  %v9299_v48 = vsel %vm955_vm11, %v1775_v12, %v1750_v8  ;;  %v1777_v9 = vrot.slane %v1750_v8, 4  ;;  %v1933_v23 = vrot.slane %v1914_v43, 4 }
 0x37d   : > { %v1440_v50 = vsel %vm955_vm11, %v1439_v5, %v8966_v33  ;;  %v1595_v52 = vrot.slane %v9208_v19, 4  ;;  %v1606_v28 = vperm.slane %v1598_v27, %v7524_v59  ;;  %v2611_v11 = vrot.slane %v2598_v18, 4  ;;  %v9371_v32 = vpop.f32.mrf.mxu1 }
 0x37e   : > { %v9311_v35 = vsel %vm955_vm11, %v9155_v40, %v1777_v9  ;;  %v9315_v12 = vsel %vm955_vm11, %v9162_v57, %v1933_v23  ;;  %v9320_v14 = vsel %vm955_vm11, %v1943_v10, %v1918_v42  ;;  %v1945_v61 = vrot.slane %v1918_v42, 4 }
 0x37f   : > { %v2539_v33 = vrot.slane %v9116_v25, 4  ;;  %v1428_v5 = vsel %vm955_vm11, %v1427_v31, %v8949_v34  ;;  %v1608_v19 = vsel %vm955_vm11, %v1607_v46, %v8982_v47  ;;  %v1115_v40 = vrot.slane %v9105_v38, 4 }
 0x380   : > { %v1438_v57 = vperm.slane %v9247_v3, %v7524_v59  ;;  %v1618_v18 = vperm.slane %v1610_v51, %v7524_v59  ;;  %v9333_v10 = vsel %vm955_vm11, %v9169_v58, %v1945_v61  ;;  %v2600_v7 = vsel %vm955_vm11, %v2599_v55, %v2581_v30 }
 0x381   : > { %v9337_v25 = vperm.slane %v1440_v50, %v7524_v59  ;;  %v9342_v34 = vrot.slane %v1450_v17, 4  ;;  %v1621_v47 = vrot.slane %v1606_v28, 4  ;;  %v2612_v46 = vsel %vm955_vm11, %v2611_v11, %v9225_v56 }
 0x382   : > { %v9347_v31 = vperm.slane %v1428_v5, %v7524_v59  ;;  %v1596_v58 = vsel %vm955_vm11, %v1595_v52, %v8961_v39  ;;  %v1614_v30 = vperm.slane %v1608_v19, %v7524_v59  ;;  %v1120_v51 = vsel %vm955_vm11, 0.0, %v1119_v1  ;;  %v9388_v19 = vpop.f32.mrf.mxu3 }
 0x383   : > { %v2606_v41 = vperm.slane %v2600_v7, %v7524_v59  ;;  %v2618_v17 = vperm.slane %v2612_v46, %v7524_v59  ;;  %v1116_v2 = vsel %vm955_vm11, 0.0, %v1115_v40  ;;  %v2523_v56 = vsel %vm955_vm11, %v9083_v54, %v9105_v38 }
 0x384   : > { %v1625_v21 = vrot.slane %v1618_v18, 4  ;;  %v2527_v16 = vperm.slane %v2523_v56, %v7492_v22  ;;  %v2528_v39 = vrot.slane %v9112_v37, 4  ;;  %v2534_v45 = vsel %vm955_vm11, %v9022_v62, %v9017_v15 }
 0x385   : > { %v1602_v1 = vperm.slane %v1596_v58, %v7524_v59  ;;  %v1622_v36 = vsel %vm955_vm11, 0.0, %v1621_v47  ;;  %v2623_v44 = vrot.slane %v2618_v17, 4  ;;  %v2538_v63 = vperm.slane %v2534_v45, %v7492_v22 }
 0x386   : > { %v1623_v27 = vrot.slane %v1614_v30, 4  ;;  %v2529_v26 = vsel %vm955_vm11, %v2528_v39, %v1116_v2  ;;  %v2540_v54 = vsel %vm955_vm11, %v2539_v33, %v1120_v51  ;;  %v2547_v38 = vrot.slane %v2527_v16, 4 }
 0x387   : > { %v2624_v37 = vsel %vm955_vm11, %v2623_v44, %v2606_v41  ;;  %v2533_v43 = vperm.slane %v2529_v26, %v7492_v22  ;;  %v2544_v15 = vperm.slane %v2540_v54, %v7492_v22  ;;  %v2559_v62 = vrot.slane %v2538_v63, 4 }
 0x388   : > { %v1626_v8 = vsel %vm955_vm11, 0.0, %v1625_v21  ;;  %v2920_v0 = vsel %vm955_vm11, %v1625_v21, %v1614_v30  ;;  %4601 = vmatpush.msra.mxu0 %v2624_v37  ;;  %v2629_v20 = vrot.slane %v9261_v60, 4  ;;  %v2625_v49 = vrot.slane %v2606_v41, 4 }
 0x389   : > { %v2548_v42 = vsel %vm955_vm11, %v2533_v43, %v2547_v38  ;;  %v2560_v55 = vsel %vm955_vm11, %v2544_v15, %v2559_v62  ;;  %v2545_v9 = vrot.slane %v2533_v43, 4  ;;  %v2557_v23 = vrot.slane %v2544_v15, 4 }
 0x38a   : > { %v2556_v50 = vperm.slane %v2548_v42, %v7524_v59  ;;  %v2568_v52 = vperm.slane %v2560_v55, %v7524_v59  ;;  %v2630_v28 = vsel %vm955_vm11, %v9256_v4, %v2629_v20  ;;  %v2626_v11 = vsel %vm955_vm11, %v2618_v17, %v2625_v49 }
 0x38b   : > { %v2914_v61 = vrot.slane %v1622_v36, 4  ;;  %v2925_v33 = vrot.slane %v1626_v8, 4  ;;  %4688 = vmatpush.msra.mxu3 %v2630_v28  ;;  %v2546_v60 = vsel %vm955_vm11, %v2545_v9, %v2527_v16  ;;  %v2558_v5 = vsel %vm955_vm11, %v2557_v23, %v2538_v63  ;;  %4630 = vmatpush.msra.mxu1 %v2626_v11  ;;  %v9400_v36 = vpop.f32.mrf.mxu2  ;;  %v9441_v28 = vld [vmem:[#allocation10] sm:$0xff] }
 0x38c   : > { %v2573_v40 = vrot.slane %v2568_v52, 4  ;;  %v2552_v18 = vperm.slane %v2546_v60, %v7524_v59  ;;  %v2564_v7 = vperm.slane %v2558_v5, %v7524_v59  ;;  %v2575_v46 = vrot.slane %v2556_v50, 4 }
 0x38d   : > { %v1619_v58 = vrot.slane %v1602_v1, 4  ;;  %v1624_v4 = vsel %vm955_vm11, 0.0, %v1623_v27  ;;  %v2909_v30 = vsel %vm955_vm11, %v1621_v47, %v1602_v1  ;;  %v2924_v51 = vperm.slane %v2920_v0, %v7492_v22  ;;  %v9406_v27 = vpop.f32.mrf.mxu1 }
 0x38e   : > { %v2574_v41 = vsel %vm955_vm11, %v2573_v40, %v2556_v50  ;;  %v2569_v17 = vrot.slane %v2564_v7, 4  ;;  %v2576_v2 = vsel %vm955_vm11, %v2568_v52, %v2575_v46  ;;  %v2571_v56 = vrot.slane %v2552_v18, 4 }
 0x38f   : > { %4660 = vmatpush.msra.mxu2 %v2574_v41  ;;  %4689 = vmatpush.msra.mxu3 %v2576_v2  ;;  %v1620_v21 = vsel %vm955_vm11, 0.0, %v1619_v58  ;;  %v2913_v16 = vperm.slane %v2909_v30, %v7492_v22  ;;  %v2926_v39 = vsel %vm955_vm11, %v2925_v33, %v1624_v4  ;;  %v2945_v45 = vrot.slane %v2924_v51, 4 }
 0x390   : > { %v2570_v47 = vsel %vm955_vm11, %v2569_v17, %v2552_v18  ;;  %v2572_v1 = vsel %vm955_vm11, %v2564_v7, %v2571_v56  ;;  %v2915_v44 = vsel %vm955_vm11, %v2914_v61, %v1620_v21  ;;  %v2930_v63 = vperm.slane %v2926_v39, %v7492_v22 }
 0x391   : > { %v1453_v26 = vrot.slane %v1438_v57, 4  ;;  %4602 = vmatpush.msra.mxu0 %v2570_v47  ;;  %4631 = vmatpush.msra.mxu1 %v2572_v1  ;;  %v2919_v54 = vperm.slane %v2915_v44, %v7492_v22  ;;  %v2933_v38 = vrot.slane %v2913_v16, 4  ;;  %v1458_v37 = vsel %vm955_vm11, 0.0, %v9342_v34 }
 0x392   : > { %v1774_v43 = vperm.slane %v9294_v6, %v7524_v59  ;;  %v2946_v15 = vsel %vm955_vm11, %v2930_v63, %v2945_v45  ;;  %v2943_v62 = vrot.slane %v2930_v63, 4  ;;  %v9419_v8 = vperm.slane %v9290_v29, %v7524_v59  ;;  %v9429_v29 = vpop.f32.mrf.mxu3 }
 0x393   : > { %v2934_v3 = vsel %vm955_vm11, %v2919_v54, %v2933_v38  ;;  %v2954_v57 = vperm.slane %v2946_v15, %v7524_v59  ;;  %v1455_v0 = vrot.slane %v9337_v25, 4  ;;  %v1942_v20 = vperm.slane %v9315_v12, %v7524_v59  ;;  %v3695_v4 = vpop.f32.mrf.mxu2  ;;  %v9478_v38 = vld [vmem:[#allocation10 + $0x10] sm:$0xff] }
 0x394   : > { %v2942_v49 = vperm.slane %v2934_v3, %v7524_v59  ;;  %v1451_v6 = vrot.slane %v9347_v31, 4  ;;  %v1454_v42 = vsel %vm955_vm11, 0.0, %v1453_v26  ;;  %v2871_v55 = vrot.slane %v1458_v37, 4  ;;  %v9480_v37 = vld [vmem:[#allocation10 + $0x20] sm:$0xff] }
 0x395   : > { %v2959_v9 = vrot.slane %v2954_v57, 4  ;;  %v2931_v23 = vrot.slane %v2919_v54, 4  ;;  %v9433_v50 = vperm.slane %v9279_v24, %v7524_v59  ;;  %v9435_v52 = vrot.slane %v1774_v43, 4  ;;  %v9466_v2 = vpop.f32.mrf.mxu1 }
 0x396   : > { %v9439_v12 = vperm.slane %v9320_v14, %v7524_v59  ;;  %v2944_v11 = vsel %vm955_vm11, %v2943_v62, %v2924_v51  ;;  %v1954_v61 = vperm.slane %v9333_v10, %v7524_v59  ;;  %v1955_v33 = vrot.slane %v9419_v8, 4 }
 0x397   : > { %v2960_v60 = vsel %vm955_vm11, %v2959_v9, %v2942_v49  ;;  %v2932_v24 = vsel %vm955_vm11, %v2931_v23, %v2913_v16  ;;  %v9449_v5 = vrot.slane %v1942_v20, 4  ;;  %v2950_v14 = vperm.slane %v2944_v11, %v7524_v59 }
 0x398   : > { %4775 = vmatpush.msrb.mxu2 %v2960_v60  ;;  %v2938_v40 = vperm.slane %v2932_v24, %v7524_v59  ;;  %v1452_v18 = vsel %vm955_vm11, 0.0, %v1451_v6  ;;  %v9456_v7 = vadd.f32 %v9441_v28, %v9301_v53  ;;  %v1456_v10 = vsel %vm955_vm11, 0.0, %v1455_v0 }
 0x399   : > { %v2855_v46 = vsel %vm955_vm11, %v1453_v26, %v9347_v31  ;;  %v2860_v58 = vrot.slane %v1454_v42, 4  ;;  %v2955_v30 = vrot.slane %v2950_v14, 4  ;;  %v2866_v41 = vsel %vm955_vm11, %v9342_v34, %v9337_v25 }
 0x39a   : > { %v2859_v51 = vperm.slane %v2855_v46, %v7492_v22  ;;  %v2872_v17 = vsel %vm955_vm11, %v2871_v55, %v1456_v10  ;;  %v2870_v56 = vperm.slane %v2866_v41, %v7492_v22  ;;  %v2961_v31 = vrot.slane %v2942_v49, 4  ;;  %v3832_v0 = vpop.f32.mrf.mxu3 }
 0x39b   : > { %v2861_v53 = vsel %vm955_vm11, %v2860_v58, %v1452_v18  ;;  %v2876_v21 = vperm.slane %v2872_v17, %v7492_v22  ;;  %v2956_v16 = vsel %vm955_vm11, %v2955_v30, %v2938_v40  ;;  %v2957_v47 = vrot.slane %v2938_v40, 4  ;;  %v9513_v46 = vpop.f32.mrf.mxu2 }
 0x39c   : > { %v2865_v39 = vperm.slane %v2861_v53, %v7492_v22  ;;  %v2879_v45 = vrot.slane %v2859_v51, 4  ;;  %4717 = vmatpush.msrb.mxu0 %v2956_v16  ;;  %v2891_v1 = vrot.slane %v2870_v56, 4  ;;  %v2962_v25 = vsel %vm955_vm11, %v2954_v57, %v2961_v31  ;;  %v9489_v57 = vld [vmem:[#allocation10 + $0x18] sm:$0xff] }
 0x39d   : > { %v2889_v34 = vrot.slane %v2876_v21, 4  ;;  %4804 = vmatpush.msrb.mxu3 %v2962_v25  ;;  %v2958_v26 = vsel %vm955_vm11, %v2950_v14, %v2957_v47  ;;  %v4229_v54 = vsel %vm4228_vm13, %v9456_v7, -inf  ;;  %v9484_v43 = vsel %vm955_vm11, 0.0, %v9435_v52  ;;  %v3867_v41 = vpop.f32.mrf.mxu1 }
 0x39e   : > { %v2880_v44 = vsel %vm955_vm11, %v2865_v39, %v2879_v45  ;;  %v2877_v63 = vrot.slane %v2865_v39, 4  ;;  %v2892_v62 = vsel %vm955_vm11, %v2876_v21, %v2891_v1  ;;  %4746 = vmatpush.msrb.mxu1 %v2958_v26  ;;  %4230 = vmax.xlane.f32.xlu1 %v4229_v54  ;;  %v1961_v20 = vrot.slane %v1954_v61, 4 }
 0x39f   : > { %v2888_v15 = vperm.slane %v2880_v44, %v7524_v59  ;;  %v2890_v3 = vsel %vm955_vm11, %v2889_v34, %v2870_v56  ;;  %v2900_v49 = vperm.slane %v2892_v62, %v7524_v59  ;;  %v9497_v23 = vadd.f32 %v9478_v38, %v9400_v36 }
 0x3a0   : > { %v2878_v6 = vsel %vm955_vm11, %v2877_v63, %v2859_v51  ;;  %v2896_v42 = vperm.slane %v2890_v3, %v7524_v59  ;;  %v9501_v11 = vadd.f32 %v9480_v37, %v9388_v19  ;;  %v1958_v61 = vsel %vm955_vm11, 0.0, %v9449_v5  ;;  %v9520_v51 = vld [vmem:[#allocation10 + $0x38] sm:$0xff] }
 0x3a1   : > { %v2884_v55 = vperm.slane %v2878_v6, %v7524_v59  ;;  %v2907_v9 = vrot.slane %v2888_v15, 4  ;;  %v2905_v60 = vrot.slane %v2900_v49, 4  ;;  %v9506_v40 = vadd.f32 %v9489_v57, %v3695_v4 }
 0x3a2   : > { %v2901_v24 = vrot.slane %v2896_v42, 4  ;;  %v4241_v10 = vsel %vm4228_vm13, %v9501_v11, -inf  ;;  %v4235_v36 = vsel %vm4228_vm13, %v9497_v23, -inf  ;;  %v1962_v19 = vsel %vm955_vm11, 0.0, %v1961_v20  ;;  %v9549_v26 = vpop.f32.mrf.mxu3 }
 0x3a3   : > { %v2908_v14 = vsel %vm955_vm11, %v2900_v49, %v2907_v9  ;;  %v2903_v18 = vrot.slane %v2884_v55, 4  ;;  %v2906_v58 = vsel %vm955_vm11, %v2905_v60, %v2888_v15  ;;  %4242 = vmax.xlane.f32.xlu0 %v4241_v10  ;;  %v4238_v4 = vsel %vm4228_vm13, %v9506_v40, -inf  ;;  %4236 = vmax.xlane.f32.xlu2 %v4235_v36 }
 0x3a4   : > { %v2902_v30 = vsel %vm955_vm11, %v2901_v24, %v2884_v55  ;;  %4805 = vmatpush.msrb.mxu3 %v2908_v14  ;;  %v1782_v17 = vperm.slane %v9299_v48, %v7524_v59  ;;  %v1787_v53 = vrot.slane %v9433_v50, 4  ;;  %v3246_v56 = vrot.slane %v1958_v61, 4  ;;  %4776 = vmatpush.msrb.mxu2 %v2906_v58  ;;  %v9586_v14 = vld [vmem:[#allocation10 + $0x8] sm:$0xff] }
 0x3a5   : > { %4718 = vmatpush.msrb.mxu0 %v2902_v30  ;;  %v2904_v21 = vsel %vm955_vm11, %v2896_v42, %v2903_v18  ;;  %v1786_v31 = vperm.slane %v9311_v35, %v7524_v59  ;;  %v1959_v16 = vrot.slane %v9439_v12, 4  ;;  %v9530_v39 = vadd.f32 %v9478_v38, %v3832_v0 }
 0x3a6   : > { %4747 = vmatpush.msrb.mxu1 %v2904_v21  ;;  %v3192_v45 = vrot.slane %v9484_v43, 4  ;;  %v3257_v48 = vrot.slane %v1962_v19, 4  ;;  %4239 = vmax.xlane.f32.xlu1 %v4238_v4  ;;  %v9535_v47 = vadd.f32 %v9520_v51, %v9466_v2  ;;  %v9538_v1 = vadd.f32 %v9480_v37, %v3867_v41 }
 0x3a7   : > { %v1956_v35 = vsel %vm955_vm11, 0.0, %v1955_v33  ;;  %v3241_v25 = vsel %vm955_vm11, %v9449_v5, %v9419_v8  ;;  %v3252_v34 = vsel %vm955_vm11, %v1961_v20, %v9439_v12  ;;  %v1788_v44 = vsel %vm955_vm11, 0.0, %v1787_v53 }
 0x3a8   : > { %v1791_v63 = vrot.slane %v1782_v17, 4  ;;  %v3247_v2 = vsel %vm955_vm11, %v3246_v56, %v1956_v35  ;;  %v1960_v54 = vsel %vm955_vm11, 0.0, %v1959_v16  ;;  %v1793_v33 = vrot.slane %v1786_v31, 4  ;;  %v3870_v35 = vpop.f32.mrf.mxu1 }
 0x3a9   : > { %v9554_v43 = vperm.slane %v3247_v2, %v7492_v22  ;;  %v3187_v8 = vsel %vm955_vm11, %v9435_v52, %v9433_v50  ;;  %v4250_v12 = vsel %vm4228_vm13, %v9535_v47, -inf  ;;  %v9562_v5 = vperm.slane %v3241_v25, %v7492_v22  ;;  %v3800_v50 = vpop.f32.mrf.mxu2 }
 0x3aa   : > { %v3258_v15 = vsel %vm955_vm11, %v3257_v48, %v1960_v54  ;;  %v3193_v62 = vsel %vm955_vm11, %v3192_v45, %v1788_v44  ;;  %v1794_v20 = vsel %vm955_vm11, 0.0, %v1793_v33  ;;  %v9575_v52 = vperm.slane %v3252_v34, %v7492_v22  ;;  %v9602_v4 = vpop.f32.mrf.mxu3  ;;  %v9627_v34 = vld [vmem:[#allocation10 + $0x28] sm:$0xff] }
 0x3ab   : > { %v9567_v3 = vperm.slane %v3258_v15, %v7492_v22  ;;  %v3263_v0 = vrot.slane %v9554_v43, 4  ;;  %v9572_v49 = vperm.slane %v3193_v62, %v7492_v22  ;;  %v1792_v6 = vsel %vm955_vm11, 0.0, %v1791_v63 }
 0x3ac   : > { %v3198_v42 = vsel %vm955_vm11, %v1793_v33, %v1782_v17  ;;  %v3203_v55 = vrot.slane %v1794_v20, 4  ;;  %v9583_v60 = vperm.slane %v3187_v8, %v7492_v22  ;;  %v9593_v36 = vadd.f32 %v9586_v14, %v3800_v50  ;;  %v9645_v20 = vld [vmem:[#allocation10 + $0x30] sm:$0xff] }
 0x3ad   : > { %v3264_v9 = vsel %vm955_vm11, %v3263_v0, %v9562_v5  ;;  %v3275_v61 = vrot.slane %v9567_v3, 4  ;;  %v3209_v24 = vrot.slane %v9572_v49, 4  ;;  %v9612_v56 = vperm.slane %v3198_v42, %v7492_v22 }
 0x3ae   : > { %4251 = vmax.xlane.f32.xlu1 %v4250_v12  ;;  %v9589_v18 = vperm.slane %v3264_v9, %v7524_v59  ;;  %v3204_v10 = vsel %vm955_vm11, %v3203_v55, %v1792_v6  ;;  %v4256_v45 = vsel %vm4228_vm13, %v9593_v36, -inf  ;;  %v9634_v63 = vadd.f32 %v9627_v34, %v3870_v35 }
 0x3af   : > { %v3276_v19 = vsel %vm955_vm11, %v3275_v61, %v9575_v52  ;;  %v9598_v58 = vperm.slane %v3204_v10, %v7492_v22  ;;  %v3210_v30 = vsel %vm955_vm11, %v3209_v24, %v9583_v60 }
 0x3b0   : > { %v9605_v41 = vperm.slane %v3276_v19, %v7524_v59  ;;  %v3289_v17 = vrot.slane %v9589_v18, 4  ;;  %v9609_v53 = vperm.slane %v3210_v30, %v7524_v59  ;;  %v4268_v33 = vsel %vm4228_vm13, %v9634_v63, -inf  ;;  %v3972_v8 = vpop.f32.mrf.mxu1 }
 0x3b1   : > { %v3221_v21 = vrot.slane %v9598_v58, 4  ;;  %v3902_v54 = vpop.f32.mrf.mxu2  ;;  %v9639_v12 = vadd.f32 %v9478_v38, %v3972_v8 }
 0x3b2   : > { %v9617_v31 = vsel %vm955_vm11, %v9605_v41, %v3289_v17  ;;  %v3235_v16 = vrot.slane %v9609_v53, 4  ;;  %v3940_v2 = vpop.f32.mrf.mxu3 }
 0x3b3   : > { %v3222_v48 = vsel %vm955_vm11, %v3221_v21, %v9612_v56  ;;  %v4283_v15 = vsel %vm4228_vm13, %v9639_v12, -inf }
 0x3b4   : > { %v9625_v25 = vperm.slane %v3222_v48, %v7524_v59 }
 0x3b6   : > { %4257 = vmax.xlane.f32.xlu1 %v4256_v45  ;;  %v9631_v44 = vsel %vm955_vm11, %v9625_v25, %v3235_v16  ;;  %v9669_v45 = vadd.f32 %v9586_v14, %v9371_v32 }
 0x3b8   : > { %v9652_v55 = vpop.f32.mrf.mxu1  ;;  %v4232_v35 = vsel %vm4228_vm13, %v9669_v45, -inf }
 0x3b9   : > { %v9643_v0 = vpop.f32.mrf.mxu2 }
 0x3ba   : > { %v4042_v62 = vpop.f32.mrf.mxu3 }
 0x3bb   : > { %v9648_v50 = vadd.f32 %v9645_v20, %v4042_v62 }
 0x3bd   : > { %v4295_v6 = vsel %vm4228_vm13, %v9648_v50, -inf }
 0x3be   : > { %4269 = vmax.xlane.f32.xlu1 %v4268_v33  ;;  %v9679_v33 = vadd.f32 %v9627_v34, %v9429_v29 }
 0x3c1   : > { %v4007_v42 = vpop.f32.mrf.mxu2 }
 0x3c6   : > { %4284 = vmax.xlane.f32.xlu1 %v4283_v15  ;;  %v4244_v15 = vsel %vm4228_vm13, %v9679_v33, -inf }
 0x3c9   : > { %v4010_v9 = vpop.f32.mrf.mxu2 }
 0x3ce   : > { %4296 = vmax.xlane.f32.xlu1 %v4295_v6 }
 0x3db   : > { %v4112_v61 = vpop.f32.mrf.mxu1 }
 0x3dc   : > { %v4077_v24 = vpop.f32.mrf.mxu0  ;;  %v9655_v10 = vadd.f32 %v9478_v38, %v4112_v61  ;;  %v9671_v38 = vpop.f32.mrf.mxu3 }
 0x3dd   : > { %v9658_v19 = vadd.f32 %v9441_v28, %v4077_v24 }
 0x3de   : > { %v4307_v30 = vsel %vm4228_vm13, %v9655_v10, -inf }
 0x3df   : > { %v4301_v17 = vsel %vm4228_vm13, %v9658_v19, -inf  ;;  %4308 = vmax.xlane.f32.xlu1 %v4307_v30  ;;  %v4147_v21 = vpop.f32.mrf.mxu2  ;;  %v4259_v30 = vsel %vm4228_vm13, %v9530_v39, -inf }
 0x3e0   : > { %4302 = vmax.xlane.f32.xlu0 %v4301_v17  ;;  %v9665_v16 = vadd.f32 %v9480_v37, %v4147_v21  ;;  %v9697_v21 = vadd.f32 %v9645_v20, %v9406_v27  ;;  %v9713_v27 = vadd.f32 %v9441_v28, %v9513_v46 }
 0x3e2   : > { %v4313_v48 = vsel %vm4228_vm13, %v9665_v16, -inf }
 0x3e4   : > { %v4182_v8 = vpop.f32.mrf.mxu3 }
 0x3e7   : > { %4314 = vmax.xlane.f32.xlu1 %v4313_v48  ;;  %v9700_v48 = vadd.f32 %v9645_v20, %v3902_v54  ;;  %v9716_v54 = vadd.f32 %v9586_v14, %v3940_v2  ;;  %v9733_v2 = vpop.permute.xlu2 %6588 }
 0x3e8   : > { %4233 = vmax.xlane.f32.xlu0 %v4232_v35 }
 0x3f0   : > { %4245 = vmax.xlane.f32.xlu0 %v4244_v15  ;;  %v4247_v15 = vsel %vm4228_vm13, %v9697_v21, -inf }
 0x3f2   : > { %v4080_v32 = vpop.f32.mrf.mxu0  ;;  %v4115_v62 = vpop.f32.mrf.mxu1 }
 0x3f3   : > { %v9684_v6 = vadd.f32 %v9586_v14, %v4080_v32  ;;  %v9687_v61 = vadd.f32 %v9489_v57, %v4115_v62  ;;  %v4271_v62 = vsel %vm4228_vm13, %v9700_v48, -inf }
 0x3f5   : > { %v4304_v24 = vsel %vm4228_vm13, %v9684_v6, -inf  ;;  %v4310_v29 = vsel %vm4228_vm13, %v9687_v61, -inf }
 0x3f6   : > { %4305 = vmax.xlane.f32.xlu2 %v4304_v24  ;;  %v4185_v17 = vpop.f32.mrf.mxu3  ;;  %4311 = vmax.xlane.f32.xlu1 %v4310_v29  ;;  %v4253_v24 = vsel %vm4228_vm13, %v9713_v27, -inf  ;;  %v4280_v29 = vsel %vm4228_vm13, %v9716_v54, -inf }
 0x3f7   : > { %v9703_v35 = vadd.f32 %v9520_v51, %v4185_v17  ;;  %v9727_v17 = vadd.f32 %v9480_v37, %v4007_v42  ;;  %v4265_v37 = vsel %vm4228_vm13, %v9538_v1, -inf }
 0x3f8   : > { %4260 = vmax.xlane.f32.xlu0 %v4259_v30  ;;  %v9724_v30 = vadd.f32 %v9489_v57, %v9549_v26 }
 0x3f9   : > { %v4322_v32 = vsel %vm4228_vm13, %v9703_v35, -inf  ;;  %v4289_v14 = vsel %vm4228_vm13, %v9727_v17, -inf }
 0x3fa   : > { %v4262_v46 = vsel %vm4228_vm13, %v9724_v30, -inf }
 0x3fe   : > { %4248 = vmax.xlane.f32.xlu2 %v4247_v15  ;;  %4323 = vmax.xlane.f32.xlu1 %v4322_v32  ;;  %v9736_v32 = vadd.f32 %v9627_v34, %v4010_v9  ;;  %v9749_v9 = vadd.f32 %v9645_v20, %v4182_v8 }
 0x400   : > { %4272 = vmax.xlane.f32.xlu0 %v4271_v62  ;;  %v4292_v42 = vsel %vm4228_vm13, %v9736_v32, -inf  ;;  %v9745_v62 = vadd.f32 %v9441_v28, %v9602_v4  ;;  %v4319_v28 = vsel %vm4228_vm13, %v9749_v9, -inf }
 0x406   : > { %4254 = vmax.xlane.f32.xlu2 %v4253_v24 }
 0x408   : > { %4281 = vmax.xlane.f32.xlu0 %v4280_v29 }
 0x40e   : > { %4263 = vmax.xlane.f32.xlu2 %v4262_v46 }
 0x410   : > { %4290 = vmax.xlane.f32.xlu0 %v4289_v14 }
 0x411   : > { %v4231_v15 = vpop.xlane.xlu1 %4230 }
 0x412   : > { %v4325_v26 = vsub.f32 %v9456_v7, %v4231_v15  ;;  %v4277_v15 = vsel %vm4228_vm13, %v9745_v62, -inf }
 0x414   : > { %v4357_v24 = vmul.f32 1.442695, %v4325_v26 }
 0x416   : > { %4266 = vmax.xlane.f32.xlu2 %v4265_v37  ;;  %v4237_v29 = vpop.xlane.xlu2 %4236  ;;  %6624 = vpow2.f32 %v4357_v24 }
 0x417   : > { %v4327_v46 = vsub.f32 %v9497_v23, %v4237_v29  ;;  %v9760_v23 = vadd.f32 %v9520_v51, %v9643_v0  ;;  %v9776_v29 = vadd.f32 %v9489_v57, %v9652_v55  ;;  %v4150_v55 = vpop.f32.mrf.mxu2 }
 0x418   : > { %4293 = vmax.xlane.f32.xlu0 %v4292_v42  ;;  %v9754_v42 = vpop.permute.xlu0 %6583 }
 0x419   : > { %v4240_v7 = vpop.xlane.xlu1 %4239  ;;  %v4361_v14 = vmul.f32 1.442695, %v4327_v46 }
 0x41a   : > { %v4328_v37 = vsub.f32 %v9506_v40, %v4240_v7  ;;  %v4274_v40 = vsel %vm4228_vm13, %v9760_v23, -inf  ;;  %v4286_v7 = vsel %vm4228_vm13, %v9776_v29, -inf }
 0x41b   : > { %6626 = vpow2.f32 %v4361_v14 }
 0x41c   : > { %v4363_v4 = vmul.f32 1.442695, %v4328_v37  ;;  %v9762_v20 = vpop.eup %6624 }
 0x41d   : > { %v4421_v24 = vsel %vm4228_vm13, %v9762_v20, 0.0 }
 0x41e   : > { %4278 = vmax.xlane.f32.xlu2 %v4277_v15  ;;  %6628 = vpow2.f32 %v4363_v4  ;;  %v9786_v15 = vadd.f32 %v9520_v51, %v9671_v38  ;;  %v3211_v38 = vrot.slane %v9583_v60, 4 }
 0x420   : > { %4320 = vmax.xlane.f32.xlu0 %v4319_v28  ;;  %v9772_v0 = vpop.permute.xlu0 %6593  ;;  %v4298_v57 = vsel %vm4228_vm13, %v9786_v15, -inf }
 0x421   : > { %v9764_v8 = vpop.eup %6626 }
 0x422   : > { %v4427_v26 = vsel %vm4228_vm13, %v9764_v8, 0.0 }
 0x423   : > { %4428 = vadd.xlane.f32.xlu1 %v4427_v26  ;;  %v9792_v26 = vadd.f32 %v9627_v34, %v4150_v55  ;;  %v3223_v34 = vrot.slane %v9612_v56, 4 }
 0x424   : > { %v9778_v46 = vpop.eup %6628 }
 0x425   : > { %v4430_v14 = vsel %vm4228_vm13, %v9778_v46, 0.0  ;;  %v3224_v60 = vsel %vm955_vm11, %v9598_v58, %v3223_v34 }
 0x426   : > { %4275 = vmax.xlane.f32.xlu2 %v4274_v40  ;;  %v4316_v40 = vsel %vm4228_vm13, %v9792_v26, -inf  ;;  %v3232_v56 = vperm.slane %v3224_v60, %v7524_v59 }
 0x428   : > { %4422 = vadd.xlane.f32.xlu0 %v4421_v24  ;;  %v4243_v37 = vpop.xlane.xlu0 %4242 }
 0x429   : > { %v4329_v28 = vsub.f32 %v9501_v11, %v4243_v37  ;;  %v3265_v11 = vrot.slane %v9562_v5, 4 }
 0x42b   : > { %v4365_v4 = vmul.f32 1.442695, %v4329_v28  ;;  %v3266_v37 = vsel %vm955_vm11, %v9554_v43, %v3265_v11  ;;  %v3212_v28 = vsel %vm955_vm11, %v9572_v49, %v3211_v38  ;;  %v3287_v38 = vrot.slane %v9605_v41, 4 }
 0x42c   : > { %v3220_v55 = vperm.slane %v3212_v28, %v7524_v59 }
 0x42d   : > { %6630 = vpow2.f32 %v4365_v4 }
 0x42e   : > { %4287 = vmax.xlane.f32.xlu2 %v4286_v7  ;;  %v4252_v7 = vpop.xlane.xlu1 %4251 }
 0x430   : > { %4431 = vadd.xlane.f32.xlu0 %v4430_v14  ;;  %v3277_v14 = vrot.slane %v9575_v52, 4 }
 0x432   : > { %v3278_v5 = vsel %vm955_vm11, %v9567_v3, %v3277_v14  ;;  %v3233_v3 = vrot.slane %v9625_v25, 4 }
 0x433   : > { %v9796_v24 = vpop.eup %6630  ;;  %v3286_v52 = vperm.slane %v3278_v5, %v7524_v59 }
 0x434   : > { %v4433_v51 = vsel %vm4228_vm13, %v9796_v24, 0.0  ;;  %v9836_v28 = vsel %vm955_vm11, %v3233_v3, %v9609_v53 }
 0x435   : > { %v3291_v43 = vrot.slane %v3286_v52, 4 }
 0x436   : > { %4299 = vmax.xlane.f32.xlu2 %v4298_v57  ;;  %v3274_v57 = vperm.slane %v3266_v37, %v7524_v59  ;;  %v4258_v34 = vpop.xlane.xlu1 %4257  ;;  %v9832_v37 = vsel %vm955_vm11, %v3287_v38, %v9589_v18 }
 0x437   : > { %v4334_v18 = vsub.f32 %v9593_v36, %v4258_v34 }
 0x438   : > { %v3293_v4 = vrot.slane %v3274_v57, 4  ;;  %v9825_v58 = vsel %vm955_vm11, %v3291_v43, %v3274_v57 }
 0x43a   : > { %v9817_v49 = vsel %vm955_vm11, %v3286_v52, %v3293_v4 }
 0x43e   : > { %4317 = vmax.xlane.f32.xlu2 %v4316_v40  ;;  %v3239_v40 = vrot.slane %v3220_v55, 4  ;;  %v4270_v41 = vpop.xlane.xlu1 %4269 }
 0x440   : > { %v9820_v11 = vsel %vm955_vm11, %v3232_v56, %v3239_v40 }
 0x446   : > { %4434 = vadd.xlane.f32.xlu2 %v4433_v51  ;;  %v3237_v51 = vrot.slane %v3232_v56, 4  ;;  %v9841_v52 = vpop.xlane.xlu1 %4284 }
 0x448   : > { %v9828_v14 = vsel %vm955_vm11, %v3237_v51, %v3220_v55 }
 0x44e   : > { %v4297_v51 = vpop.xlane.xlu1 %4296 }
 0x453   : > { %v9838_v5 = vpop.xlane.xlu0 %4302 }
 0x45b   : > { %v4234_v60 = vpop.xlane.xlu0 %4233 }
 0x45c   : > { %v4326_v25 = vsub.f32 %v9669_v45, %v4234_v60  ;;  %v4375_v45 = vmul.f32 1.442695, %v4334_v18 }
 0x45e   : > { %v4359_v57 = vmul.f32 1.442695, %v4326_v25  ;;  %v4332_v25 = vsub.f32 %v9535_v47, %v4252_v7  ;;  %v4338_v7 = vsub.f32 %v9634_v63, %v4270_v41 }
 0x460   : > { %6632 = vpow2.f32 %v4359_v57  ;;  %v9857_v57 = vpop.xlane.xlu1 %4308 }
 0x463   : > { %v4246_v55 = vpop.xlane.xlu0 %4245 }
 0x464   : > { %v4330_v56 = vsub.f32 %v9679_v33, %v4246_v55 }
 0x466   : > { %v9844_v4 = vpop.eup %6632  ;;  %v4367_v40 = vmul.f32 1.442695, %v4330_v56  ;;  %v4371_v56 = vmul.f32 1.442695, %v4332_v25 }
 0x467   : > { %v4424_v53 = vsel %vm4228_vm13, %v9844_v4, 0.0 }
 0x468   : > { %6634 = vpow2.f32 %v4367_v40  ;;  %4425 = vadd.xlane.f32.xlu2 %v4424_v53 }
 0x469   : > { %v9849_v43 = vpop.xlane.xlu2 %4305  ;;  %6636 = vpow2.f32 %v4375_v45 }
 0x46b   : > { %v4261_v38 = vpop.xlane.xlu0 %4260 }
 0x46c   : > { %v4335_v3 = vsub.f32 %v9530_v39, %v4261_v38 }
 0x46e   : > { %v9852_v60 = vpop.eup %6634  ;;  %v4377_v33 = vmul.f32 1.442695, %v4335_v3 }
 0x46f   : > { %v4436_v36 = vsel %vm4228_vm13, %v9852_v60, 0.0  ;;  %v9860_v40 = vpop.eup %6636 }
 0x470   : > { %4437 = vadd.xlane.f32.xlu2 %v4436_v36  ;;  %6638 = vpow2.f32 %v4377_v33  ;;  %v4448_v38 = vsel %vm4228_vm13, %v9860_v40, 0.0  ;;  %v9873_v36 = vpop.xlane.xlu1 %4314 }
 0x471   : > { %v4249_v34 = vpop.xlane.xlu2 %4248 }
 0x472   : > { %v4331_v55 = vsub.f32 %v9697_v21, %v4249_v34 }
 0x473   : > { %v4273_v18 = vpop.xlane.xlu0 %4272 }
 0x474   : > { %v4369_v39 = vmul.f32 1.442695, %v4331_v55  ;;  %v4339_v53 = vsub.f32 %v9700_v48, %v4273_v18  ;;  %v4383_v48 = vmul.f32 1.442695, %v4338_v7 }
 0x476   : > { %6640 = vpow2.f32 %v4369_v39  ;;  %v4385_v45 = vmul.f32 1.442695, %v4339_v53  ;;  %v9863_v47 = vpop.eup %6638 }
 0x477   : > { %6642 = vpow2.f32 %v4371_v56  ;;  %v4451_v21 = vsel %vm4228_vm13, %v9863_v47, 0.0  ;;  %v4347_v56 = vsub.f32 %v9648_v50, %v4297_v51 }
 0x478   : > { %4449 = vadd.xlane.f32.xlu2 %v4448_v38  ;;  %6644 = vpow2.f32 %v4385_v45  ;;  %4452 = vadd.xlane.f32.xlu0 %v4451_v21  ;;  %v9893_v51 = vpop.xlane.xlu1 %4311 }
 0x479   : > { %v4255_v3 = vpop.xlane.xlu2 %4254  ;;  %v4401_v7 = vmul.f32 1.442695, %v4347_v56 }
 0x47a   : > { %v4333_v33 = vsub.f32 %v9713_v27, %v4255_v3 }
 0x47b   : > { %v4282_v39 = vpop.xlane.xlu0 %4281 }
 0x47c   : > { %v9871_v25 = vpop.eup %6640  ;;  %v4373_v34 = vmul.f32 1.442695, %v4333_v33  ;;  %v4343_v33 = vsub.f32 %v9639_v12, %v9841_v52  ;;  %v4342_v12 = vsub.f32 %v9716_v54, %v4282_v39 }
 0x47d   : > { %v9875_v55 = vpop.eup %6642  ;;  %v4439_v63 = vsel %vm4228_vm13, %v9871_v25, 0.0 }
 0x47e   : > { %6646 = vpow2.f32 %v4373_v34  ;;  %4440 = vadd.xlane.f32.xlu1 %v4439_v63  ;;  %v9879_v41 = vpop.eup %6644  ;;  %v4442_v27 = vsel %vm4228_vm13, %v9875_v55, 0.0  ;;  %v4393_v56 = vmul.f32 1.442695, %v4343_v33  ;;  %v4391_v33 = vmul.f32 1.442695, %v4342_v12 }
 0x47f   : > { %6648 = vpow2.f32 %v4383_v48  ;;  %v4463_v53 = vsel %vm4228_vm13, %v9879_v41, 0.0 }
 0x480   : > { %4443 = vadd.xlane.f32.xlu0 %v4442_v27  ;;  %4464 = vadd.xlane.f32.xlu2 %v4463_v53  ;;  %v9909_v52 = vpop.xlane.xlu1 %4323 }
 0x481   : > { %v4264_v18 = vpop.xlane.xlu2 %4263 }
 0x482   : > { %v4336_v45 = vsub.f32 %v9724_v30, %v4264_v18 }
 0x483   : > { %v9899_v34 = vpop.xlane.xlu0 %4290 }
 0x484   : > { %v9887_v38 = vpop.eup %6646  ;;  %v4379_v21 = vmul.f32 1.442695, %v4336_v45 }
 0x485   : > { %v9889_v3 = vpop.eup %6648  ;;  %v4445_v50 = vsel %vm4228_vm13, %v9887_v38, 0.0 }
 0x486   : > { %6650 = vpow2.f32 %v4379_v21  ;;  %4446 = vadd.xlane.f32.xlu1 %v4445_v50  ;;  %v4460_v30 = vsel %vm4228_vm13, %v9889_v3, 0.0 }
 0x487   : > { %6652 = vpow2.f32 %v4401_v7 }
 0x488   : > { %4461 = vadd.xlane.f32.xlu0 %v4460_v30 }
 0x489   : > { %v4267_v48 = vpop.xlane.xlu2 %4266 }
 0x48a   : > { %v4337_v63 = vsub.f32 %v9538_v1, %v4267_v48 }
 0x48b   : > { %v9913_v21 = vpop.xlane.xlu0 %4293 }
 0x48c   : > { %v9902_v27 = vpop.eup %6650  ;;  %v4381_v18 = vmul.f32 1.442695, %v4337_v63 }
 0x48d   : > { %v9904_v53 = vpop.eup %6652  ;;  %v4454_v45 = vsel %vm4228_vm13, %v9902_v27, 0.0 }
 0x48e   : > { %6654 = vpow2.f32 %v4381_v18  ;;  %4455 = vadd.xlane.f32.xlu1 %v4454_v45  ;;  %v4487_v7 = vsel %vm4228_vm13, %v9904_v53, 0.0 }
 0x48f   : > { %6656 = vpow2.f32 %v4393_v56 }
 0x490   : > { %4488 = vadd.xlane.f32.xlu0 %v4487_v7 }
 0x491   : > { %v4279_v1 = vpop.xlane.xlu2 %4278 }
 0x492   : > { %v4341_v50 = vsub.f32 %v9745_v62, %v4279_v1 }
 0x493   : > { %v4321_v45 = vpop.xlane.xlu0 %4320 }
 0x494   : > { %v9916_v30 = vpop.eup %6654  ;;  %v4389_v48 = vmul.f32 1.442695, %v4341_v50 }
 0x495   : > { %v9918_v63 = vpop.eup %6656  ;;  %v4457_v54 = vsel %vm4228_vm13, %v9916_v30, 0.0 }
 0x496   : > { %6658 = vpow2.f32 %v4389_v48  ;;  %4458 = vadd.xlane.f32.xlu1 %v4457_v54  ;;  %v4475_v39 = vsel %vm4228_vm13, %v9918_v63, 0.0  ;;  %v4429_v56 = vpop.xlane.xlu1 %4428 }
 0x497   : > { %6660 = vpow2.f32 %v4391_v33 }
 0x498   : > { %4476 = vadd.xlane.f32.xlu0 %v4475_v39  ;;  %6662 = vrcp.f32 %v4429_v56 }
 0x499   : > { %v4276_v18 = vpop.xlane.xlu2 %4275 }
 0x49a   : > { %v4340_v62 = vsub.f32 %v9760_v23, %v4276_v18 }
 0x49b   : > { %v4423_v56 = vpop.xlane.xlu0 %4422 }
 0x49c   : > { %v9925_v12 = vpop.eup %6658  ;;  %v4387_v7 = vmul.f32 1.442695, %v4340_v62  ;;  %v4349_v62 = vsub.f32 %v9658_v19, %v9838_v5  ;;  %v4353_v19 = vsub.f32 %v9665_v16, %v9873_v36 }
 0x49d   : > { %v9927_v1 = vpop.eup %6660  ;;  %v4469_v50 = vsel %vm4228_vm13, %v9925_v12, 0.0 }
 0x49e   : > { %6664 = vpow2.f32 %v4387_v7  ;;  %4470 = vadd.xlane.f32.xlu2 %v4469_v50  ;;  %v6663_v33 = vpop.eup %6662  ;;  %v4472_v48 = vsel %vm4228_vm13, %v9927_v1, 0.0 }
 0x49f   : > { %v4551_v54 = vmul.f32 %v6663_v33, %v9764_v8  ;;  %6666 = vrcp.f32 %v4423_v56  ;;  %v4405_v8 = vmul.f32 1.442695, %v4349_v62  ;;  %v4355_v56 = vsub.f32 %v9749_v9, %v4321_v45 }
 0x4a0   : > { %4473 = vadd.xlane.f32.xlu0 %v4472_v48  ;;  %v4351_v9 = vsub.f32 %v9655_v10, %v9857_v57  ;;  %v4352_v10 = vsub.f32 %v9687_v61, %v9893_v51  ;;  %v4346_v61 = vsub.f32 %v9736_v32, %v9913_v21  ;;  %v4350_v21 = vsub.f32 %v9684_v6, %v9849_v43 }
 0x4a1   : > { %v4288_v39 = vpop.xlane.xlu2 %4287  ;;  %6355 = vmatmul.msk.f32.vlgmr.msra.gmra.mxu1 %vm4228_vm13, %v4551_v54  ;;  %v4417_v62 = vmul.f32 1.442695, %v4355_v56 }
 0x4a2   : > { %v4344_v23 = vsub.f32 %v9776_v29, %v4288_v39  ;;  %4862 = vmatpush.msra.mxu1 %v9617_v31  ;;  %v4407_v56 = vmul.f32 1.442695, %v4350_v21 }
 0x4a3   : > { %v4432_v39 = vpop.xlane.xlu0 %4431 }
 0x4a4   : > { %v9936_v18 = vpop.eup %6664  ;;  %v4395_v7 = vmul.f32 1.442695, %v4344_v23  ;;  %4863 = vmatpush.msra.mxu1 %v9631_v44  ;;  %v4356_v44 = vsub.f32 %v9703_v35, %v9909_v52 }
 0x4a5   : > { %v4466_v50 = vsel %vm4228_vm13, %v9936_v18, 0.0  ;;  %v6667_v29 = vpop.eup %6666 }
 0x4a6   : > { %6668 = vpow2.f32 %v4395_v7  ;;  %4467 = vadd.xlane.f32.xlu2 %v4466_v50  ;;  %v4549_v54 = vmul.f32 %v6667_v29, %v9762_v20  ;;  %v4413_v20 = vmul.f32 1.442695, %v4353_v19  ;;  %v4419_v16 = vmul.f32 1.442695, %v4356_v44 }
 0x4a7   : > { %6670 = vrcp.f32 %v4432_v39  ;;  %v4345_v39 = vsub.f32 %v9727_v17, %v9899_v34 }
 0x4a8   : > { %6672 = vpow2.f32 %v4405_v8  ;;  %6353 = vmatmul.msk.f32.vlgmr.msra.gmra.mxu0 %vm4228_vm13, %v4549_v54 }
 0x4a9   : > { %v4300_v33 = vpop.xlane.xlu2 %4299  ;;  %4833 = vmatpush.msra.mxu0 %v9832_v37  ;;  %v4397_v44 = vmul.f32 1.442695, %v4345_v39 }
 0x4aa   : > { %v4348_v48 = vsub.f32 %v9786_v15, %v4300_v33  ;;  %v4409_v33 = vmul.f32 1.442695, %v4351_v9 }
 0x4ab   : > { %4834 = vmatpush.msra.mxu0 %v9836_v28 }
 0x4ac   : > { %v9948_v31 = vpop.eup %6668  ;;  %v4403_v5 = vmul.f32 1.442695, %v4348_v48 }
 0x4ad   : > { %v4478_v15 = vsel %vm4228_vm13, %v9948_v31, 0.0  ;;  %v6671_v36 = vpop.eup %6670 }
 0x4ae   : > { %6674 = vpow2.f32 %v4403_v5  ;;  %4479 = vadd.xlane.f32.xlu0 %v4478_v15  ;;  %v9959_v35 = vpop.eup %6672  ;;  %v4552_v52 = vmul.f32 %v6671_v36, %v9778_v46 }
 0x4af   : > { %6598 = vrot.lane.b32.xlu1 %v7642_v13, %s7004_s16  ;;  %6676 = vpow2.f32 %v4413_v20  ;;  %v4493_v28 = vsel %vm4228_vm13, %v9959_v35, 0.0  ;;  %s6151_s16 = sshll.u32 %s6148_s3, 4  ;;  %s6152_s16 = int_to_ptr.hbm [resolvable:$true] %s6151_s16 }
 0x4b0   : > { %6678 = vpow2.f32 %v4419_v16  ;;  %6356 = vmatmul.msk.f32.gmra.mxu1 %vm4228_vm13, %v4552_v52  ;;  %s6924_s13 = sshra.s32 %s6152_s16, 4  ;;  %s6925_s13 = int_to_ptr.hbm [resolvable:$true] %s6924_s13 }
 0x4b1   : > { %v4318_v23 = vpop.xlane.xlu2 %4317  ;;  %p6931_p9 = scmp.lt.s32.totalorder %s6925_s13, %s10788_s8 }
 0x4b2   : > { %v4354_v34 = vsub.f32 %v9792_v26, %v4318_v23 }
 0x4b4   : > { %v9962_v37 = vpop.eup %6674  ;;  %v4415_v20 = vmul.f32 1.442695, %v4354_v34 }
 0x4b5   : > { %v4490_v13 = vsel %vm4228_vm13, %v9962_v37, 0.0  ;;  %v9970_v7 = vpop.eup %6676 }
 0x4b6   : > { %4491 = vadd.xlane.f32.xlu2 %v4490_v13  ;;  %4494 = vadd.xlane.f32.xlu0 %v4493_v28  ;;  %v9972_v50 = vpop.eup %6678  ;;  %v4505_v45 = vsel %vm4228_vm13, %v9970_v7, 0.0 }
 0x4b7   : > { %v4514_v8 = vsel %vm4228_vm13, %v9972_v50, 0.0 }
 0x4b9   : > { %v4435_v46 = vpop.xlane.xlu2 %4434 }
 0x4ba   : > { %6680 = vrcp.f32 %v4435_v46 }
 0x4bb   : > { %6682 = vpow2.f32 %v4417_v62 }
 0x4bc   : > { %6684 = vpow2.f32 %v4409_v33 }
 0x4be   : > { %4506 = vadd.xlane.f32.xlu2 %v4505_v45  ;;  %4515 = vadd.xlane.f32.xlu0 %v4514_v8 }
 0x4c0   : > { %v6681_v29 = vpop.eup %6680 }
 0x4c1   : > { %v4553_v48 = vmul.f32 %v6681_v29, %v9796_v24  ;;  %v9981_v54 = vpop.eup %6682  ;;  %v4411_v24 = vmul.f32 1.442695, %v4352_v10 }
 0x4c2   : > { %v4511_v57 = vsel %vm4228_vm13, %v9981_v54, 0.0  ;;  %v9992_v19 = vpop.eup %6684 }
 0x4c3   : > { %6357 = vmatmul.msk.f32.vlgmr.msra.gmra.mxu2 %vm4228_vm13, %v4553_v48  ;;  %6686 = vpow2.f32 %v4411_v24  ;;  %v4499_v5 = vsel %vm4228_vm13, %v9992_v19, 0.0 }
 0x4c4   : > { %4891 = vmatpush.msra.mxu2 %v9825_v58  ;;  %6688 = vpow2.f32 %v4397_v44 }
 0x4c6   : > { %4892 = vmatpush.msra.mxu2 %v9828_v14  ;;  %4512 = vadd.xlane.f32.xlu2 %v4511_v57  ;;  %v4399_v14 = vmul.f32 1.442695, %v4346_v61 }
 0x4c8   : > { %6690 = vpow2.f32 %v4399_v14 }
 0x4c9   : > { %v9998_v58 = vpop.eup %6686 }
 0x4ca   : > { %v10000_v51 = vpop.eup %6688  ;;  %v4502_v17 = vsel %vm4228_vm13, %v9998_v58, 0.0 }
 0x4cb   : > { %v4481_v15 = vsel %vm4228_vm13, %v10000_v51, 0.0 }
 0x4ce   : > { %4500 = vadd.xlane.f32.xlu2 %v4499_v5  ;;  %v10007_v32 = vpop.eup %6690 }
 0x4cf   : > { %v4484_v36 = vsel %vm4228_vm13, %v10007_v32, 0.0 }
 0x4d6   : > { %4503 = vadd.xlane.f32.xlu2 %v4502_v17 }
 0x4d9   : > { %4482 = vadd.xlane.f32.xlu1 %v4481_v15 }
 0x4db   : > { %v4426_v16 = vpop.xlane.xlu2 %4425 }
 0x4dc   : > { %6692 = vrcp.f32 %v4426_v16 }
 0x4dd   : > { %6694 = vpow2.f32 %v4415_v20 }
 0x4e1   : > { %4485 = vadd.xlane.f32.xlu1 %v4484_v36 }
 0x4e2   : > { %v6693_v52 = vpop.eup %6692 }
 0x4e3   : > { %v4438_v26 = vpop.xlane.xlu2 %4437  ;;  %v4550_v23 = vmul.f32 %v6693_v52, %v9844_v4  ;;  %v10014_v13 = vpop.eup %6694  ;;  %v6596_v52 = vunpack.i.h.bf16 %v9772_v0 }
 0x4e4   : > { %6696 = vrcp.f32 %v4438_v26  ;;  %v4508_v28 = vsel %vm4228_vm13, %v10014_v13, 0.0  ;;  %v6586_v26 = vunpack.i.h.bf16 %v9754_v42 }
 0x4e5   : > { %6354 = vmatmul.msk.f32.gmra.mxu0 %vm4228_vm13, %v4550_v23  ;;  %6698 = vpow2.f32 %v4407_v56  ;;  %v6585_v23 = vunpack.i.l.bf16 %v9754_v42  ;;  %v6590_v42 = vunpack.i.l.bf16 %v9733_v2 }
 0x4e9   : > { %4509 = vadd.xlane.f32.xlu1 %v4508_v28 }
 0x4ea   : > { %v6697_v6 = vpop.eup %6696 }
 0x4eb   : > { %v4554_v43 = vmul.f32 %v6697_v6, %v9852_v60  ;;  %v4453_v62 = vpop.xlane.xlu0 %4452  ;;  %v10020_v46 = vpop.eup %6698 }
 0x4ec   : > { %6700 = vrcp.f32 %v4453_v62  ;;  %v4496_v4 = vsel %vm4228_vm13, %v10020_v46, 0.0  ;;  %v4450_v8 = vpop.xlane.xlu2 %4449 }
 0x4ed   : > { %6358 = vmatmul.msk.f32.gmra.mxu2 %vm4228_vm13, %v4554_v43 }
 0x4f1   : > { %v4441_v9 = vpop.xlane.xlu1 %4440  ;;  %4497 = vadd.xlane.f32.xlu1 %v4496_v4  ;;  %v2077_v4 = vrot.slane %v6586_v26, 4 }
 0x4f2   : > { %6702 = vrcp.f32 %v4441_v9  ;;  %v6701_v45 = vpop.eup %6700  ;;  %v2245_v9 = vrot.slane %v6585_v23, 4 }
 0x4f3   : > { %v4559_v29 = vmul.f32 %v6701_v45, %v9863_v47  ;;  %v4444_v33 = vpop.xlane.xlu0 %4443 }
 0x4f4   : > { %6704 = vrcp.f32 %v4444_v33  ;;  %v4465_v24 = vpop.xlane.xlu2 %4464 }
 0x4f5   : > { %6363 = vmatmul.msk.f32.vlgmr.msrb.gmra.mxu1 %vm4228_vm13, %v4559_v29 }
 0x4f8   : > { %v6703_v60 = vpop.eup %6702 }
 0x4f9   : > { %v4555_v48 = vmul.f32 %v6703_v60, %v9871_v25  ;;  %v4447_v10 = vpop.xlane.xlu1 %4446 }
 0x4fa   : > { %6706 = vrcp.f32 %v4447_v10  ;;  %v6705_v57 = vpop.eup %6704 }
 0x4fb   : > { %6359 = vmatmul.msk.f32.vlgmr.msra.gmra.mxu3 %vm4228_vm13, %v4555_v48  ;;  %v4462_v39 = vpop.xlane.xlu0 %4461  ;;  %v4556_v47 = vmul.f32 %v6705_v57, %v9875_v55  ;;  %6708 = vrcp.f32 %v4450_v8  ;;  %v6591_v8 = vunpack.i.h.bf16 %v9733_v2 }
 0x4fc   : > { %4920 = vmatpush.msra.mxu3 %v9817_v49  ;;  %6710 = vrcp.f32 %v4465_v24  ;;  %v2257_v24 = vrot.slane %v6590_v42, 4 }
 0x4fd   : > { %v2089_v48 = vrot.slane %v6591_v8, 4 }
 0x4fe   : > { %4921 = vmatpush.msra.mxu3 %v9820_v11 }
 0x500   : > { %v6707_v44 = vpop.eup %6706 }
 0x501   : > { %v4557_v5 = vmul.f32 %v6707_v44, %v9887_v38  ;;  %v4456_v61 = vpop.xlane.xlu1 %4455  ;;  %v6709_v14 = vpop.eup %6708 }
 0x502   : > { %6712 = vrcp.f32 %v4456_v61  ;;  %v6711_v49 = vpop.eup %6710  ;;  %v4558_v11 = vmul.f32 %v6709_v14, %v9860_v40 }
 0x503   : > { %6361 = vmatmul.msk.f32.vlgmr.msrb.gmra.mxu0 %vm4228_vm13, %v4557_v5  ;;  %6360 = vmatmul.msk.f32.gmra.mxu3 %vm4228_vm13, %v4556_v47  ;;  %v4489_v25 = vpop.xlane.xlu0 %4488  ;;  %v4563_v15 = vmul.f32 %v6711_v49, %v9879_v41 }
 0x508   : > { %v6713_v17 = vpop.eup %6712 }
 0x509   : > { %v4459_v34 = vpop.xlane.xlu1 %4458  ;;  %v4560_v55 = vmul.f32 %v6713_v17, %v9902_v27 }
 0x50a   : > { %6714 = vrcp.f32 %v4459_v34 }
 0x50b   : > { %6362 = vmatmul.msk.f32.gmra.mxu0 %vm4228_vm13, %v4558_v11  ;;  %6364 = vmatmul.msk.f32.gmra.mxu1 %vm4228_vm13, %v4560_v55  ;;  %v4477_v38 = vpop.xlane.xlu0 %4476 }
 0x50c   : > { %6367 = vmatmul.msk.f32.vlgmr.msrb.gmra.mxu3 %vm4228_vm13, %v4563_v15  ;;  %6716 = vrcp.f32 %v4477_v38 }
 0x50d   : > { %6718 = vrcp.f32 %v4462_v39 }
 0x510   : > { %v6715_v20 = vpop.eup %6714 }
 0x511   : > { %v4561_v16 = vmul.f32 %v6715_v20, %v9916_v30  ;;  %v4471_v21 = vpop.xlane.xlu2 %4470  ;;  %v6595_v30 = vunpack.i.l.bf16 %v9772_v0  ;;  %v2078_v0 = vsel %vm955_vm11, %v6596_v52, %v2077_v4 }
 0x512   : > { %6720 = vrcp.f32 %v4471_v21  ;;  %v6717_v40 = vpop.eup %6716  ;;  %v2086_v10 = vperm.slane %v2078_v0, %v7492_v22 }
 0x513   : > { %6365 = vmatmul.msk.f32.vlgmr.msrb.gmra.mxu2 %vm4228_vm13, %v4561_v16  ;;  %v4567_v41 = vmul.f32 %v6717_v40, %v9918_v63  ;;  %v4474_v27 = vpop.xlane.xlu0 %4473  ;;  %v6719_v36 = vpop.eup %6718  ;;  %v2075_v63 = vrot.slane %v6596_v52, 4  ;;  %v2243_v45 = vrot.slane %v6595_v30, 4 }
 0x514   : > { %6722 = vrcp.f32 %v4474_v27  ;;  %v4562_v43 = vmul.f32 %v6719_v36, %v9889_v3 }
 0x515   : > { %6371 = vmatmul.msk.f32.vlgmr.msra.gmra.mxu1 %vm4228_vm13, %v4567_v41  ;;  %v2076_v3 = vsel %vm955_vm11, %v2075_v63, %v6586_v26  ;;  %v2244_v60 = vsel %vm955_vm11, %v2243_v45, %v6585_v23 }
 0x516   : > { %v2082_v47 = vperm.slane %v2076_v3, %v7492_v22  ;;  %v2250_v61 = vperm.slane %v2244_v60, %v7492_v22 }
 0x518   : > { %v6721_v56 = vpop.eup %6720  ;;  %v2101_v38 = vrot.slane %v2082_v47, 4  ;;  %v2269_v36 = vrot.slane %v2250_v61, 4 }
 0x519   : > { %v4565_v28 = vmul.f32 %v6721_v56, %v9925_v12  ;;  %v4468_v6 = vpop.xlane.xlu2 %4467  ;;  %v2246_v12 = vsel %vm955_vm11, %v6595_v30, %v2245_v9 }
 0x51a   : > { %6724 = vrcp.f32 %v4468_v6  ;;  %v6723_v62 = vpop.eup %6722  ;;  %v2254_v57 = vperm.slane %v2246_v12, %v7492_v22 }
 0x51b   : > { %6366 = vmatmul.msk.f32.gmra.mxu2 %vm4228_vm13, %v4562_v43  ;;  %6369 = vmatmul.msk.f32.vlgmr.msra.gmra.mxu0 %vm4228_vm13, %v4565_v28  ;;  %6726 = vrcp.f32 %v4489_v25  ;;  %v4566_v29 = vmul.f32 %v6723_v62, %v9927_v1 }
 0x51c   : > { %v2281_v11 = vrot.slane %v2254_v57, 4 }
 0x520   : > { %v6725_v33 = vpop.eup %6724 }
 0x521   : > { %v6599_v39 = vpop.permute.xlu1 %6598  ;;  %v4564_v2 = vmul.f32 %v6725_v33, %v9936_v18  ;;  %v4480_v1 = vpop.xlane.xlu0 %4479  ;;  %v2113_v18 = vrot.slane %v2086_v10, 4 }
 0x522   : > { %v6601_v44 = vunpack.i.h.bf16 %v6599_v39  ;;  %v6600_v5 = vunpack.i.l.bf16 %v6599_v39  ;;  %v6727_v34 = vpop.eup %6726  ;;  %6728 = vrcp.f32 %v4480_v1 }
 0x523   : > { %6368 = vmatmul.msk.f32.gmra.mxu3 %vm4228_vm13, %v4564_v2  ;;  %6370 = vmatmul.msk.f32.gmra.mxu0 %vm4228_vm13, %v4566_v29  ;;  %v4571_v52 = vmul.f32 %v6727_v34, %v9904_v53 }
 0x524   : > { %v2087_v25 = vrot.slane %v6601_v44, 4  ;;  %v2090_v14 = vsel %vm955_vm11, %v6601_v44, %v2089_v48  ;;  %v2255_v49 = vrot.slane %v6600_v5, 4  ;;  %v2258_v17 = vsel %vm955_vm11, %v6600_v5, %v2257_v24 }
 0x525   : > { %v2098_v55 = vperm.slane %v2090_v14, %v7492_v22  ;;  %v2266_v15 = vperm.slane %v2258_v17, %v7492_v22 }
 0x526   : > { %v2088_v20 = vsel %vm955_vm11, %v2087_v25, %v6591_v8  ;;  %v2256_v16 = vsel %vm955_vm11, %v2255_v49, %v6590_v42 }
 0x527   : > { %v2094_v21 = vperm.slane %v2088_v20, %v7492_v22  ;;  %v2111_v40 = vrot.slane %v2098_v55, 4  ;;  %v2114_v41 = vsel %vm955_vm11, %v2098_v55, %v2113_v18  ;;  %v2262_v27 = vperm.slane %v2256_v16, %v7492_v22 }
 0x528   : > { %v2122_v56 = vperm.slane %v2114_v41, %v7524_v59  ;;  %v2279_v26 = vrot.slane %v2266_v15, 4  ;;  %v2282_v6 = vsel %vm955_vm11, %v2266_v15, %v2281_v11  ;;  %v6729_v0 = vpop.eup %6728 }
 0x529   : > { %v2099_v23 = vrot.slane %v2094_v21, 4  ;;  %v2102_v30 = vsel %vm955_vm11, %v2094_v21, %v2101_v38  ;;  %v2267_v28 = vrot.slane %v2262_v27, 4  ;;  %v4492_v43 = vpop.xlane.xlu2 %4491  ;;  %v2112_v62 = vsel %vm955_vm11, %v2111_v40, %v2086_v10  ;;  %v4495_v21 = vpop.xlane.xlu0 %4494 }
 0x52a   : > { %v2110_v63 = vperm.slane %v2102_v30, %v7524_v59  ;;  %v2129_v4 = vrot.slane %v2122_v56, 4  ;;  %v2270_v9 = vsel %vm955_vm11, %v2262_v27, %v2269_v36  ;;  %v2280_v42 = vsel %vm955_vm11, %v2279_v26, %v2254_v57 }
 0x52b   : > { %v2100_v45 = vsel %vm955_vm11, %v2099_v23, %v2082_v47  ;;  %v2268_v53 = vsel %vm955_vm11, %v2267_v28, %v2250_v61  ;;  %v2278_v8 = vperm.slane %v2270_v9, %v7524_v59  ;;  %6375 = vmatmul.msk.f32.vlgmr.msra.gmra.mxu3 %vm4228_vm13, %v4571_v52  ;;  %v2286_v3 = vperm.slane %v2280_v42, %v7524_v59 }
 0x52c   : > { %v2274_v12 = vperm.slane %v2268_v53, %v7524_v59  ;;  %v2290_v29 = vperm.slane %v2282_v6, %v7524_v59  ;;  %v2106_v60 = vperm.slane %v2100_v45, %v7524_v59  ;;  %v2118_v48 = vperm.slane %v2112_v62, %v7524_v59 }
 0x52d   : > { %v2293_v33 = vrot.slane %v2278_v8, 4  ;;  %v2125_v10 = vrot.slane %v2110_v63, 4  ;;  %6730 = vrcp.f32 %v4492_v43  ;;  %v2130_v39 = vsel %vm955_vm11, 0.0, %v2129_v4 }
 0x52e   : > { %v2295_v2 = vrot.slane %v2286_v3, 4  ;;  %v2297_v24 = vrot.slane %v2290_v29, 4  ;;  %v4568_v44 = vmul.f32 %v6729_v0, %v9948_v31  ;;  %v2291_v5 = vrot.slane %v2274_v12, 4 }
 0x52f   : > { %v2294_v57 = vsel %vm955_vm11, 0.0, %v2293_v33  ;;  %v3573_v61 = vsel %vm955_vm11, %v2293_v33, %v2274_v12  ;;  %v2127_v34 = vrot.slane %v2118_v48, 4  ;;  %v2126_v31 = vsel %vm955_vm11, 0.0, %v2125_v10 }
 0x530   : > { %v3578_v47 = vrot.slane %v2294_v57, 4  ;;  %v2298_v1 = vsel %vm955_vm11, 0.0, %v2297_v24  ;;  %v3584_v25 = vsel %vm955_vm11, %v2297_v24, %v2286_v3  ;;  %v2296_v49 = vsel %vm955_vm11, 0.0, %v2295_v2  ;;  %6372 = vmatmul.msk.f32.gmra.mxu1 %vm4228_vm13, %v4568_v44 }
 0x531   : > { %v10099_v14 = vpop.xlane.xlu2 %4506  ;;  %v3577_v17 = vperm.slane %v3573_v61, %v7492_v22  ;;  %v3589_v18 = vrot.slane %v2298_v1, 4  ;;  %v2292_v11 = vsel %vm955_vm11, 0.0, %v2291_v5  ;;  %v3588_v15 = vperm.slane %v3584_v25, %v7492_v22  ;;  %v4516_v1 = vpop.xlane.xlu0 %4515 }
 0x532   : > { %v3579_v55 = vsel %vm955_vm11, %v3578_v47, %v2292_v11  ;;  %v3535_v16 = vrot.slane %v2130_v39, 4  ;;  %v2123_v27 = vrot.slane %v2106_v60, 4  ;;  %v3519_v26 = vsel %vm955_vm11, %v2125_v10, %v2106_v60 }
 0x533   : > { %v3597_v38 = vrot.slane %v3577_v17, 4  ;;  %v6731_v20 = vpop.eup %6730  ;;  %v3583_v40 = vperm.slane %v3579_v55, %v7492_v22  ;;  %v3590_v41 = vsel %vm955_vm11, %v3589_v18, %v2296_v49  ;;  %v3609_v56 = vrot.slane %v3588_v15, 4 }
 0x534   : > { %v4572_v36 = vmul.f32 %v6731_v20, %v9962_v37  ;;  %v3594_v52 = vperm.slane %v3590_v41, %v7492_v22  ;;  %v2124_v28 = vsel %vm955_vm11, 0.0, %v2123_v27  ;;  %v2128_v6 = vsel %vm955_vm11, 0.0, %v2127_v34 }
 0x535   : > { %v3598_v23 = vsel %vm955_vm11, %v3583_v40, %v3597_v38  ;;  %v3595_v30 = vrot.slane %v3583_v40, 4  ;;  %v3523_v37 = vperm.slane %v3519_v26, %v7492_v22  ;;  %v3524_v53 = vrot.slane %v2126_v31, 4 }
 0x536   : > { %6376 = vmatmul.msk.f32.gmra.mxu3 %vm4228_vm13, %v4572_v36  ;;  %v3606_v43 = vperm.slane %v3598_v23, %v7524_v59  ;;  %v3610_v63 = vsel %vm955_vm11, %v3594_v52, %v3609_v56  ;;  %v3607_v62 = vrot.slane %v3594_v52, 4  ;;  %v3530_v8 = vsel %vm955_vm11, %v2129_v4, %v2118_v48 }
 0x537   : > { %v3618_v9 = vperm.slane %v3610_v63, %v7524_v59  ;;  %v3596_v45 = vsel %vm955_vm11, %v3595_v30, %v3577_v17  ;;  %v3534_v3 = vperm.slane %v3530_v8, %v7492_v22  ;;  %v3525_v60 = vsel %vm955_vm11, %v3524_v53, %v2124_v28 }
 0x538   : > { %v3602_v0 = vperm.slane %v3596_v45, %v7524_v59  ;;  %v3608_v12 = vsel %vm955_vm11, %v3607_v62, %v3588_v15  ;;  %v3529_v10 = vperm.slane %v3525_v60, %v7492_v22  ;;  %v3536_v39 = vsel %vm955_vm11, %v3535_v16, %v2128_v6 }
 0x539   : > { %v4513_v42 = vpop.xlane.xlu2 %4512  ;;  %v3623_v29 = vrot.slane %v3618_v9, 4  ;;  %v3614_v33 = vperm.slane %v3608_v12, %v7524_v59  ;;  %v3543_v57 = vrot.slane %v3523_v37, 4  ;;  %v3555_v2 = vrot.slane %v3534_v3, 4 }
 0x53a   : > { %6732 = vrcp.f32 %v4513_v42  ;;  %v3540_v24 = vperm.slane %v3536_v39, %v7492_v22  ;;  %v3625_v47 = vrot.slane %v3606_v43, 4  ;;  %v3541_v5 = vrot.slane %v3529_v10, 4  ;;  %v4633_v39 = vpop.f32.mrf.mxu1 }
 0x53b   : > { %v3624_v4 = vsel %vm955_vm11, %v3623_v29, %v3606_v43  ;;  %v3619_v48 = vrot.slane %v3614_v33, 4  ;;  %6734 = vrcp.f32 %v4495_v21  ;;  %v3544_v44 = vsel %vm955_vm11, %v3529_v10, %v3543_v57 }
 0x53c   : > { %5007 = vmatpush.msrb.mxu2 %v3624_v4  ;;  %v3621_v61 = vrot.slane %v3602_v0, 4  ;;  %v3552_v49 = vperm.slane %v3544_v44, %v7524_v59  ;;  %v3556_v17 = vsel %vm955_vm11, %v3540_v24, %v3555_v2  ;;  %v3626_v34 = vsel %vm955_vm11, %v3618_v9, %v3625_v47 }
 0x53d   : > { %v3620_v25 = vsel %vm955_vm11, %v3619_v48, %v3602_v0  ;;  %v3564_v18 = vperm.slane %v3556_v17, %v7524_v59  ;;  %5036 = vmatpush.msrb.mxu3 %v3626_v34  ;;  %v3542_v11 = vsel %vm955_vm11, %v3541_v5, %v3523_v37  ;;  %v3553_v31 = vrot.slane %v3540_v24, 4 }
 0x53e   : > { %4949 = vmatpush.msrb.mxu0 %v3620_v25  ;;  %v3622_v55 = vsel %vm955_vm11, %v3614_v33, %v3621_v61  ;;  %v3548_v38 = vperm.slane %v3542_v11, %v7524_v59  ;;  %v3571_v20 = vrot.slane %v3552_v49, 4  ;;  %6736 = vrcp.f32 %v4516_v1 }
 0x53f   : > { %4978 = vmatpush.msrb.mxu1 %v3622_v55  ;;  %v3569_v21 = vrot.slane %v3564_v18, 4  ;;  %v3554_v40 = vsel %vm955_vm11, %v3553_v31, %v3534_v3 }
 0x540   : > { %v6733_v15 = vpop.eup %6732  ;;  %v3560_v27 = vperm.slane %v3554_v40, %v7524_v59  ;;  %v3572_v36 = vsel %vm955_vm11, %v3564_v18, %v3571_v20  ;;  %v3567_v52 = vrot.slane %v3548_v38, 4 }
 0x541   : > { %v4579_v16 = vmul.f32 %v6733_v15, %v9981_v54  ;;  %v4501_v41 = vpop.xlane.xlu2 %4500  ;;  %v6735_v56 = vpop.eup %6734  ;;  %v3570_v26 = vsel %vm955_vm11, %v3569_v21, %v3552_v49  ;;  %5037 = vmatpush.msrb.mxu3 %v3572_v36 }
 0x542   : > { %6738 = vrcp.f32 %v4501_v41  ;;  %5008 = vmatpush.msrb.mxu2 %v3570_v26  ;;  %v3565_v23 = vrot.slane %v3560_v27, 4  ;;  %v3568_v30 = vsel %vm955_vm11, %v3560_v27, %v3567_v52  ;;  %v4573_v54 = vmul.f32 %v6735_v56, %v9959_v35  ;;  %v4636_v5 = vpop.f32.mrf.mxu1 }
 0x543   : > { %6383 = vmatmul.msk.f32.vlgmr.msrb.gmra.mxu3 %vm4228_vm13, %v4579_v16  ;;  %4979 = vmatpush.msrb.mxu1 %v3568_v30  ;;  %v5115_v56 = vrot.slane %v4636_v5, 4 }
 0x544   : > { %v3566_v28 = vsel %vm955_vm11, %v3565_v23, %v3548_v38  ;;  %v6737_v6 = vpop.eup %6736 }
 0x545   : > { %4950 = vmatpush.msrb.mxu0 %v3566_v28  ;;  %v4580_v37 = vmul.f32 %v6737_v6, %v9972_v50 }
 0x546   : > { %6377 = vmatmul.msk.f32.vlgmr.msrb.gmra.mxu0 %vm4228_vm13, %v4573_v54 }
 0x548   : > { %v6739_v43 = vpop.eup %6738 }
 0x549   : > { %v4575_v63 = vmul.f32 %v6739_v43, %v9992_v19  ;;  %v4504_v62 = vpop.xlane.xlu2 %4503 }
 0x54a   : > { %6740 = vrcp.f32 %v4504_v62 }
 0x54b   : > { %6379 = vmatmul.msk.f32.vlgmr.msrb.gmra.mxu1 %vm4228_vm13, %v4575_v63  ;;  %6384 = vmatmul.msk.f32.gmra.mxu3 %vm4228_vm13, %v4580_v37 }
 0x54c   : > { %v4483_v9 = vpop.xlane.xlu1 %4482 }
 0x54d   : > { %6742 = vrcp.f32 %v4483_v9 }
 0x550   : > { %v6741_v35 = vpop.eup %6740 }
 0x551   : > { %v4576_v45 = vmul.f32 %v6741_v35, %v9998_v58 }
 0x553   : > { %v6743_v53 = vpop.eup %6742  ;;  %6380 = vmatmul.msk.f32.gmra.mxu1 %vm4228_vm13, %v4576_v45 }
 0x554   : > { %v4569_v8 = vmul.f32 %v6743_v53, %v10000_v51  ;;  %v4486_v42 = vpop.xlane.xlu1 %4485 }
 0x555   : > { %6744 = vrcp.f32 %v4486_v42 }
 0x556   : > { %6373 = vmatmul.msk.f32.vlgmr.msra.gmra.mxu2 %vm4228_vm13, %v4569_v8  ;;  %6746 = vrcp.f32 %v10099_v14  ;;  %v4662_v14 = vpop.f32.mrf.mxu2 }
 0x557   : > { %v5045_v10 = vrot.slane %v4662_v14, 4 }
 0x55b   : > { %v6745_v19 = vpop.eup %6744 }
 0x55c   : > { %v4510_v50 = vpop.xlane.xlu1 %4509  ;;  %v4570_v0 = vmul.f32 %v6745_v19, %v10007_v32  ;;  %v6747_v12 = vpop.eup %6746 }
 0x55d   : > { %6748 = vrcp.f32 %v4510_v50  ;;  %v4577_v58 = vmul.f32 %v6747_v12, %v9970_v7  ;;  %v4604_v32 = vpop.f32.mrf.mxu0 }
 0x55e   : > { %6374 = vmatmul.msk.f32.gmra.mxu2 %vm4228_vm13, %v4570_v0  ;;  %v5047_v57 = vrot.slane %v4604_v32, 4  ;;  %v5046_v2 = vsel %vm955_vm11, %v5045_v10, %v4604_v32 }
 0x560   : > { %v5048_v7 = vsel %vm955_vm11, %v4662_v14, %v5047_v57 }
 0x561   : > { %v5056_v48 = vperm.slane %v5048_v7, %v7492_v22 }
 0x563   : > { %v6749_v51 = vpop.eup %6748  ;;  %v5083_v17 = vrot.slane %v5056_v48, 4 }
 0x564   : > { %v4498_v3 = vpop.xlane.xlu1 %4497  ;;  %v4578_v60 = vmul.f32 %v6749_v51, %v10014_v13  ;;  %v5052_v13 = vperm.slane %v5046_v2, %v7492_v22 }
 0x565   : > { %6750 = vrcp.f32 %v4498_v3  ;;  %v4607_v4 = vpop.f32.mrf.mxu0 }
 0x566   : > { %6381 = vmatmul.msk.f32.vlgmr.msrb.gmra.mxu2 %vm4228_vm13, %v4577_v58  ;;  %v5103_v47 = vrot.slane %v4607_v4, 4  ;;  %v5071_v18 = vrot.slane %v5052_v13, 4 }
 0x56b   : > { %v6751_v29 = vpop.eup %6750 }
 0x56c   : > { %v4574_v33 = vmul.f32 %v6751_v29, %v10020_v46  ;;  %v5059_v46 = vrot.slane %v4633_v39, 4 }
 0x56e   : > { %6378 = vmatmul.msk.f32.gmra.mxu0 %vm4228_vm13, %v4574_v33  ;;  %6382 = vmatmul.msk.f32.gmra.mxu2 %vm4228_vm13, %v4578_v60 }
 0x570   : > { %v4665_v24 = vpop.f32.mrf.mxu2 }
 0x571   : > { %v5101_v61 = vrot.slane %v4665_v24, 4  ;;  %v5104_v1 = vsel %vm955_vm11, %v4665_v24, %v5103_v47 }
 0x572   : > { %v5112_v31 = vperm.slane %v5104_v1, %v7492_v22  ;;  %v4749_v37 = vpop.f32.mrf.mxu1 }
 0x573   : > { %v5102_v20 = vsel %vm955_vm11, %v5101_v61, %v4607_v4  ;;  %v5171_v3 = vrot.slane %v4749_v37, 4 }
 0x574   : > { %v5108_v26 = vperm.slane %v5102_v20, %v7492_v22  ;;  %v5139_v23 = vrot.slane %v5112_v31, 4 }
 0x576   : > { %v5127_v0 = vrot.slane %v5108_v26, 4 }
 0x57e   : > { %v4691_v44 = vpop.f32.mrf.mxu3 }
 0x57f   : > { %v5057_v25 = vrot.slane %v4691_v44, 4  ;;  %v5060_v49 = vsel %vm955_vm11, %v4691_v44, %v5059_v46 }
 0x580   : > { %v5068_v34 = vperm.slane %v5060_v49, %v7492_v22  ;;  %v10187_v54 = vpop.f32.mrf.mxu0 }
 0x581   : > { %v5058_v11 = vsel %vm955_vm11, %v5057_v25, %v4633_v39 }
 0x582   : > { %v5064_v55 = vperm.slane %v5058_v11, %v7492_v22  ;;  %v5081_v15 = vrot.slane %v5068_v34, 4  ;;  %v5084_v38 = vsel %vm955_vm11, %v5068_v34, %v5083_v17 }
 0x583   : > { %v5092_v16 = vperm.slane %v5084_v38, %v7524_v59 }
 0x584   : > { %v5069_v21 = vrot.slane %v5064_v55, 4  ;;  %v5072_v40 = vsel %vm955_vm11, %v5064_v55, %v5071_v18  ;;  %v5082_v41 = vsel %vm955_vm11, %v5081_v15, %v5056_v48 }
 0x585   : > { %v5080_v27 = vperm.slane %v5072_v40, %v7524_v59  ;;  %v5088_v36 = vperm.slane %v5082_v41, %v7524_v59  ;;  %v5099_v52 = vrot.slane %v5092_v16, 4  ;;  %v5159_v40 = vrot.slane %v10187_v54, 4 }
 0x586   : > { %v5070_v30 = vsel %vm955_vm11, %v5069_v21, %v5052_v13  ;;  %v4694_v28 = vpop.f32.mrf.mxu3 }
 0x587   : > { %v5076_v6 = vperm.slane %v5070_v30, %v7524_v59  ;;  %v5095_v43 = vrot.slane %v5080_v27, 4  ;;  %v5097_v63 = vrot.slane %v5088_v36, 4  ;;  %v5100_v62 = vsel %vm955_vm11, 0.0, %v5099_v52 }
 0x588   : > { %v5504_v9 = vsel %vm955_vm11, %v5099_v52, %v5088_v36  ;;  %v5509_v35 = vrot.slane %v5100_v62, 4  ;;  %v5113_v45 = vrot.slane %v4694_v28, 4  ;;  %v5116_v53 = vsel %vm955_vm11, %v4694_v28, %v5115_v56  ;;  %v10215_v25 = vpop.f32.mrf.mxu0 }
 0x589   : > { %v5093_v8 = vrot.slane %v5076_v6, 4  ;;  %v5096_v42 = vsel %vm955_vm11, 0.0, %v5095_v43  ;;  %v5098_v19 = vsel %vm955_vm11, 0.0, %v5097_v63  ;;  %v10196_v50 = vperm.slane %v5504_v9, %v7492_v22 }
 0x58a   : > { %v5498_v12 = vrot.slane %v5096_v42, 4  ;;  %v5510_v58 = vsel %vm955_vm11, %v5509_v35, %v5098_v19  ;;  %v5114_v51 = vsel %vm955_vm11, %v5113_v45, %v4636_v5  ;;  %v5124_v29 = vperm.slane %v5116_v53, %v7492_v22 }
 0x58b   : > { %v5094_v33 = vsel %vm955_vm11, 0.0, %v5093_v8  ;;  %v5493_v60 = vsel %vm955_vm11, %v5095_v43, %v5076_v6  ;;  %v5120_v32 = vperm.slane %v5114_v51, %v7492_v22  ;;  %v5514_v39 = vperm.slane %v5510_v58, %v7492_v22 }
 0x58c   : > { %v5497_v14 = vperm.slane %v5493_v60, %v7492_v22  ;;  %v5499_v10 = vsel %vm955_vm11, %v5498_v12, %v5094_v33  ;;  %v5137_v57 = vrot.slane %v5124_v29, 4  ;;  %v5140_v7 = vsel %vm955_vm11, %v5124_v29, %v5139_v23  ;;  %v10252_v60 = vpop.f32.mrf.mxu1 }
 0x58d   : > { %v5503_v2 = vperm.slane %v5499_v10, %v7492_v22  ;;  %v5529_v4 = vrot.slane %v10196_v50, 4  ;;  %v5125_v48 = vrot.slane %v5120_v32, 4  ;;  %v5128_v24 = vsel %vm955_vm11, %v5120_v32, %v5127_v0 }
 0x58e   : > { %v5148_v46 = vperm.slane %v5140_v7, %v7524_v59  ;;  %v5517_v13 = vrot.slane %v5497_v14, 4  ;;  %v5136_v47 = vperm.slane %v5128_v24, %v7524_v59  ;;  %v5138_v44 = vsel %vm955_vm11, %v5137_v57, %v5112_v31 }
 0x58f   : > { %v5530_v5 = vsel %vm955_vm11, %v5514_v39, %v5529_v4  ;;  %v4807_v61 = vpop.f32.mrf.mxu3  ;;  %v5515_v1 = vrot.slane %v5503_v2, 4  ;;  %v5126_v49 = vsel %vm955_vm11, %v5125_v48, %v5108_v26  ;;  %v5144_v17 = vperm.slane %v5138_v44, %v7524_v59 }
 0x590   : > { %v5155_v34 = vrot.slane %v5148_v46, 4  ;;  %v5518_v18 = vsel %vm955_vm11, %v5503_v2, %v5517_v13  ;;  %v5132_v11 = vperm.slane %v5126_v49, %v7524_v59  ;;  %v5151_v55 = vrot.slane %v5136_v47, 4 }
 0x591   : > { %v5526_v15 = vperm.slane %v5518_v18, %v7524_v59  ;;  %v5538_v31 = vperm.slane %v5530_v5, %v7524_v59  ;;  %v5153_v38 = vrot.slane %v5144_v17, 4  ;;  %v5169_v21 = vrot.slane %v4807_v61, 4 }
 0x592   : > { %v5156_v20 = vsel %vm955_vm11, 0.0, %v5155_v34  ;;  %v5558_v16 = vsel %vm955_vm11, %v5155_v34, %v5144_v17  ;;  %v5215_v41 = vrot.slane %v10215_v25, 4  ;;  %v5149_v27 = vrot.slane %v5132_v11, 4 }
 0x593   : > { %v5152_v36 = vsel %vm955_vm11, 0.0, %v5151_v55  ;;  %v10229_v52 = vperm.slane %v5558_v16, %v7492_v22  ;;  %v5563_v56 = vrot.slane %v5156_v20, 4  ;;  %v5543_v26 = vrot.slane %v5538_v31, 4 }
 0x594   : > { %v5545_v23 = vrot.slane %v5526_v15, 4  ;;  %v5154_v30 = vsel %vm955_vm11, 0.0, %v5153_v38  ;;  %v5170_v28 = vsel %vm955_vm11, %v5169_v21, %v4749_v37  ;;  %v5172_v6 = vsel %vm955_vm11, %v4807_v61, %v5171_v3 }
 0x595   : > { %v5516_v43 = vsel %vm955_vm11, %v5515_v1, %v5497_v14  ;;  %v5544_v63 = vsel %vm955_vm11, %v5543_v26, %v5526_v15  ;;  %v5176_v35 = vperm.slane %v5170_v28, %v7492_v22  ;;  %v5180_v45 = vperm.slane %v5172_v6, %v7492_v22 }
 0x596   : > { %v5546_v62 = vsel %vm955_vm11, %v5538_v31, %v5545_v23  ;;  %v4778_v9 = vpop.f32.mrf.mxu2  ;;  %5965 = vrot.lane.b32.xlu1 %v5544_v63, %s7006_s14  ;;  %v10243_v8 = vperm.slane %v5516_v43, %v7524_v59  ;;  %v5527_v42 = vrot.slane %v5514_v39, 4  ;;  %v5564_v19 = vsel %vm955_vm11, %v5563_v56, %v5154_v30 }
 0x597   : > { %5997 = vrot.lane.b32.xlu2 %v5546_v62, %s7007_s26  ;;  %v5157_v37 = vrot.slane %v4778_v9, 4  ;;  %v5160_v53 = vsel %vm955_vm11, %v4778_v9, %v5159_v40  ;;  %v5181_v12 = vrot.slane %v5176_v35, 4  ;;  %v5193_v58 = vrot.slane %v5180_v45, 4 }
 0x598   : > { %v5168_v0 = vperm.slane %v5160_v53, %v7492_v22  ;;  %v5552_v3 = vrot.slane %v5152_v36, 4  ;;  %v5528_v29 = vsel %vm955_vm11, %v5527_v42, %v10196_v50  ;;  %v5541_v33 = vrot.slane %v10243_v8, 4 }
 0x599   : > { %v5158_v51 = vsel %vm955_vm11, %v5157_v37, %v10187_v54  ;;  %v10257_v39 = vperm.slane %v5528_v29, %v7524_v59  ;;  %v5150_v7 = vsel %vm955_vm11, 0.0, %v5149_v27  ;;  %v5547_v54 = vsel %vm955_vm11, %v5151_v55, %v5132_v11 }
 0x59a   : > { %v5164_v32 = vperm.slane %v5158_v51, %v7492_v22  ;;  %v5195_v14 = vrot.slane %v5168_v0, 4  ;;  %v5194_v10 = vsel %vm955_vm11, %v5193_v58, %v5168_v0  ;;  %v5568_v50 = vperm.slane %v5564_v19, %v7492_v22 }
 0x59b   : > { %v5200_v57 = vperm.slane %v5194_v10, %v7524_v59  ;;  %v5542_v24 = vsel %vm955_vm11, %v10257_v39, %v5541_v33  ;;  %v5227_v46 = vrot.slane %v10252_v60, 4  ;;  %v5551_v44 = vperm.slane %v5547_v54, %v7492_v22 }
 0x59c   : > { %v5183_v2 = vrot.slane %v5164_v32, 4  ;;  %v5182_v4 = vsel %vm955_vm11, %v5181_v12, %v5164_v32  ;;  %v5196_v48 = vsel %vm955_vm11, %v5180_v45, %v5195_v14  ;;  %5933 = vrot.lane.b32.xlu0 %v5542_v24, %s7008_s25  ;;  %v5553_v49 = vsel %vm955_vm11, %v5552_v3, %v5150_v7 }
 0x59d   : > { %v5188_v13 = vperm.slane %v5182_v4, %v7524_v59  ;;  %v5204_v47 = vperm.slane %v5196_v48, %v7524_v59  ;;  %v5209_v61 = vrot.slane %v5200_v57, 4  ;;  %v5583_v17 = vrot.slane %v10229_v52, 4 }
 0x59e   : > { %v5184_v5 = vsel %vm955_vm11, %v5176_v35, %v5183_v2  ;;  %v4781_v1 = vpop.f32.mrf.mxu2  ;;  %v5581_v55 = vrot.slane %v5568_v50, 4  ;;  %v5557_v38 = vperm.slane %v5553_v49, %v7492_v22  ;;  %v5571_v20 = vrot.slane %v5551_v44, 4 }
 0x59f   : > { %v5192_v34 = vperm.slane %v5184_v5, %v7524_v59  ;;  %v5205_v18 = vrot.slane %v5188_v13, 4  ;;  %v5211_v11 = vrot.slane %v5204_v47, 4  ;;  %v5213_v15 = vrot.slane %v4781_v1, 4 }
 0x5a0   : > { %v5216_v31 = vsel %vm955_vm11, %v4781_v1, %v5215_v41  ;;  %v5210_v36 = vsel %vm955_vm11, 0.0, %v5209_v61  ;;  %v5572_v23 = vsel %vm955_vm11, %v5557_v38, %v5571_v20  ;;  %v5584_v62 = vsel %vm955_vm11, %v5568_v50, %v5583_v17 }
 0x5a1   : > { %v5207_v16 = vrot.slane %v5192_v34, 4  ;;  %v5212_v21 = vsel %vm955_vm11, 0.0, %v5211_v11  ;;  %v5612_v40 = vsel %vm955_vm11, %v5211_v11, %v5200_v57  ;;  %v5224_v27 = vperm.slane %v5216_v31, %v7492_v22 }
 0x5a2   : > { %v5617_v56 = vrot.slane %v5212_v21, 4  ;;  %v5214_v26 = vsel %vm955_vm11, %v5213_v15, %v10215_v25  ;;  %v10287_v30 = vperm.slane %v5612_v40, %v7492_v22  ;;  %v5580_v63 = vperm.slane %v5572_v23, %v7524_v59 }
 0x5a3   : > { %v5208_v41 = vsel %vm955_vm11, 0.0, %v5207_v16  ;;  %v5220_v28 = vperm.slane %v5214_v26, %v7492_v22  ;;  %v5251_v6 = vrot.slane %v5224_v27, 4  ;;  %v5569_v9 = vrot.slane %v5557_v38, 4 }
 0x5a4   : > { %v5606_v43 = vrot.slane %v5208_v41, 4  ;;  %v5618_v35 = vsel %vm955_vm11, %v5617_v56, %v5210_v36  ;;  %v5592_v25 = vperm.slane %v5584_v62, %v7524_v59  ;;  %v5582_v37 = vsel %vm955_vm11, %v5581_v55, %v10229_v52 }
 0x5a5   : > { %v5239_v45 = vrot.slane %v5220_v28, 4  ;;  %v5570_v42 = vsel %vm955_vm11, %v5569_v9, %v5551_v44  ;;  %v10298_v19 = vperm.slane %v5582_v37, %v7524_v59  ;;  %v5206_v0 = vsel %vm955_vm11, 0.0, %v5205_v18 }
 0x5a6   : > { %v4810_v53 = vpop.f32.mrf.mxu3  ;;  %v5601_v12 = vsel %vm955_vm11, %v5207_v16, %v5188_v13  ;;  %v5597_v58 = vrot.slane %v5592_v25, 4  ;;  %v10304_v29 = vperm.slane %v5570_v42, %v7524_v59  ;;  %v5607_v32 = vsel %vm955_vm11, %v5606_v43, %v5206_v0 }
 0x5a7   : > { %v5225_v3 = vrot.slane %v4810_v53, 4  ;;  %v5228_v51 = vsel %vm955_vm11, %v4810_v53, %v5227_v46  ;;  %v5605_v52 = vperm.slane %v5601_v12, %v7492_v22  ;;  %v5622_v14 = vperm.slane %v5618_v35, %v7492_v22 }
 0x5a8   : > { %v5236_v33 = vperm.slane %v5228_v51, %v7492_v22  ;;  %v5598_v10 = vsel %vm955_vm11, %v5597_v58, %v5580_v63  ;;  %v5595_v7 = vrot.slane %v10304_v29, 4  ;;  %v5611_v54 = vperm.slane %v5607_v32, %v7492_v22 }
 0x5a9   : > { %v5226_v57 = vsel %vm955_vm11, %v5225_v3, %v10252_v60  ;;  %5967 = vrot.lane.b32.xlu1 %v5598_v10, %s7006_s14  ;;  %v5625_v48 = vrot.slane %v5605_v52, 4  ;;  %v5637_v13 = vrot.slane %v10287_v30, 4  ;;  %v5599_v18 = vrot.slane %v5580_v63, 4 }
 0x5aa   : > { %v5232_v50 = vperm.slane %v5226_v57, %v7492_v22  ;;  %v5249_v2 = vrot.slane %v5236_v33, 4  ;;  %v5252_v4 = vsel %vm955_vm11, %v5236_v33, %v5251_v6  ;;  %v5596_v46 = vsel %vm955_vm11, %v10298_v19, %v5595_v7  ;;  %v4865_v7 = vpop.f32.mrf.mxu1 }
 0x5ab   : > { %v5260_v24 = vperm.slane %v5252_v4, %v7524_v59  ;;  %5935 = vrot.lane.b32.xlu0 %v5596_v46, %s7008_s25  ;;  %v5626_v49 = vsel %vm955_vm11, %v5611_v54, %v5625_v48  ;;  %v5638_v34 = vsel %vm955_vm11, %v5622_v14, %v5637_v13  ;;  %v5623_v11 = vrot.slane %v5611_v54, 4 }
 0x5ac   : > { %v5237_v60 = vrot.slane %v5232_v50, 4  ;;  %v5240_v47 = vsel %vm955_vm11, %v5232_v50, %v5239_v45  ;;  %v5250_v44 = vsel %vm955_vm11, %v5249_v2, %v5224_v27  ;;  %v5634_v21 = vperm.slane %v5626_v49, %v7524_v59 }
 0x5ad   : > { %v5248_v5 = vperm.slane %v5240_v47, %v7524_v59  ;;  %v5256_v61 = vperm.slane %v5250_v44, %v7524_v59  ;;  %v5267_v1 = vrot.slane %v5260_v24, 4  ;;  %v5646_v40 = vperm.slane %v5638_v34, %v7524_v59 }
 0x5ae   : > { %v5238_v17 = vsel %vm955_vm11, %v5237_v60, %v5220_v28  ;;  %v5600_v28 = vsel %vm955_vm11, %v5592_v25, %v5599_v18  ;;  %v5624_v6 = vsel %vm955_vm11, %v5623_v11, %v5605_v52  ;;  %v5635_v9 = vrot.slane %v5622_v14, 4  ;;  %v4923_v3 = vpop.f32.mrf.mxu3  ;;  %v4836_v18 = vpop.f32.mrf.mxu0 }
 0x5af   : > { %v5244_v55 = vperm.slane %v5238_v17, %v7524_v59  ;;  %v5263_v15 = vrot.slane %v5248_v5, 4  ;;  %v5265_v31 = vrot.slane %v5256_v61, 4  ;;  %v5268_v38 = vsel %vm955_vm11, 0.0, %v5267_v1 }
 0x5b0   : > { %v5666_v20 = vsel %vm955_vm11, %v5267_v1, %v5256_v61  ;;  %v5671_v16 = vrot.slane %v5268_v38, 4  ;;  %v5651_v26 = vrot.slane %v5646_v40, 4  ;;  %v10344_v62 = vperm.slane %v5624_v6, %v7524_v59 }
 0x5b1   : > { %v5261_v27 = vrot.slane %v5244_v55, 4  ;;  %v5264_v36 = vsel %vm955_vm11, 0.0, %v5263_v15  ;;  %v5266_v56 = vsel %vm955_vm11, 0.0, %v5265_v31  ;;  %v5670_v41 = vperm.slane %v5666_v20, %v7492_v22 }
 0x5b2   : > { %v5660_v23 = vrot.slane %v5264_v36, 4  ;;  %v5672_v43 = vsel %vm955_vm11, %v5671_v16, %v5266_v56  ;;  %v5652_v63 = vsel %vm955_vm11, %v5651_v26, %v5634_v21  ;;  %v5655_v45 = vsel %vm955_vm11, %v5263_v15, %v5244_v55  ;;  %v4868_v1 = vpop.f32.mrf.mxu1 }
 0x5b3   : > { %5999 = vrot.lane.b32.xlu0 %v5600_v28, %s7007_s26  ;;  %5969 = vrot.lane.b32.xlu1 %v5652_v63, %s7006_s14  ;;  %v5262_v35 = vsel %vm955_vm11, 0.0, %v5261_v27  ;;  %v5636_v25 = vsel %vm955_vm11, %v5635_v9, %v10287_v30  ;;  %v5649_v37 = vrot.slane %v10344_v62, 4  ;;  %v5659_v53 = vperm.slane %v5655_v45, %v7492_v22 }
 0x5b4   : > { %v10354_v42 = vperm.slane %v5636_v25, %v7524_v59  ;;  %v5653_v0 = vrot.slane %v5634_v21, 4  ;;  %v5661_v12 = vsel %vm955_vm11, %v5660_v23, %v5262_v35  ;;  %v5676_v58 = vperm.slane %v5672_v43, %v7492_v22 }
 0x5b5   : > { %v5665_v51 = vperm.slane %v5661_v12, %v7492_v22  ;;  %v5679_v33 = vrot.slane %v5659_v53, 4  ;;  %v5691_v52 = vrot.slane %v5670_v41, 4  ;;  %v5281_v11 = vrot.slane %v4923_v3, 4 }
 0x5b6   : > { %v5650_v30 = vsel %vm955_vm11, %v10354_v42, %v5649_v37  ;;  %v5689_v32 = vrot.slane %v5676_v58, 4  ;;  %v5654_v54 = vsel %vm955_vm11, %v5646_v40, %v5653_v0  ;;  %v5283_v55 = vrot.slane %v4865_v7, 4  ;;  %v4839_v27 = vpop.f32.mrf.mxu0 }
 0x5b7   : > { %5937 = vrot.lane.b32.xlu2 %v5650_v30, %s7008_s25  ;;  %v5680_v14 = vsel %vm955_vm11, %v5665_v51, %v5679_v33  ;;  %v5692_v10 = vsel %vm955_vm11, %v5676_v58, %v5691_v52  ;;  %v5677_v57 = vrot.slane %v5665_v51, 4  ;;  %v5282_v15 = vsel %vm955_vm11, %v5281_v11, %v4865_v7 }
 0x5b8   : > { %v5688_v50 = vperm.slane %v5680_v14, %v7524_v59  ;;  %v5700_v2 = vperm.slane %v5692_v10, %v7524_v59  ;;  %v5690_v48 = vsel %vm955_vm11, %v5689_v32, %v5670_v41  ;;  %v5284_v31 = vsel %vm955_vm11, %v4923_v3, %v5283_v55 }
 0x5b9   : > { %v5678_v4 = vsel %vm955_vm11, %v5677_v57, %v5659_v53  ;;  %v10375_v47 = vperm.slane %v5690_v48, %v7524_v59  ;;  %v4926_v61 = vpop.f32.mrf.mxu3  ;;  %v5339_v20 = vrot.slane %v4868_v1, 4  ;;  %v5288_v56 = vperm.slane %v5282_v15, %v7492_v22 }
 0x5ba   : > { %v5705_v24 = vrot.slane %v5700_v2, 4  ;;  %v10371_v46 = vperm.slane %v5678_v4, %v7524_v59  ;;  %v5707_v60 = vrot.slane %v5688_v50, 4  ;;  %v5337_v16 = vrot.slane %v4926_v61, 4 }
 0x5bb   : > { %6001 = vrot.lane.b32.xlu0 %v5654_v54, %s7007_s26  ;;  %v5292_v26 = vperm.slane %v5284_v31, %v7492_v22  ;;  %v5340_v23 = vsel %vm955_vm11, %v4926_v61, %v5339_v20  ;;  %v5271_v28 = vrot.slane %v4836_v18, 4  ;;  %v5293_v53 = vrot.slane %v5288_v56, 4 }
 0x5bc   : > { %v5706_v13 = vsel %vm955_vm11, %v5705_v24, %v5688_v50  ;;  %v5703_v44 = vrot.slane %v10371_v46, 4  ;;  %v5708_v49 = vsel %vm955_vm11, %v5700_v2, %v5707_v60  ;;  %v5338_v43 = vsel %vm955_vm11, %v5337_v16, %v4868_v1 }
 0x5bd   : > { %5971 = vrot.lane.b32.xlu1 %v5706_v13, %s7006_s14  ;;  %v5348_v35 = vperm.slane %v5340_v23, %v7492_v22  ;;  %v5305_v0 = vrot.slane %v5292_v26, 4  ;;  %v5344_v3 = vperm.slane %v5338_v43, %v7492_v22  ;;  %v5327_v57 = vrot.slane %v4839_v27, 4 }
 0x5be   : > { %v5704_v5 = vsel %vm955_vm11, %v10375_v47, %v5703_v44 }
 0x5bf   : > { %5939 = vrot.lane.b32.xlu2 %v5704_v5, %s7008_s25  ;;  %v5361_v7 = vrot.slane %v5348_v35, 4  ;;  %v5349_v60 = vrot.slane %v5344_v3, 4 }
 0x5c3   : > { %6003 = vrot.lane.b32.xlu0 %v5708_v49, %s7007_s26  ;;  %v4952_v54 = vpop.f32.mrf.mxu0 }
 0x5c4   : > { %v5383_v1 = vrot.slane %v4952_v54, 4 }
 0x5c6   : > { %v5039_v17 = vpop.f32.mrf.mxu3 }
 0x5c7   : > { %v5393_v21 = vrot.slane %v5039_v17, 4 }
 0x5c8   : > { %v4981_v34 = vpop.f32.mrf.mxu1 }
 0x5c9   : > { %v5395_v36 = vrot.slane %v4981_v34, 4  ;;  %v5394_v63 = vsel %vm955_vm11, %v5393_v21, %v4981_v34 }
 0x5ca   : > { %v10398_v51 = vperm.slane %v5394_v63, %v7492_v22 }
 0x5cb   : > { %v5396_v45 = vsel %vm955_vm11, %v5039_v17, %v5395_v36 }
 0x5cc   : > { %v10403_v30 = vperm.slane %v5396_v45, %v7492_v22  ;;  %v5405_v49 = vrot.slane %v10398_v51, 4 }
 0x5ce   : > { %v5042_v38 = vpop.f32.mrf.mxu3  ;;  %v5417_v17 = vrot.slane %v10403_v30, 4 }
 0x5cf   : > { %v5449_v41 = vrot.slane %v5042_v38, 4 }
 0x5d0   : > { %v4984_v40 = vpop.f32.mrf.mxu1 }
 0x5d1   : > { %v5451_v6 = vrot.slane %v4984_v40, 4  ;;  %v5450_v12 = vsel %vm955_vm11, %v5449_v41, %v4984_v40 }
 0x5d2   : > { %v10408_v50 = vperm.slane %v5450_v12, %v7492_v22 }
 0x5d3   : > { %v5452_v33 = vsel %vm955_vm11, %v5042_v38, %v5451_v6 }
 0x5d4   : > { %v10412_v4 = vperm.slane %v5452_v33, %v7492_v22  ;;  %v5461_v11 = vrot.slane %v10408_v50, 4 }
 0x5d6   : > { %v5473_v38 = vrot.slane %v10412_v4, 4 }
 0x5d9   : > { %v4894_v9 = vpop.f32.mrf.mxu2 }
 0x5da   : > { %v5269_v25 = vrot.slane %v4894_v9, 4  ;;  %v5272_v37 = vsel %vm955_vm11, %v4894_v9, %v5271_v28 }
 0x5db   : > { %v5280_v58 = vperm.slane %v5272_v37, %v7492_v22 }
 0x5dc   : > { %v5270_v52 = vsel %vm955_vm11, %v5269_v25, %v4836_v18 }
 0x5dd   : > { %v5276_v32 = vperm.slane %v5270_v52, %v7492_v22  ;;  %v5306_v14 = vsel %vm955_vm11, %v5305_v0, %v5280_v58  ;;  %v5307_v10 = vrot.slane %v5280_v58, 4 }
 0x5de   : > { %v5312_v2 = vperm.slane %v5306_v14, %v7524_v59 }
 0x5df   : > { %v5294_v48 = vsel %vm955_vm11, %v5293_v53, %v5276_v32  ;;  %v5295_v24 = vrot.slane %v5276_v32, 4  ;;  %v5308_v13 = vsel %vm955_vm11, %v5292_v26, %v5307_v10 }
 0x5e0   : > { %v5300_v44 = vperm.slane %v5294_v48, %v7524_v59  ;;  %v5316_v5 = vperm.slane %v5308_v13, %v7524_v59  ;;  %v5321_v61 = vrot.slane %v5312_v2, 4 }
 0x5e1   : > { %v5296_v34 = vsel %vm955_vm11, %v5288_v56, %v5295_v24  ;;  %v4897_v18 = vpop.f32.mrf.mxu2 }
 0x5e2   : > { %v5304_v55 = vperm.slane %v5296_v34, %v7524_v59  ;;  %v5317_v15 = vrot.slane %v5300_v44, 4  ;;  %v5323_v31 = vrot.slane %v5316_v5, 4  ;;  %v5322_v20 = vsel %vm955_vm11, 0.0, %v5321_v61 }
 0x5e3   : > { %v5325_v16 = vrot.slane %v4897_v18, 4  ;;  %v5328_v21 = vsel %vm955_vm11, %v4897_v18, %v5327_v57 }
 0x5e4   : > { %v5319_v40 = vrot.slane %v5304_v55, 4  ;;  %v5324_v36 = vsel %vm955_vm11, 0.0, %v5323_v31  ;;  %v5720_v26 = vsel %vm955_vm11, %v5323_v31, %v5312_v2  ;;  %v5336_v56 = vperm.slane %v5328_v21, %v7492_v22 }
 0x5e5   : > { %v10430_v23 = vperm.slane %v5720_v26, %v7492_v22  ;;  %v5725_v41 = vrot.slane %v5324_v36, 4  ;;  %v5326_v28 = vsel %vm955_vm11, %v5325_v16, %v4839_v27  ;;  %v5318_v6 = vsel %vm955_vm11, 0.0, %v5317_v15 }
 0x5e6   : > { %v5320_v43 = vsel %vm955_vm11, 0.0, %v5319_v40  ;;  %v5332_v63 = vperm.slane %v5326_v28, %v7492_v22  ;;  %v5362_v9 = vsel %vm955_vm11, %v5361_v7, %v5336_v56  ;;  %v5363_v45 = vrot.slane %v5336_v56, 4 }
 0x5e7   : > { %v5714_v25 = vrot.slane %v5320_v43, 4  ;;  %v5726_v37 = vsel %vm955_vm11, %v5725_v41, %v5322_v20  ;;  %v5368_v53 = vperm.slane %v5362_v9, %v7524_v59  ;;  %v5709_v0 = vsel %vm955_vm11, %v5319_v40, %v5300_v44 }
 0x5e8   : > { %v5350_v12 = vsel %vm955_vm11, %v5349_v60, %v5332_v63  ;;  %v5351_v58 = vrot.slane %v5332_v63, 4  ;;  %v5364_v27 = vsel %vm955_vm11, %v5348_v35, %v5363_v45  ;;  %v10443_v33 = vperm.slane %v5709_v0, %v7492_v22 }
 0x5e9   : > { %v10446_v52 = vperm.slane %v5350_v12, %v7524_v59  ;;  %v5372_v32 = vperm.slane %v5364_v27, %v7524_v59  ;;  %v5377_v14 = vrot.slane %v5368_v53, 4  ;;  %v5010_v10 = vpop.f32.mrf.mxu2  ;;  %v5715_v57 = vsel %vm955_vm11, %v5714_v25, %v5318_v6  ;;  %v6049_v27 = vld [vmem:[#allocation8 + $0x18] sm:$0xff] }
 0x5ea   : > { %v5352_v7 = vsel %vm955_vm11, %v5344_v3, %v5351_v58  ;;  %v5381_v2 = vrot.slane %v5010_v10, 4  ;;  %v5384_v48 = vsel %vm955_vm11, %v5010_v10, %v5383_v1  ;;  %v10453_v24 = vperm.slane %v5715_v57, %v7492_v22  ;;  %6090 = vmatpush.msra.mxu0 %v6049_v27 }
 0x5eb   : > { %v5360_v35 = vperm.slane %v5352_v7, %v7524_v59  ;;  %v5373_v13 = vrot.slane %v10446_v52, 4  ;;  %v5378_v60 = vsel %vm955_vm11, 0.0, %v5377_v14  ;;  %v5379_v44 = vrot.slane %v5372_v32, 4  ;;  %v4955_v5 = vpop.f32.mrf.mxu0  ;;  %v6048_v32 = vld [vmem:[#allocation8 + $0x10] sm:$0xff] }
 0x5ec   : > { %v5382_v61 = vsel %vm955_vm11, %v5381_v2, %v4952_v54  ;;  %v5392_v34 = vperm.slane %v5384_v48, %v7492_v22  ;;  %v5439_v18 = vrot.slane %v4955_v5, 4  ;;  %v10461_v3 = vperm.slane %v5726_v37, %v7492_v22  ;;  %6091 = vmatpush.msra.mxu0 %v6048_v32 }
 0x5ed   : > { %v10463_v1 = vrot.slane %v5360_v35, 4  ;;  %v5380_v55 = vsel %vm955_vm11, 0.0, %v5379_v44  ;;  %v5774_v15 = vsel %vm955_vm11, %v5379_v44, %v5368_v53  ;;  %v5388_v31 = vperm.slane %v5382_v61, %v7492_v22 }
 0x5ee   : > { %v10469_v20 = vperm.slane %v5774_v15, %v7492_v22  ;;  %v5779_v16 = vrot.slane %v5380_v55, 4  ;;  %v5418_v54 = vsel %vm955_vm11, %v5417_v17, %v5392_v34  ;;  %v5419_v21 = vrot.slane %v5392_v34, 4 }
 0x5ef   : > { %v10474_v40 = vsel %vm955_vm11, 0.0, %v10463_v1  ;;  %v5406_v36 = vsel %vm955_vm11, %v5405_v49, %v5388_v31  ;;  %v5407_v26 = vrot.slane %v5388_v31, 4  ;;  %v5424_v56 = vperm.slane %v5418_v54, %v7524_v59 }
 0x5f0   : > { %v5768_v41 = vrot.slane %v10474_v40, 4  ;;  %v10480_v28 = vsel %vm955_vm11, %v5779_v16, %v5378_v60  ;;  %v10483_v6 = vperm.slane %v5406_v36, %v7524_v59  ;;  %v5420_v17 = vsel %vm955_vm11, %v10403_v30, %v5419_v21 }
 0x5f1   : > { %v5408_v43 = vsel %vm955_vm11, %v10398_v51, %v5407_v26  ;;  %v5428_v63 = vperm.slane %v5420_v17, %v7524_v59  ;;  %v5433_v49 = vrot.slane %v5424_v56, 4  ;;  %v5733_v9 = vrot.slane %v10443_v33, 4  ;;  %v5013_v45 = vpop.f32.mrf.mxu2 }
 0x5f2   : > { %v5416_v25 = vperm.slane %v5408_v43, %v7524_v59  ;;  %v5429_v37 = vrot.slane %v10483_v6, 4  ;;  %v5745_v53 = vrot.slane %v10430_v23, 4  ;;  %v5437_v0 = vrot.slane %v5013_v45, 4 }
 0x5f3   : > { %v5434_v12 = vsel %vm955_vm11, 0.0, %v5433_v49  ;;  %v5435_v58 = vrot.slane %v5428_v63, 4  ;;  %v5734_v30 = vsel %vm955_vm11, %v10453_v24, %v5733_v9  ;;  %v5440_v51 = vsel %vm955_vm11, %v5013_v45, %v5439_v18  ;;  %v6047_v63 = vld [vmem:[#allocation8 + $0x8] sm:$0xff]  ;;  %v6046_v45 = vld [vmem:[#allocation8] sm:$0xff] }
 0x5f4   : > { %v10498_v14 = vrot.slane %v5416_v25, 4  ;;  %v5742_v10 = vperm.slane %v5734_v30, %v7524_v59  ;;  %v5746_v57 = vsel %vm955_vm11, %v10461_v3, %v5745_v53  ;;  %v5438_v7 = vsel %vm955_vm11, %v5437_v0, %v4955_v5  ;;  %6092 = vmatpush.msra.mxu0 %v6047_v63 }
 0x5f5   : > { %v5436_v2 = vsel %vm955_vm11, 0.0, %v5435_v58  ;;  %v5828_v48 = vsel %vm955_vm11, %v5435_v58, %v5424_v56  ;;  %v5754_v35 = vperm.slane %v5746_v57, %v7524_v59  ;;  %v5444_v60 = vperm.slane %v5438_v7, %v7492_v22 }
 0x5f6   : > { %v10510_v44 = vsel %vm955_vm11, 0.0, %v10498_v14  ;;  %v10513_v61 = vperm.slane %v5828_v48, %v7492_v22  ;;  %v5833_v34 = vrot.slane %v5436_v2, 4  ;;  %v5448_v18 = vperm.slane %v5440_v51, %v7492_v22  ;;  %6093 = vmatpush.msra.mxu0 %v6046_v45 }
 0x5f7   : > { %v5822_v5 = vrot.slane %v10510_v44, 4  ;;  %v5759_v55 = vrot.slane %v5754_v35, 4  ;;  %v5462_v15 = vsel %vm955_vm11, %v5461_v11, %v5444_v60  ;;  %v5463_v31 = vrot.slane %v5444_v60, 4 }
 0x5f8   : > { %v5834_v16 = vsel %vm955_vm11, %v5833_v34, %v5434_v12  ;;  %v5468_v54 = vperm.slane %v5462_v15, %v7524_v59  ;;  %v5474_v21 = vsel %vm955_vm11, %v5473_v38, %v5448_v18  ;;  %v5475_v36 = vrot.slane %v5448_v18, 4 }
 0x5f9   : > { %v5760_v26 = vsel %vm955_vm11, %v5759_v55, %v5742_v10  ;;  %v5464_v56 = vsel %vm955_vm11, %v10408_v50, %v5463_v31  ;;  %v5480_v17 = vperm.slane %v5474_v21, %v7524_v59  ;;  %v5761_v43 = vrot.slane %v5742_v10, 4 }
 0x5fa   : > { %5973 = vrot.lane.b32.xlu1 %v5760_v26, %s7006_s14  ;;  %v5472_v11 = vperm.slane %v5464_v56, %v7524_v59  ;;  %v5476_v49 = vsel %vm955_vm11, %v10412_v4, %v5475_v36  ;;  %v5485_v9 = vrot.slane %v5468_v54, 4  ;;  %v5731_v38 = vrot.slane %v10453_v24, 4 }
 0x5fb   : > { %v5484_v25 = vperm.slane %v5476_v49, %v7524_v59  ;;  %v5489_v53 = vrot.slane %v5480_v17, 4  ;;  %v5762_v50 = vsel %vm955_vm11, %v5754_v35, %v5761_v43  ;;  %v5743_v0 = vrot.slane %v10461_v3, 4 }
 0x5fc   : > { %v10538_v12 = vsel %vm955_vm11, 0.0, %v5485_v9  ;;  %v5487_v58 = vrot.slane %v5472_v11, 4  ;;  %6005 = vrot.lane.b32.xlu0 %v5762_v50, %s7007_s26  ;;  %v5732_v4 = vsel %vm955_vm11, %v5731_v38, %v10443_v33  ;;  %v5374_v24 = vsel %vm955_vm11, 0.0, %v5373_v13 }
 0x5fd   : > { %v5490_v30 = vsel %vm955_vm11, 0.0, %v5489_v53  ;;  %v5491_v51 = vrot.slane %v5484_v25, 4  ;;  %v10548_v27 = vperm.slane %v5732_v4, %v7524_v59  ;;  %v5744_v3 = vsel %vm955_vm11, %v5743_v0, %v10430_v23 }
 0x5fe   : > { %v5488_v32 = vsel %vm955_vm11, 0.0, %v5487_v58  ;;  %v5871_v10 = vsel %vm955_vm11, %v5487_v58, %v5468_v54  ;;  %v10555_v33 = vperm.slane %v5744_v3, %v7524_v59  ;;  %v5763_v13 = vsel %vm955_vm11, %v10463_v1, %v10446_v52 }
 0x5ff   : > { %v5492_v57 = vsel %vm955_vm11, 0.0, %v5491_v51  ;;  %v5876_v7 = vrot.slane %v5488_v32, 4  ;;  %v5882_v2 = vsel %vm955_vm11, %v5491_v51, %v5480_v17  ;;  %v5757_v48 = vrot.slane %v10548_v27, 4 }
 0x600   : > { %v10564_v23 = vperm.slane %v5882_v2, %v7492_v22  ;;  %v5887_v35 = vrot.slane %v5492_v57, 4  ;;  %v5767_v60 = vperm.slane %v5763_v13, %v7492_v22  ;;  %v5769_v44 = vsel %vm955_vm11, %v5768_v41, %v5374_v24 }
 0x601   : > { %v5758_v52 = vsel %vm955_vm11, %v10555_v33, %v5757_v48  ;;  %v5773_v1 = vperm.slane %v5769_v44, %v7492_v22  ;;  %v5784_v34 = vperm.slane %v10480_v28, %v7492_v22  ;;  %v5799_v18 = vrot.slane %v10469_v20, 4 }
 0x602   : > { %v5888_v55 = vsel %vm955_vm11, %v5887_v35, %v5490_v30  ;;  %5941 = vrot.lane.b32.xlu2 %v5758_v52, %s7008_s25  ;;  %v5787_v15 = vrot.slane %v5767_v60, 4  ;;  %v5430_v40 = vsel %vm955_vm11, 0.0, %v5429_v37  ;;  %v5817_v41 = vsel %vm955_vm11, %v10498_v14, %v10483_v6 }
 0x603   : > { %v5800_v31 = vsel %vm955_vm11, %v5784_v34, %v5799_v18  ;;  %v5785_v54 = vrot.slane %v5773_v1, 4  ;;  %v5797_v21 = vrot.slane %v5784_v34, 4  ;;  %v5821_v28 = vperm.slane %v5817_v41, %v7492_v22 }
 0x604   : > { %v5788_v36 = vsel %vm955_vm11, %v5773_v1, %v5787_v15  ;;  %v5808_v26 = vperm.slane %v5800_v31, %v7524_v59  ;;  %v5823_v56 = vsel %vm955_vm11, %v5822_v5, %v5430_v40  ;;  %v5838_v17 = vperm.slane %v5834_v16, %v7492_v22 }
 0x605   : > { %v5796_v37 = vperm.slane %v5788_v36, %v7524_v59  ;;  %v5786_v43 = vsel %vm955_vm11, %v5785_v54, %v5767_v60  ;;  %v5798_v6 = vsel %vm955_vm11, %v5797_v21, %v10469_v20  ;;  %v5827_v14 = vperm.slane %v5823_v56, %v7492_v22 }
 0x606   : > { %v5813_v63 = vrot.slane %v5808_v26, 4  ;;  %v10596_v11 = vperm.slane %v5786_v43, %v7524_v59  ;;  %v10599_v49 = vperm.slane %v5798_v6, %v7524_v59  ;;  %v5841_v9 = vrot.slane %v5821_v28, 4 }
 0x607   : > { %v5815_v5 = vrot.slane %v5796_v37, 4  ;;  %v5853_v16 = vrot.slane %v10513_v61, 4  ;;  %v5839_v38 = vrot.slane %v5827_v14, 4  ;;  %v5851_v45 = vrot.slane %v5838_v17, 4 }
 0x608   : > { %v5814_v25 = vsel %vm955_vm11, %v5813_v63, %v5796_v37  ;;  %v5811_v53 = vrot.slane %v10596_v11, 4  ;;  %v5842_v20 = vsel %vm955_vm11, %v5827_v14, %v5841_v9  ;;  %v5875_v50 = vperm.slane %v5871_v10, %v7492_v22  ;;  %v5966_v41 = vpop.permute.xlu1 %5965 }
 0x609   : > { %5975 = vrot.lane.b32.xlu1 %v5814_v25, %s7006_s14  ;;  %v5816_v0 = vsel %vm955_vm11, %v5808_v26, %v5815_v5  ;;  %v5850_v58 = vperm.slane %v5842_v20, %v7524_v59  ;;  %v5854_v4 = vsel %vm955_vm11, %v5838_v17, %v5853_v16  ;;  %v5840_v24 = vsel %vm955_vm11, %v5839_v38, %v5821_v28  ;;  %v5998_v28 = vpop.permute.xlu2 %5997 }
 0x60a   : > { %6007 = vrot.lane.b32.xlu0 %v5816_v0, %s7007_s26  ;;  %v5812_v30 = vsel %vm955_vm11, %v10599_v49, %v5811_v53  ;;  %v5862_v51 = vperm.slane %v5854_v4, %v7524_v59  ;;  %v10616_v3 = vperm.slane %v5840_v24, %v7524_v59  ;;  %v5852_v32 = vsel %vm955_vm11, %v5851_v45, %v10513_v61 }
 0x60b   : > { %5943 = vrot.lane.b32.xlu2 %v5812_v30, %s7008_s25  ;;  %v5869_v10 = vrot.slane %v5850_v58, 4  ;;  %v5877_v13 = vsel %vm955_vm11, %v5876_v7, %v10538_v12  ;;  %v5892_v57 = vperm.slane %v5888_v55, %v7492_v22  ;;  %v5895_v60 = vrot.slane %v5875_v50, 4 }
 0x60c   : > { %v5867_v2 = vrot.slane %v5862_v51, 4  ;;  %v5865_v48 = vrot.slane %v10616_v3, 4  ;;  %v5881_v35 = vperm.slane %v5877_v13, %v7492_v22  ;;  %v10627_v44 = vperm.slane %v5852_v32, %v7524_v59 }
 0x60d   : > { %v5907_v52 = vrot.slane %v10564_v23, 4  ;;  %v5539_v61 = vrot.slane %v10257_v39, 4  ;;  %v5870_v34 = vsel %vm955_vm11, %v5862_v51, %v5869_v10  ;;  %v5905_v21 = vrot.slane %v5892_v57, 4 }
 0x60e   : > { %v5868_v1 = vsel %vm955_vm11, %v5867_v2, %v5850_v58  ;;  %v5896_v12 = vsel %vm955_vm11, %v5881_v35, %v5895_v60  ;;  %v5893_v7 = vrot.slane %v5881_v35, 4  ;;  %v5866_v18 = vsel %vm955_vm11, %v10627_v44, %v5865_v48  ;;  %v5934_v15 = vpop.permute.xlu0 %5933 }
 0x60f   : > { %v5904_v22 = vperm.slane %v5896_v12, %v7524_v59  ;;  %v5908_v55 = vsel %vm955_vm11, %v5892_v57, %v5907_v52  ;;  %v5540_v40 = vsel %vm955_vm11, %v5539_v61, %v10243_v8  ;;  %v5906_v37 = vsel %vm955_vm11, %v5905_v21, %v10564_v23 }
 0x610   : > { %v5916_v39 = vperm.slane %v5908_v55, %v7524_v59  ;;  %v6021_v31 = vsel %vm3627_vm12, %v5540_v40, %v5934_v15  ;;  %v5894_v54 = vsel %vm955_vm11, %v5893_v7, %v5875_v50  ;;  %v10657_v14 = vperm.slane %v5906_v37, %v7524_v59 }
 0x611   : > { %5977 = vrot.lane.b32.xlu1 %v5868_v1, %s7006_s14  ;;  %v6029_v36 = vsel %vm4228_vm13, %v6021_v31, %v5966_v41  ;;  %v10646_v26 = vperm.slane %v5894_v54, %v7524_v59  ;;  %v5923_v17 = vrot.slane %v5904_v22, 4  ;;  %v5593_v23 = vrot.slane %v10298_v19, 4  ;;  %v5938_v50 = vpop.permute.xlu2 %5937 }
 0x612   : > { %6009 = vrot.lane.b32.xlu0 %v5870_v34, %s7007_s26  ;;  %v5921_v8 = vrot.slane %v5916_v39, 4  ;;  %v6038_v56 = vsel %vm6037_vm14, %v6029_v36, %v5998_v28  ;;  %v5647_v20 = vrot.slane %v10354_v42, 4  ;;  %v5701_v30 = vrot.slane %v10375_v47, 4 }
 0x613   : > { %5945 = vrot.lane.b32.xlu2 %v5866_v18, %s7008_s25  ;;  %6385 = vmatmul.msk.f32.vlgmr.msra.gmra.mxu0 %vm401_vm0, %v6038_v56  ;;  %v5919_v43 = vrot.slane %v10646_v26, 4  ;;  %v5924_v63 = vsel %vm955_vm11, %v5916_v39, %v5923_v17  ;;  %v5594_v16 = vsel %vm955_vm11, %v5593_v23, %v10304_v29  ;;  %v5755_v2 = vrot.slane %v10555_v33, 4  ;;  %v6605_v17 = vld [vmem:[%s10786_s6] ss:$0 sm:$0xff] }
 0x614   : > { %v5922_v6 = vsel %vm955_vm11, %v5921_v8, %v5904_v22  ;;  %v5648_v19 = vsel %vm955_vm11, %v5647_v20, %v10344_v62  ;;  %v5702_v32 = vsel %vm955_vm11, %v5701_v30, %v10371_v46  ;;  %v5809_v48 = vrot.slane %v10599_v49, 4 }
 0x615   : > { %v5920_v9 = vsel %vm955_vm11, %v10657_v14, %v5919_v43  ;;  %v6023_v58 = vsel %vm3627_vm12, %v5648_v19, %v5938_v50  ;;  %v5756_v47 = vsel %vm955_vm11, %v5755_v2, %v10548_v27  ;;  %v5863_v18 = vrot.slane %v10627_v44, 4  ;;  %v6756_v19 = vld [vmem:[%s7187_s17 + $0x20] sm:$0xff] }
 0x616   : > { %v5810_v35 = vsel %vm955_vm11, %v5809_v48, %v10596_v11  ;;  %v5917_v54 = vrot.slane %v10657_v14, 4 }
 0x617   : > { %v5864_v55 = vsel %vm955_vm11, %v5863_v18, %v10616_v3 }
 0x618   : > { %v5918_v21 = vsel %vm955_vm11, %v5917_v54, %v10646_v26 }
 0x619   : > { %5979 = vrot.lane.b32.xlu1 %v5922_v6, %s7006_s14  ;;  %v5940_v51 = vpop.permute.xlu2 %5939  ;;  %v6752_v6 = vld [vmem:[%s7187_s17] sm:$0xff]  ;;  %s6926_s14 = scalar_lea.hbm %s6925_s13, 64 }
 0x61a   : > { %6011 = vrot.lane.b32.xlu0 %v5924_v63, %s7007_s26  ;;  %v6024_v10 = vsel %vm3627_vm12, %v5702_v32, %v5940_v51  ;;  %v6758_v32 = vld [vmem:[%s7187_s17 + $0x30] sm:$0xff]  ;;  %p6927_p1 = scmp.ne.s32.totalorder %s6925_s13, %s6926_s14  ;;  %p6932_p2 = scmp.lt.s32.totalorder %s6930_s21, %s6926_s14 }
 0x61b   : > { %5947 = vrot.lane.b32.xlu2 %v5920_v9, %s7008_s25  ;;  %v5968_v38 = vpop.permute.xlu1 %5967  ;;  %v6753_v9 = vld [vmem:[%s7187_s17 + $0x8] sm:$0xff] }
 0x61c   : > { %p6928_p4 = pnand %p6927_p1, %p7148_p3  ;;  %p6933_p10 = por %p6932_p2, %p6931_p9 }
 0x61d   : > { %v5936_v5 = vpop.permute.xlu0 %5935 }
 0x61e   : > { %v6022_v59 = vsel %vm3627_vm12, %v5594_v16, %v5936_v5  ;;  %p6929_p8 = pneg %p6928_p4 }
 0x61f   : > { %v6030_v25 = vsel %vm4228_vm13, %v6022_v59, %v5968_v38  ;;  %v6754_v38 = vld [vmem:[%s7187_s17 + $0x10] sm:$0xff] }
 0x620   : > { %p6934_p11 = pnand %p6933_p10, %p6929_p8 }
 0x625   : > { %v6000_v45 = vpop.permute.xlu0 %5999  ;;  %v5970_v0 = vpop.permute.xlu1 %5969 }
 0x626   : > { %v6039_v53 = vsel %vm6037_vm14, %v6030_v25, %v6000_v45  ;;  %v6031_v29 = vsel %vm4228_vm13, %v6023_v58, %v5970_v0 }
 0x627   : > { %6386 = vmatmul.msk.f32.gmra.mxu0 %vm401_vm0, %v6039_v53  ;;  %v6755_v53 = vld [vmem:[%s7187_s17 + $0x18] sm:$0xff] }
 0x62d   : > { %v6002_v4 = vpop.permute.xlu0 %6001 }
 0x62e   : > { %v6040_v24 = vsel %vm6037_vm14, %v6031_v29, %v6002_v4 }
 0x62f   : > { %6387 = vmatmul.msk.f32.gmra.mxu0 %vm401_vm0, %v6040_v24  ;;  %v5972_v42 = vpop.permute.xlu1 %5971  ;;  %v6757_v24 = vld [vmem:[%s7187_s17 + $0x28] sm:$0xff] }
 0x630   : > { %v6032_v62 = vsel %vm4228_vm13, %v6024_v10, %v5972_v42 }
 0x635   : > { %v6004_v13 = vpop.permute.xlu0 %6003 }
 0x636   : > { %v6041_v57 = vsel %vm6037_vm14, %v6032_v62, %v6004_v13 }
 0x637   : > { %6388 = vmatmul.msk.f32.gmra.mxu0 %vm401_vm0, %v6041_v57  ;;  %v6759_v57 = vld [vmem:[%s7187_s17 + $0x38] sm:$0xff] }
 0x65c   : > { %v5942_v46 = vpop.permute.xlu2 %5941 }
 0x65d   : > { %v6025_v60 = vsel %vm3627_vm12, %v5756_v47, %v5942_v46 }
 0x665   : > { %v5944_v33 = vpop.permute.xlu2 %5943 }
 0x666   : > { %v6026_v12 = vsel %vm3627_vm12, %v5810_v35, %v5944_v33 }
 0x66c   : > { %v5974_v52 = vpop.permute.xlu1 %5973 }
 0x66d   : > { %v6033_v61 = vsel %vm4228_vm13, %v6025_v60, %v5974_v52  ;;  %v5946_v22 = vpop.permute.xlu2 %5945 }
 0x66e   : > { %v6006_v1 = vpop.permute.xlu0 %6005  ;;  %v6027_v15 = vsel %vm3627_vm12, %v5864_v55, %v5946_v22 }
 0x66f   : > { %v6042_v34 = vsel %vm6037_vm14, %v6033_v61, %v6006_v1 }
 0x670   : > { %6389 = vmatmul.msk.f32.gmra.mxu0 %vm401_vm0, %v6042_v34 }
 0x675   : > { %v5948_v44 = vpop.permute.xlu2 %5947 }
 0x676   : > { %v6028_v3 = vsel %vm3627_vm12, %v5918_v21, %v5948_v44 }
 0x67b   : > { %v5976_v27 = vpop.permute.xlu1 %5975 }
 0x67c   : > { %v6034_v49 = vsel %vm4228_vm13, %v6026_v12, %v5976_v27  ;;  %v6008_v7 = vpop.permute.xlu0 %6007 }
 0x67d   : > { %v6043_v11 = vsel %vm6037_vm14, %v6034_v49, %v6008_v7 }
 0x67e   : > { %6390 = vmatmul.msk.f32.gmra.mxu0 %vm401_vm0, %v6043_v11 }
 0x683   : > { %v5978_v40 = vpop.permute.xlu1 %5977 }
 0x684   : > { %v6035_v41 = vsel %vm4228_vm13, %v6027_v15, %v5978_v40  ;;  %v6010_v39 = vpop.permute.xlu0 %6009 }
 0x685   : > { %v6044_v31 = vsel %vm6037_vm14, %v6035_v41, %v6010_v39 }
 0x686   : > { %6391 = vmatmul.msk.f32.gmra.mxu0 %vm401_vm0, %v6044_v31 }
 0x68b   : > { %v5980_v28 = vpop.permute.xlu1 %5979 }
 0x68c   : > { %v6036_v36 = vsel %vm4228_vm13, %v6028_v3, %v5980_v28  ;;  %v6012_v8 = vpop.permute.xlu0 %6011 }
 0x68d   : > { %v6045_v56 = vsel %vm6037_vm14, %v6036_v36, %v6012_v8 }
 0x68e   : > { %6392 = vmatmul.msk.f32.gmra.mxu0 %vm401_vm0, %v6045_v56 }
 0x690   : > { %v6095_v37 = vpop.f32.mrf.mxu0 }
 0x691   : > { %v6096_v43 = vadd.f32 %v6605_v17, %v6095_v37 }
 0x693   : > { %v6119_v26 = vadd.f32 %v6752_v6, %v6096_v43 }
 0x695   : > { %6127 = vst.msk [vmem:[%s10720_s23] sm:$0xff] %vm401_vm0, %v6119_v26 }
 0x6a4   : > { %v6098_v14 = vpop.f32.mrf.mxu0 }
 0x6a5   : > { %v6099_v63 = vadd.f32 %v6605_v17, %v6098_v14 }
 0x6a7   : > { %v6120_v23 = vadd.f32 %v6753_v9, %v6099_v63 }
 0x6a9   : > { %6128 = vst.msk [vmem:[%s10720_s23 + $0x8] sm:$0xff] %vm401_vm0, %v6120_v23 }
 0x6ac   : > { %v6101_v5 = vpop.f32.mrf.mxu0 }
 0x6ad   : > { %v6102_v16 = vadd.f32 %v6605_v17, %v6101_v5 }
 0x6af   : > { %v6121_v59 = vadd.f32 %v6754_v38, %v6102_v16 }
 0x6b1   : > { %6129 = vst.msk [vmem:[%s10720_s23 + $0x10] sm:$0xff] %vm401_vm0, %v6121_v59 }
 0x6b4   : > { %v6104_v45 = vpop.f32.mrf.mxu0 }
 0x6b5   : > { %v6105_v25 = vadd.f32 %v6605_v17, %v6104_v45 }
 0x6b7   : > { %v6122_v20 = vadd.f32 %v6755_v53, %v6105_v25 }
 0x6b9   : > { %6130 = vst.msk [vmem:[%s10720_s23 + $0x18] sm:$0xff] %vm401_vm0, %v6122_v20 }
 0x6ed   : > { %v6107_v50 = vpop.f32.mrf.mxu0 }
 0x6ee   : > { %v6108_v0 = vadd.f32 %v6605_v17, %v6107_v50 }
 0x6f0   : > { %v6123_v58 = vadd.f32 %v6756_v19, %v6108_v0 }
 0x6f2   : > { %6131 = vst.msk [vmem:[%s10720_s23 + $0x20] sm:$0xff] %vm401_vm0, %v6123_v58 }
 0x6fb   : > { %v6110_v29 = vpop.f32.mrf.mxu0 }
 0x6fc   : > { %v6111_v4 = vadd.f32 %v6605_v17, %v6110_v29 }
 0x6fe   : > { %v6124_v30 = vadd.f32 %v6757_v24, %v6111_v4 }
 0x700   : > { %6132 = vst.msk [vmem:[%s10720_s23 + $0x28] sm:$0xff] %vm401_vm0, %v6124_v30 }
 0x703   : > { %v6113_v51 = vpop.f32.mrf.mxu0 }
 0x704   : > { %v6114_v42 = vadd.f32 %v6605_v17, %v6113_v51 }
 0x706   : > { %v6125_v10 = vadd.f32 %v6758_v32, %v6114_v42 }
 0x708   : > { %6133 = vst.msk [vmem:[%s10720_s23 + $0x30] sm:$0xff] %vm401_vm0, %v6125_v10 }
 0x70b   : > { %v6116_v62 = vpop.f32.mrf.mxu0 }
 0x70c   : > { %v6117_v13 = vadd.f32 %v6605_v17, %v6116_v62 }
 0x70e   : > { %v6126_v2 = vadd.f32 %v6759_v57, %v6117_v13 }
 0x710   : > { %6134 = vst.msk [vmem:[%s10720_s23 + $0x38] sm:$0xff] %vm401_vm0, %v6126_v2 }
 0x711   : > { %6937 = shalt.err (!%p6934_p11)
}
 0x712   : > { %s7009_s18 = smov 128  }
 0x713   : > { %6433 = dma.vmem_to_hbm [thread:$0]  (%p7148_p3), %s6150_s11, 1024, %s6152_s16, %s6136_s9, %s7009_s18, %s7009_s18, %s7008_s25  }
 0x714 PF: > { %s6166_s17 = sand.u32 1, %s6972_s27   ;;  %p10876_p12 = scmp.ge.s32.totalorder %s6984_s30, 2 }
 0x715   : > { %s6167_s23 = scalar_lea.sflag [#allocation4], %s6166_s17 }
 0x716   : > { %p6453_p13 = pnand %p10876_p12, %p7090_p6 }
 0x718   : > { %p6454_p0 = pneg %p6453_p13 }
 0x71a   : > { %6967 = dma.done.wait (%p6454_p0), %s6167_s23, 1024  }
 0x71b   : > { %6969 = vsyncadd (%p6454_p0), %s6167_s23, 4294966272  ;;  %p23_p5 = scmp.ge.s32.totalorder %s7138_s24, 4   ;;  %s10877_s27 = smov %s6976_s28 }
 0x71c   : > { %s10878_s28 = smov %s6980_s29  ;;  %s10879_s29 = smov %s7154_s15 }
 0x71d   : > { %s10880_s30 = smov %s7138_s24  ;;  %25 = sbr.rel (!%p23_p5) target bundleno = 10 (0xa), region = 113 }
 0x722   :  { %6173 = vsyncpa [#allocation3], 1 }
 0x723   :  { %6175 = vsyncpa [#allocation3 + $0x1], 1 }
 0x724   :  { %6176 = vsyncpa [#allocation6], 1 }
 0x725   :  { %6177 = vsyncpa [#allocation9], 1 }
 0x726   :  { %6178 = vsyncpa [#allocation4], 1 }
 0x727   :  { %6180 = vsyncpa [#allocation4 + $0x1], 1 }

</bundles_post_ra>
